<compile_context>
chip_gen: v7x
topology: tpu7x:2x2x1
jax: 0.10.0
libtpu: 0.0.40
codegen_flags: <defaults>
</compile_context>

<pallas_src>
import jax
import jax.numpy as jnp
from jax import lax
from jax.experimental import pallas as pl
from jax.experimental.pallas import tpu as pltpu


# ----------------------------------------------------------------------------
# Pallas kernels
# ----------------------------------------------------------------------------
def _conv_bn_lrelu_kernel(p_ref, w_ref, s_ref, b_ref, o_ref):
    # p_ref: (1, K, M) bf16 im2col patches for one batch element (M lane-dense)
    # w_ref: (Cout, K) bf16 flattened conv weight
    # s_ref, b_ref: (Cout, 1) f32 folded eval-mode BatchNorm scale / bias
    # o_ref: (1, Cout, M) bf16
    acc = jnp.dot(w_ref[...], p_ref[0],
                  preferred_element_type=jnp.float32)               # (Cout, M) f32
    y = acc * s_ref[...] + b_ref[...]                                # BN (eval)
    o_ref[0] = jnp.where(y >= 0.0, y, 0.01 * y).astype(o_ref.dtype)  # LeakyReLU


def _conv_kernel(p_ref, w_ref, o_ref):
    # Plain conv (no BN, no activation) -- general fallback for conv5.
    o_ref[0] = jnp.dot(w_ref[...], p_ref[0],
                       preferred_element_type=jnp.float32).astype(o_ref.dtype)


def _conv45_fused_kernel(p_ref, w4_ref, s_ref, b_ref, w5_ref, o_ref):
    # Fused conv4 -> BN4 -> LeakyReLU -> conv5.  conv5's 2x2x2 kernel covers
    # the whole 2x2x2 conv4 output, so conv5 is a weighted full reduce of the
    # conv4 activation while it is still resident in VMEM.
    # p_ref : (1, K4, M4) bf16 conv4 im2col patches (M4 == 8)
    # w4_ref: (C4, K4) bf16;  s_ref/b_ref: (C4, 1) f32 folded BN
    # w5_ref: (C4, M4) bf16 conv5 weight laid out to match the conv4 output
    # o_ref : (1, 1, 1) f32
    acc = jnp.dot(w4_ref[...], p_ref[0],
                  preferred_element_type=jnp.float32)                # (C4, M4) f32
    y = acc * s_ref[...] + b_ref[...]
    h = jnp.where(y >= 0.0, y, 0.01 * y)
    # Round-trip through bf16 so the fused path matches the unfused pipeline
    # (inter-stage activations are stored bf16 there); exact bf16 products are
    # then accumulated in f32, identical to MXU bf16xbf16->f32 semantics.
    h32 = h.astype(jnp.bfloat16).astype(jnp.float32)
    w32 = w5_ref[...].astype(jnp.float32)
    o_ref[0] = jnp.sum(w32 * h32, axis=0, keepdims=True).sum(axis=1, keepdims=True)


# ----------------------------------------------------------------------------
# Glue: strided im2col in K-major (Cin, kD, kH, kW) x M=(Do*Ho*Wo) layout
# ----------------------------------------------------------------------------
def _out_dims(dims, k, stride, pad):
    return tuple((d + 2 * pad - k) // stride + 1 for d in dims)


def _im2col_strided(x, k, stride, pad):
    # x: (N, C, D, H, W) -> (N, K, M) with K = C*k^3 ordered like the PyTorch
    # weight reshape (Cout, Cin*kD*kH*kW), M = Do*Ho*Wo.
    if pad:
        x = jnp.pad(x, ((0, 0), (0, 0), (pad, pad), (pad, pad), (pad, pad)))
    N, C, D, H, W = x.shape
    Do = (D - k) // stride + 1
    Ho = (H - k) // stride + 1
    Wo = (W - k) // stride + 1
    taps = []
    for a in range(k):
        for b in range(k):
            for c in range(k):
                taps.append(lax.slice(
                    x, (0, 0, a, b, c),
                    (N, C,
                     a + (Do - 1) * stride + 1,
                     b + (Ho - 1) * stride + 1,
                     c + (Wo - 1) * stride + 1),
                    (1, 1, stride, stride, stride)))            # (N,C,Do,Ho,Wo)
    p = jnp.stack(taps, axis=2)                                 # (N,C,k^3,Do,Ho,Wo)
    return p.reshape(N, C * k * k * k, Do * Ho * Wo), (Do, Ho, Wo)


_CPARAMS = pltpu.CompilerParams(dimension_semantics=("parallel",))


def conv_stage(x, w, scale, bias, *, ksize, stride, pad, out_dtype):
    """One conv (+ optional BN + LeakyReLU) block on NCDHW input x."""
    N = x.shape[0]
    Cout = w.shape[0]
    patches, (Do, Ho, Wo) = _im2col_strided(x, ksize, stride, pad)
    K, M = patches.shape[1], patches.shape[2]
    patches = patches.astype(jnp.bfloat16)
    w2 = w.reshape(Cout, K).astype(jnp.bfloat16)

    if scale is not None:
        out = pl.pallas_call(
            _conv_bn_lrelu_kernel,
            out_shape=jax.ShapeDtypeStruct((N, Cout, M), out_dtype),
            grid=(N,),
            in_specs=[pl.BlockSpec((1, K, M), lambda n: (n, 0, 0)),
                      pl.BlockSpec((Cout, K), lambda n: (0, 0)),
                      pl.BlockSpec((Cout, 1), lambda n: (0, 0)),
                      pl.BlockSpec((Cout, 1), lambda n: (0, 0))],
            out_specs=pl.BlockSpec((1, Cout, M), lambda n: (n, 0, 0)),
            compiler_params=_CPARAMS,
        )(patches, w2, scale, bias)
    else:
        out = pl.pallas_call(
            _conv_kernel,
            out_shape=jax.ShapeDtypeStruct((N, Cout, M), out_dtype),
            grid=(N,),
            in_specs=[pl.BlockSpec((1, K, M), lambda n: (n, 0, 0)),
                      pl.BlockSpec((Cout, K), lambda n: (0, 0))],
            out_specs=pl.BlockSpec((1, Cout, M), lambda n: (n, 0, 0)),
            compiler_params=_CPARAMS,
        )(patches, w2)
    return out.reshape(N, Cout, Do, Ho, Wo)


def conv45_fused(x, w4, s4, b4, w5):
    """conv4 -> BN4 -> LeakyReLU -> conv5 in one pallas_call (conv4 output 2^3)."""
    N = x.shape[0]
    C4 = w4.shape[0]
    patches, (Do, Ho, Wo) = _im2col_strided(x, 3, 2, 0)
    K4, M4 = patches.shape[1], patches.shape[2]          # M4 == Do*Ho*Wo == 8
    patches = patches.astype(jnp.bfloat16)
    w4_2d = w4.reshape(C4, K4).astype(jnp.bfloat16)
    w5_2d = w5.reshape(C4, M4).astype(jnp.bfloat16)      # (1,C4,2,2,2) -> (C4,8)
    out = pl.pallas_call(
        _conv45_fused_kernel,
        out_shape=jax.ShapeDtypeStruct((N, 1, 1), jnp.float32),
        grid=(N,),
        in_specs=[pl.BlockSpec((1, K4, M4), lambda n: (n, 0, 0)),
                  pl.BlockSpec((C4, K4), lambda n: (0, 0)),
                  pl.BlockSpec((C4, 1), lambda n: (0, 0)),
                  pl.BlockSpec((C4, 1), lambda n: (0, 0)),
                  pl.BlockSpec((C4, M4), lambda n: (0, 0))],
        out_specs=pl.BlockSpec((1, 1, 1), lambda n: (n, 0, 0)),
        compiler_params=_CPARAMS,
    )(patches, w4_2d, s4, b4, w5_2d)
    return out


# (kernel, stride, padding, has_bn_and_lrelu) for conv1..conv5
_LAYERS = [(4, 2, 0, True),
           (4, 2, 0, True),
           (4, 2, 1, True),
           (3, 2, 0, True),
           (2, 1, 0, False)]


def netd_forward(params, x, y=None):
    # x: (N, 1, D, H, W) NCDHW; y unused (mirrors the PyTorch forward).
    del y
    h = x.astype(jnp.float32)
    for i in range(1, 4):                                     # conv1..conv3
        k, s, p, _ = _LAYERS[i - 1]
        h = conv_stage(h, params[f"w{i}"], params[f"s{i}"], params[f"b{i}"],
                       ksize=k, stride=s, pad=p, out_dtype=jnp.bfloat16)
    # conv4 + conv5: fused when conv4's output spatial extent equals conv5's
    # 2x2x2 kernel (the architecture's intended input size); else fall back.
    if _out_dims(h.shape[2:], 3, 2, 0) == (2, 2, 2):
        out = conv45_fused(h, params["w4"], params["s4"], params["b4"],
                           params["w5"])
        return out.reshape(-1)                                # x.view(-1)
    h = conv_stage(h, params["w4"], params["s4"], params["b4"],
                   ksize=3, stride=2, pad=0, out_dtype=jnp.bfloat16)
    h = conv_stage(h, params["w5"], None, None,
                   ksize=2, stride=1, pad=0, out_dtype=jnp.float32)
    return h.reshape(-1)                                      # x.view(-1)


# ----------------------------------------------------------------------------
# Pure-JAX reference (same math: bf16 matmul inputs, f32 accumulation)
# ----------------------------------------------------------------------------
def netd_forward_ref(params, x, y=None):
    del y
    h = x.astype(jnp.float32)
    for i, (k, s, p, has_bn) in enumerate(_LAYERS, start=1):
        w = params[f"w{i}"]
        Cout = w.shape[0]
        patches, (Do, Ho, Wo) = _im2col_strided(h, k, s, p)
        acc = jnp.einsum("ok,nkm->nom",
                         w.reshape(Cout, -1).astype(jnp.bfloat16),
                         patches.astype(jnp.bfloat16),
                         preferred_element_type=jnp.float32)
        if has_bn:
            z = (acc * params[f"s{i}"].reshape(1, Cout, 1)
                 + params[f"b{i}"].reshape(1, Cout, 1))
            acc = jnp.where(z >= 0.0, z, 0.01 * z).astype(jnp.bfloat16)
        else:
            acc = acc.astype(jnp.float32)
        h = acc.reshape(h.shape[0], Cout, Do, Ho, Wo)
    return h.reshape(-1)


# ----------------------------------------------------------------------------
# Deterministic parameter initialization (shapes from _netD.__init__)
# ----------------------------------------------------------------------------
def init_params(key, num=4):
    cfg = [  # (Cin, Cout, k, has_bn)
        (1, num, 4, True),
        (num, 2 * num, 4, True),
        (2 * num, 4 * num, 4, True),
        (4 * num, 8 * num, 3, True),
        (8 * num, 1, 2, False),
    ]
    eps = 1e-5
    params = {}
    for i, (ci, co, k, has_bn) in enumerate(cfg, start=1):
        key, kw, kg, kb, km, kv = jax.random.split(key, 6)
        fan_in = float(ci * k ** 3)
        params[f"w{i}"] = (jax.random.normal(kw, (co, ci, k, k, k), jnp.float32)
                           * (1.0 / fan_in ** 0.5))
        if has_bn:
            gamma = 1.0 + 0.1 * jax.random.normal(kg, (co,), jnp.float32)
            beta = 0.1 * jax.random.normal(kb, (co,), jnp.float32)
            rmean = 0.1 * jax.random.normal(km, (co,), jnp.float32)
            rvar = 1.0 + 0.1 * jax.random.uniform(kv, (co,), jnp.float32)
            scale = gamma / jnp.sqrt(rvar + eps)    # folded eval-mode BatchNorm
            bias = beta - rmean * scale
            params[f"s{i}"] = scale.reshape(co, 1)
            params[f"b{i}"] = bias.reshape(co, 1)
    return params


if __name__ == "__main__":
    num = 4
    key = jax.random.PRNGKey(0)
    kx, ky, kp = jax.random.split(key, 3)
    # Smallest cube that survives conv1..conv5 is 46.
    x = jax.random.normal(kx, (2, 1, 46, 46, 46), jnp.float32)   # NCDHW
    y = jax.random.normal(ky, (2,), jnp.float32)                 # unused by forward
    params = init_params(kp, num=num)

    fwd = jax.jit(netd_forward)
    out = jax.block_until_ready(fwd(params, x, y))
    ref = jax.block_until_ready(netd_forward_ref(params, x, y))

    assert out.shape == (2,), out.shape
    err = float(jnp.max(jnp.abs(out - ref)))
    assert jnp.allclose(out, ref, atol=1e-2, rtol=1e-2), err
    print("KERNEL_OK")
</pallas_src>

<mosaic_0001>
module attributes {stable_mosaic.version = 11 : i64} {
  func.func @_conv_bn_lrelu_kernel(%arg0: i32, %arg1: memref<1x64x10648xbf16, #tpu.memory_space<vmem>>, %arg2: memref<4x64xbf16, #tpu.memory_space<vmem>>, %arg3: memref<4x1xf32, #tpu.memory_space<vmem>>, %arg4: memref<4x1xf32, #tpu.memory_space<vmem>>, %arg5: memref<1x4x10648xbf16, #tpu.memory_space<vmem>>) attributes {dimension_semantics = [#tpu.dimension_semantics<parallel>], iteration_bounds = array<i64: 2>, scalar_prefetch = 0 : i64, scratch_operands = 0 : i64, tpu.core_type = #tpu.core_type<tc>, window_params = [{transform_indices = @transform_0, window_bounds = array<i64: 1, 64, 10648>}, {pipeline_mode = #tpu.pipeline_mode<synchronous>, transform_indices = @transform_1, window_bounds = array<i64: 4, 64>}, {pipeline_mode = #tpu.pipeline_mode<synchronous>, transform_indices = @transform_2, window_bounds = array<i64: 4, 1>}, {pipeline_mode = #tpu.pipeline_mode<synchronous>, transform_indices = @transform_3, window_bounds = array<i64: 4, 1>}, {transform_indices = @transform_4, window_bounds = array<i64: 1, 4, 10648>}]} {
    %c0 = arith.constant 0 : index
    %c0_0 = arith.constant 0 : index
    %0 = vector.load %arg2[%c0, %c0_0] : memref<4x64xbf16, #tpu.memory_space<vmem>>, vector<4x64xbf16>
    %c0_1 = arith.constant 0 : index
    %c0_2 = arith.constant 0 : index
    %c0_3 = arith.constant 0 : index
    %1 = vector.load %arg1[%c0_1, %c0_2, %c0_3] : memref<1x64x10648xbf16, #tpu.memory_space<vmem>>, vector<1x64x10648xbf16>
    %2 = vector.shape_cast %1 : vector<1x64x10648xbf16> to vector<64x10648xbf16>
    %cst = arith.constant dense<0.000000e+00> : vector<4x10648xf32>
    %3 = tpu.matmul %0, %2, %cst {dimension_numbers = #tpu.dot_dimension_numbers<[1], [0], [0], [1], [0, 0, 1, 1], [], []>} : vector<4x64xbf16>, vector<64x10648xbf16>, vector<4x10648xf32> -> vector<4x10648xf32>
    %c0_4 = arith.constant 0 : index
    %c0_5 = arith.constant 0 : index
    %4 = vector.load %arg3[%c0_4, %c0_5] : memref<4x1xf32, #tpu.memory_space<vmem>>, vector<4x1xf32>
    %5 = vector.broadcast %4 : vector<4x1xf32> to vector<4x10648xf32>
    %6 = arith.mulf %3, %5 : vector<4x10648xf32>
    %c0_6 = arith.constant 0 : index
    %c0_7 = arith.constant 0 : index
    %7 = vector.load %arg4[%c0_6, %c0_7] : memref<4x1xf32, #tpu.memory_space<vmem>>, vector<4x1xf32>
    %8 = vector.broadcast %7 : vector<4x1xf32> to vector<4x10648xf32>
    %9 = arith.addf %6, %8 : vector<4x10648xf32>
    %cst_8 = arith.constant 0.000000e+00 : f32
    %10 = vector.broadcast %cst_8 : f32 to vector<4x10648xf32>
    %11 = arith.cmpf oge, %9, %10 : vector<4x10648xf32>
    %cst_9 = arith.constant 0.00999999977 : f32
    %12 = vector.broadcast %cst_9 : f32 to vector<4x10648xf32>
    %13 = arith.mulf %12, %9 : vector<4x10648xf32>
    %14 = arith.select %11, %9, %13 : vector<4x10648xi1>, vector<4x10648xf32>
    %15 = arith.truncf %14 : vector<4x10648xf32> to vector<4x10648xbf16>
    %c0_10 = arith.constant 0 : index
    %c0_11 = arith.constant 0 : index
    %c0_12 = arith.constant 0 : index
    %16 = vector.load %arg5[%c0_10, %c0_11, %c0_12] : memref<1x4x10648xbf16, #tpu.memory_space<vmem>>, vector<1x4x10648xbf16>
    %17 = vector.shape_cast %16 : vector<1x4x10648xbf16> to vector<4x10648xbf16>
    %18 = vector.shape_cast %15 : vector<4x10648xbf16> to vector<1x4x10648xbf16>
    tpu.vector_store %arg5[%c0_10, %c0_11, %c0_12], %18 {strides = array<i32>} : memref<1x4x10648xbf16, #tpu.memory_space<vmem>>, vector<1x4x10648xbf16>,
    return
  }
  func.func @transform_0(%arg0: i32) -> (i32, i32, i32) {
    %c0_i32 = arith.constant 0 : i32
    %c0_i32_0 = arith.constant 0 : i32
    %c0_i32_1 = arith.constant 0 : i32
    return %arg0, %c0_i32, %c0_i32_0 : i32, i32, i32
  }
  func.func @transform_1(%arg0: i32) -> (i32, i32) {
    %c0_i32 = arith.constant 0 : i32
    %c0_i32_0 = arith.constant 0 : i32
    %c0_i32_1 = arith.constant 0 : i32
    return %c0_i32, %c0_i32_0 : i32, i32
  }
  func.func @transform_2(%arg0: i32) -> (i32, i32) {
    %c0_i32 = arith.constant 0 : i32
    %c0_i32_0 = arith.constant 0 : i32
    %c0_i32_1 = arith.constant 0 : i32
    return %c0_i32, %c0_i32_0 : i32, i32
  }
  func.func @transform_3(%arg0: i32) -> (i32, i32) {
    %c0_i32 = arith.constant 0 : i32
    %c0_i32_0 = arith.constant 0 : i32
    %c0_i32_1 = arith.constant 0 : i32
    return %c0_i32, %c0_i32_0 : i32, i32
  }
  func.func @transform_4(%arg0: i32) -> (i32, i32, i32) {
    %c0_i32 = arith.constant 0 : i32
    %c0_i32_0 = arith.constant 0 : i32
    %c0_i32_1 = arith.constant 0 : i32
    return %arg0, %c0_i32, %c0_i32_0 : i32, i32, i32
  }
}

module attributes {stable_mosaic.version = 11 : i64} {
  func.func @_conv_bn_lrelu_kernel(%arg0: i32, %arg1: memref<1x256x1000xbf16, #tpu.memory_space<vmem>>, %arg2: memref<8x256xbf16, #tpu.memory_space<vmem>>, %arg3: memref<8x1xf32, #tpu.memory_space<vmem>>, %arg4: memref<8x1xf32, #tpu.memory_space<vmem>>, %arg5: memref<1x8x1000xbf16, #tpu.memory_space<vmem>>) attributes {dimension_semantics = [#tpu.dimension_semantics<parallel>], iteration_bounds = array<i64: 2>, scalar_prefetch = 0 : i64, scratch_operands = 0 : i64, tpu.core_type = #tpu.core_type<tc>, window_params = [{transform_indices = @transform_0, window_bounds = array<i64: 1, 256, 1000>}, {pipeline_mode = #tpu.pipeline_mode<synchronous>, transform_indices = @transform_1, window_bounds = array<i64: 8, 256>}, {pipeline_mode = #tpu.pipeline_mode<synchronous>, transform_indices = @transform_2, window_bounds = array<i64: 8, 1>}, {pipeline_mode = #tpu.pipeline_mode<synchronous>, transform_indices = @transform_3, window_bounds = array<i64: 8, 1>}, {transform_indices = @transform_4, window_bounds = array<i64: 1, 8, 1000>}]} {
    %c0 = arith.constant 0 : index
    %c0_0 = arith.constant 0 : index
    %0 = vector.load %arg2[%c0, %c0_0] : memref<8x256xbf16, #tpu.memory_space<vmem>>, vector<8x256xbf16>
    %c0_1 = arith.constant 0 : index
    %c0_2 = arith.constant 0 : index
    %c0_3 = arith.constant 0 : index
    %1 = vector.load %arg1[%c0_1, %c0_2, %c0_3] : memref<1x256x1000xbf16, #tpu.memory_space<vmem>>, vector<1x256x1000xbf16>
    %2 = vector.shape_cast %1 : vector<1x256x1000xbf16> to vector<256x1000xbf16>
    %cst = arith.constant dense<0.000000e+00> : vector<8x1000xf32>
    %3 = tpu.matmul %0, %2, %cst {dimension_numbers = #tpu.dot_dimension_numbers<[1], [0], [0], [1], [0, 0, 1, 1], [], []>} : vector<8x256xbf16>, vector<256x1000xbf16>, vector<8x1000xf32> -> vector<8x1000xf32>
    %c0_4 = arith.constant 0 : index
    %c0_5 = arith.constant 0 : index
    %4 = vector.load %arg3[%c0_4, %c0_5] : memref<8x1xf32, #tpu.memory_space<vmem>>, vector<8x1xf32>
    %5 = vector.broadcast %4 : vector<8x1xf32> to vector<8x1000xf32>
    %6 = arith.mulf %3, %5 : vector<8x1000xf32>
    %c0_6 = arith.constant 0 : index
    %c0_7 = arith.constant 0 : index
    %7 = vector.load %arg4[%c0_6, %c0_7] : memref<8x1xf32, #tpu.memory_space<vmem>>, vector<8x1xf32>
    %8 = vector.broadcast %7 : vector<8x1xf32> to vector<8x1000xf32>
    %9 = arith.addf %6, %8 : vector<8x1000xf32>
    %cst_8 = arith.constant 0.000000e+00 : f32
    %10 = vector.broadcast %cst_8 : f32 to vector<8x1000xf32>
    %11 = arith.cmpf oge, %9, %10 : vector<8x1000xf32>
    %cst_9 = arith.constant 0.00999999977 : f32
    %12 = vector.broadcast %cst_9 : f32 to vector<8x1000xf32>
    %13 = arith.mulf %12, %9 : vector<8x1000xf32>
    %14 = arith.select %11, %9, %13 : vector<8x1000xi1>, vector<8x1000xf32>
    %15 = arith.truncf %14 : vector<8x1000xf32> to vector<8x1000xbf16>
    %c0_10 = arith.constant 0 : index
    %c0_11 = arith.constant 0 : index
    %c0_12 = arith.constant 0 : index
    %16 = vector.load %arg5[%c0_10, %c0_11, %c0_12] : memref<1x8x1000xbf16, #tpu.memory_space<vmem>>, vector<1x8x1000xbf16>
    %17 = vector.shape_cast %16 : vector<1x8x1000xbf16> to vector<8x1000xbf16>
    %18 = vector.shape_cast %15 : vector<8x1000xbf16> to vector<1x8x1000xbf16>
    tpu.vector_store %arg5[%c0_10, %c0_11, %c0_12], %18 {strides = array<i32>} : memref<1x8x1000xbf16, #tpu.memory_space<vmem>>, vector<1x8x1000xbf16>,
    return
  }
  func.func @transform_0(%arg0: i32) -> (i32, i32, i32) {
    %c0_i32 = arith.constant 0 : i32
    %c0_i32_0 = arith.constant 0 : i32
    %c0_i32_1 = arith.constant 0 : i32
    return %arg0, %c0_i32, %c0_i32_0 : i32, i32, i32
  }
  func.func @transform_1(%arg0: i32) -> (i32, i32) {
    %c0_i32 = arith.constant 0 : i32
    %c0_i32_0 = arith.constant 0 : i32
    %c0_i32_1 = arith.constant 0 : i32
    return %c0_i32, %c0_i32_0 : i32, i32
  }
  func.func @transform_2(%arg0: i32) -> (i32, i32) {
    %c0_i32 = arith.constant 0 : i32
    %c0_i32_0 = arith.constant 0 : i32
    %c0_i32_1 = arith.constant 0 : i32
    return %c0_i32, %c0_i32_0 : i32, i32
  }
  func.func @transform_3(%arg0: i32) -> (i32, i32) {
    %c0_i32 = arith.constant 0 : i32
    %c0_i32_0 = arith.constant 0 : i32
    %c0_i32_1 = arith.constant 0 : i32
    return %c0_i32, %c0_i32_0 : i32, i32
  }
  func.func @transform_4(%arg0: i32) -> (i32, i32, i32) {
    %c0_i32 = arith.constant 0 : i32
    %c0_i32_0 = arith.constant 0 : i32
    %c0_i32_1 = arith.constant 0 : i32
    return %arg0, %c0_i32, %c0_i32_0 : i32, i32, i32
  }
}

module attributes {stable_mosaic.version = 11 : i64} {
  func.func @_conv_bn_lrelu_kernel(%arg0: i32, %arg1: memref<1x512x125xbf16, #tpu.memory_space<vmem>>, %arg2: memref<16x512xbf16, #tpu.memory_space<vmem>>, %arg3: memref<16x1xf32, #tpu.memory_space<vmem>>, %arg4: memref<16x1xf32, #tpu.memory_space<vmem>>, %arg5: memref<1x16x125xbf16, #tpu.memory_space<vmem>>) attributes {dimension_semantics = [#tpu.dimension_semantics<parallel>], iteration_bounds = array<i64: 2>, scalar_prefetch = 0 : i64, scratch_operands = 0 : i64, tpu.core_type = #tpu.core_type<tc>, window_params = [{transform_indices = @transform_0, window_bounds = array<i64: 1, 512, 125>}, {pipeline_mode = #tpu.pipeline_mode<synchronous>, transform_indices = @transform_1, window_bounds = array<i64: 16, 512>}, {pipeline_mode = #tpu.pipeline_mode<synchronous>, transform_indices = @transform_2, window_bounds = array<i64: 16, 1>}, {pipeline_mode = #tpu.pipeline_mode<synchronous>, transform_indices = @transform_3, window_bounds = array<i64: 16, 1>}, {transform_indices = @transform_4, window_bounds = array<i64: 1, 16, 125>}]} {
    %c0 = arith.constant 0 : index
    %c0_0 = arith.constant 0 : index
    %0 = vector.load %arg2[%c0, %c0_0] : memref<16x512xbf16, #tpu.memory_space<vmem>>, vector<16x512xbf16>
    %c0_1 = arith.constant 0 : index
    %c0_2 = arith.constant 0 : index
    %c0_3 = arith.constant 0 : index
    %1 = vector.load %arg1[%c0_1, %c0_2, %c0_3] : memref<1x512x125xbf16, #tpu.memory_space<vmem>>, vector<1x512x125xbf16>
    %2 = vector.shape_cast %1 : vector<1x512x125xbf16> to vector<512x125xbf16>
    %cst = arith.constant dense<0.000000e+00> : vector<16x125xf32>
    %3 = tpu.matmul %0, %2, %cst {dimension_numbers = #tpu.dot_dimension_numbers<[1], [0], [0], [1], [0, 0, 1, 1], [], []>} : vector<16x512xbf16>, vector<512x125xbf16>, vector<16x125xf32> -> vector<16x125xf32>
    %c0_4 = arith.constant 0 : index
    %c0_5 = arith.constant 0 : index
    %4 = vector.load %arg3[%c0_4, %c0_5] : memref<16x1xf32, #tpu.memory_space<vmem>>, vector<16x1xf32>
    %5 = vector.broadcast %4 : vector<16x1xf32> to vector<16x125xf32>
    %6 = arith.mulf %3, %5 : vector<16x125xf32>
    %c0_6 = arith.constant 0 : index
    %c0_7 = arith.constant 0 : index
    %7 = vector.load %arg4[%c0_6, %c0_7] : memref<16x1xf32, #tpu.memory_space<vmem>>, vector<16x1xf32>
    %8 = vector.broadcast %7 : vector<16x1xf32> to vector<16x125xf32>
    %9 = arith.addf %6, %8 : vector<16x125xf32>
    %cst_8 = arith.constant 0.000000e+00 : f32
    %10 = vector.broadcast %cst_8 : f32 to vector<16x125xf32>
    %11 = arith.cmpf oge, %9, %10 : vector<16x125xf32>
    %cst_9 = arith.constant 0.00999999977 : f32
    %12 = vector.broadcast %cst_9 : f32 to vector<16x125xf32>
    %13 = arith.mulf %12, %9 : vector<16x125xf32>
    %14 = arith.select %11, %9, %13 : vector<16x125xi1>, vector<16x125xf32>
    %15 = arith.truncf %14 : vector<16x125xf32> to vector<16x125xbf16>
    %c0_10 = arith.constant 0 : index
    %c0_11 = arith.constant 0 : index
    %c0_12 = arith.constant 0 : index
    %16 = vector.load %arg5[%c0_10, %c0_11, %c0_12] : memref<1x16x125xbf16, #tpu.memory_space<vmem>>, vector<1x16x125xbf16>
    %17 = vector.shape_cast %16 : vector<1x16x125xbf16> to vector<16x125xbf16>
    %18 = vector.shape_cast %15 : vector<16x125xbf16> to vector<1x16x125xbf16>
    tpu.vector_store %arg5[%c0_10, %c0_11, %c0_12], %18 {strides = array<i32>} : memref<1x16x125xbf16, #tpu.memory_space<vmem>>, vector<1x16x125xbf16>,
    return
  }
  func.func @transform_0(%arg0: i32) -> (i32, i32, i32) {
    %c0_i32 = arith.constant 0 : i32
    %c0_i32_0 = arith.constant 0 : i32
    %c0_i32_1 = arith.constant 0 : i32
    return %arg0, %c0_i32, %c0_i32_0 : i32, i32, i32
  }
  func.func @transform_1(%arg0: i32) -> (i32, i32) {
    %c0_i32 = arith.constant 0 : i32
    %c0_i32_0 = arith.constant 0 : i32
    %c0_i32_1 = arith.constant 0 : i32
    return %c0_i32, %c0_i32_0 : i32, i32
  }
  func.func @transform_2(%arg0: i32) -> (i32, i32) {
    %c0_i32 = arith.constant 0 : i32
    %c0_i32_0 = arith.constant 0 : i32
    %c0_i32_1 = arith.constant 0 : i32
    return %c0_i32, %c0_i32_0 : i32, i32
  }
  func.func @transform_3(%arg0: i32) -> (i32, i32) {
    %c0_i32 = arith.constant 0 : i32
    %c0_i32_0 = arith.constant 0 : i32
    %c0_i32_1 = arith.constant 0 : i32
    return %c0_i32, %c0_i32_0 : i32, i32
  }
  func.func @transform_4(%arg0: i32) -> (i32, i32, i32) {
    %c0_i32 = arith.constant 0 : i32
    %c0_i32_0 = arith.constant 0 : i32
    %c0_i32_1 = arith.constant 0 : i32
    return %arg0, %c0_i32, %c0_i32_0 : i32, i32, i32
  }
}

module attributes {stable_mosaic.version = 11 : i64} {
  func.func @_conv45_fused_kernel(%arg0: i32, %arg1: memref<1x432x8xbf16, #tpu.memory_space<vmem>>, %arg2: memref<32x432xbf16, #tpu.memory_space<vmem>>, %arg3: memref<32x1xf32, #tpu.memory_space<vmem>>, %arg4: memref<32x1xf32, #tpu.memory_space<vmem>>, %arg5: memref<32x8xbf16, #tpu.memory_space<vmem>>, %arg6: memref<1x1x1xf32, #tpu.memory_space<vmem>>) attributes {dimension_semantics = [#tpu.dimension_semantics<parallel>], iteration_bounds = array<i64: 2>, scalar_prefetch = 0 : i64, scratch_operands = 0 : i64, tpu.core_type = #tpu.core_type<tc>, window_params = [{transform_indices = @transform_0, window_bounds = array<i64: 1, 432, 8>}, {pipeline_mode = #tpu.pipeline_mode<synchronous>, transform_indices = @transform_1, window_bounds = array<i64: 32, 432>}, {pipeline_mode = #tpu.pipeline_mode<synchronous>, transform_indices = @transform_2, window_bounds = array<i64: 32, 1>}, {pipeline_mode = #tpu.pipeline_mode<synchronous>, transform_indices = @transform_3, window_bounds = array<i64: 32, 1>}, {pipeline_mode = #tpu.pipeline_mode<synchronous>, transform_indices = @transform_4, window_bounds = array<i64: 32, 8>}, {transform_indices = @transform_5, window_bounds = array<i64: 1, 1, 1>}]} {
    %c0 = arith.constant 0 : index
    %c0_0 = arith.constant 0 : index
    %0 = vector.load %arg2[%c0, %c0_0] : memref<32x432xbf16, #tpu.memory_space<vmem>>, vector<32x432xbf16>
    %c0_1 = arith.constant 0 : index
    %c0_2 = arith.constant 0 : index
    %c0_3 = arith.constant 0 : index
    %1 = vector.load %arg1[%c0_1, %c0_2, %c0_3] : memref<1x432x8xbf16, #tpu.memory_space<vmem>>, vector<1x432x8xbf16>
    %2 = vector.shape_cast %1 : vector<1x432x8xbf16> to vector<432x8xbf16>
    %cst = arith.constant dense<0.000000e+00> : vector<32x8xf32>
    %3 = tpu.matmul %0, %2, %cst {dimension_numbers = #tpu.dot_dimension_numbers<[1], [0], [0], [1], [0, 0, 1, 1], [], []>} : vector<32x432xbf16>, vector<432x8xbf16>, vector<32x8xf32> -> vector<32x8xf32>
    %c0_4 = arith.constant 0 : index
    %c0_5 = arith.constant 0 : index
    %4 = vector.load %arg3[%c0_4, %c0_5] : memref<32x1xf32, #tpu.memory_space<vmem>>, vector<32x1xf32>
    %5 = vector.broadcast %4 : vector<32x1xf32> to vector<32x8xf32>
    %6 = arith.mulf %3, %5 : vector<32x8xf32>
    %c0_6 = arith.constant 0 : index
    %c0_7 = arith.constant 0 : index
    %7 = vector.load %arg4[%c0_6, %c0_7] : memref<32x1xf32, #tpu.memory_space<vmem>>, vector<32x1xf32>
    %8 = vector.broadcast %7 : vector<32x1xf32> to vector<32x8xf32>
    %9 = arith.addf %6, %8 : vector<32x8xf32>
    %cst_8 = arith.constant 0.000000e+00 : f32
    %10 = vector.broadcast %cst_8 : f32 to vector<32x8xf32>
    %11 = arith.cmpf oge, %9, %10 : vector<32x8xf32>
    %cst_9 = arith.constant 0.00999999977 : f32
    %12 = vector.broadcast %cst_9 : f32 to vector<32x8xf32>
    %13 = arith.mulf %12, %9 : vector<32x8xf32>
    %14 = arith.select %11, %9, %13 : vector<32x8xi1>, vector<32x8xf32>
    %15 = arith.truncf %14 : vector<32x8xf32> to vector<32x8xbf16>
    %16 = arith.extf %15 : vector<32x8xbf16> to vector<32x8xf32>
    %c0_10 = arith.constant 0 : index
    %c0_11 = arith.constant 0 : index
    %17 = vector.load %arg5[%c0_10, %c0_11] : memref<32x8xbf16, #tpu.memory_space<vmem>>, vector<32x8xbf16>
    %18 = arith.extf %17 : vector<32x8xbf16> to vector<32x8xf32>
    %19 = arith.mulf %18, %16 : vector<32x8xf32>
    %cst_12 = arith.constant dense<0.000000e+00> : vector<8xf32>
    %20 = vector.multi_reduction <add>, %19, %cst_12 [0] : vector<32x8xf32> to vector<8xf32>
    %21 = vector.shape_cast %20 : vector<8xf32> to vector<1x8xf32>
    %cst_13 = arith.constant dense<0.000000e+00> : vector<1xf32>
    %22 = vector.multi_reduction <add>, %21, %cst_13 [1] : vector<1x8xf32> to vector<1xf32>
    %23 = vector.shape_cast %22 : vector<1xf32> to vector<1x1xf32>
    %c0_14 = arith.constant 0 : index
    %c0_15 = arith.constant 0 : index
    %c0_16 = arith.constant 0 : index
    %24 = vector.load %arg6[%c0_14, %c0_15, %c0_16] : memref<1x1x1xf32, #tpu.memory_space<vmem>>, vector<1x1x1xf32>
    %25 = vector.shape_cast %24 : vector<1x1x1xf32> to vector<1x1xf32>
    %26 = vector.shape_cast %23 : vector<1x1xf32> to vector<1x1x1xf32>
    tpu.vector_store %arg6[%c0_14, %c0_15, %c0_16], %26 {strides = array<i32>} : memref<1x1x1xf32, #tpu.memory_space<vmem>>, vector<1x1x1xf32>,
    return
  }
  func.func @transform_0(%arg0: i32) -> (i32, i32, i32) {
    %c0_i32 = arith.constant 0 : i32
    %c0_i32_0 = arith.constant 0 : i32
    %c0_i32_1 = arith.constant 0 : i32
    return %arg0, %c0_i32, %c0_i32_0 : i32, i32, i32
  }
  func.func @transform_1(%arg0: i32) -> (i32, i32) {
    %c0_i32 = arith.constant 0 : i32
    %c0_i32_0 = arith.constant 0 : i32
    %c0_i32_1 = arith.constant 0 : i32
    return %c0_i32, %c0_i32_0 : i32, i32
  }
  func.func @transform_2(%arg0: i32) -> (i32, i32) {
    %c0_i32 = arith.constant 0 : i32
    %c0_i32_0 = arith.constant 0 : i32
    %c0_i32_1 = arith.constant 0 : i32
    return %c0_i32, %c0_i32_0 : i32, i32
  }
  func.func @transform_3(%arg0: i32) -> (i32, i32) {
    %c0_i32 = arith.constant 0 : i32
    %c0_i32_0 = arith.constant 0 : i32
    %c0_i32_1 = arith.constant 0 : i32
    return %c0_i32, %c0_i32_0 : i32, i32
  }
  func.func @transform_4(%arg0: i32) -> (i32, i32) {
    %c0_i32 = arith.constant 0 : i32
    %c0_i32_0 = arith.constant 0 : i32
    %c0_i32_1 = arith.constant 0 : i32
    return %c0_i32, %c0_i32_0 : i32, i32
  }
  func.func @transform_5(%arg0: i32) -> (i32, i32, i32) {
    %c0_i32 = arith.constant 0 : i32
    %c0_i32_0 = arith.constant 0 : i32
    %c0_i32_1 = arith.constant 0 : i32
    return %arg0, %c0_i32, %c0_i32_0 : i32, i32, i32
  }
}

</mosaic_0001>

<bundles_post_ra>
// kernel: netd_forward.4
= control target key start
LH: loop header
LB: loop body
LE: loop exit
PB: predicated region body
PF: predicated region fallthrough
CT: control target
= control target key end

     0   :  { %s5986_s15 = smov 0   ;;  %s6734_s0 = inlined_call_operand.vmem [shape: bf16[2,64,10648], index: 0, kind: input, shape index: {}]   ;;  %s6735_s1 = inlined_call_operand.vmem [shape: bf16[4,64], index: 1, kind: input, shape index: {}]   ;;  %s6736_s2 = inlined_call_operand.vmem [shape: f32[4,1], index: 2, kind: input, shape index: {}]   ;;  %s6737_s3 = inlined_call_operand.vmem [shape: f32[4,1], index: 3, kind: input, shape index: {}]   ;;  %s6738_s4 = inlined_call_operand.vmem [shape: bf16[2,4,10648], index: 4, kind: output, shape index: {}]  }
   0x1 LB: > { %s5003_s16 = sadd.s32 4294967295, %s5957_s15   ;;  %p5007_p0 = scmp.ge.s32.totalorder %s5957_s15, 1  ;;  %s5957_s15 = sphi %s5986_s15, %s14_s15  }
   0x2   : > { %p162_p1 = scmp.lt.s32.totalorder %s5957_s15, 3 }
   0x4   : > { %p163_p2 = pnand %p5007_p0, %p162_p1 }
   0x5   : > { %p188_p3 = scmp.lt.s32.totalorder (!%p163_p2), %s5003_s16, 1  ;;  %v5959_v0 = vmov (!%p163_p2), 0   ;;  %v3942_v1 = vld [vmem:[%s6736_s2] sm:$0xf] (!%p163_p2)  ;;  %vm2216_vm0 = vcmask (!%p163_p2), 523264  }
   0x6   : > { %166 = sbr.rel (%p163_p2) target bundleno = 581 (0x245), region = 36  ;;  %2252 = vmatprep.mubr.bf16.mxu0 (!%p163_p2), %v5959_v0  ;;  %2293 = vmatprep.mubr.bf16.mxu1 (!%p163_p2), %v5959_v0  ;;  %v4032_v2 = vld [vmem:[%s6737_s3] sm:$0xf] (!%p163_p2) }
   0x7   : > { %5444 = vset.pattern.permute.xlu0 (!%p163_p2), %v5959_v0  ;;  %v6032_v21 = vld [vmem:[%s6735_s1] sm:$0x3] (!%p163_p2) }
   0x8   : > { %3945 = vperm.xlu0 (!%p163_p2), %5444, %v3942_v1  }
   0xc   : > { %4035 = vperm.xlu0 (!%p163_p2), %5444, %v4032_v2  }
   0xd   : > { %s6740_s16 = smov (!%p188_p3, %s5003_s16), 1 }
   0xe   : > { %s5432_s19 = smul.u32 2688, %s6740_s16 }
   0xf   : > { %s5433_s29 = smul.u32 168, %s6740_s16 }
  0x10   : > { %s6009_s24 = scalar_lea.vmem %s6734_s0, %s5432_s19 }
  0x11   : > { %v5445_v3 = vld [vmem:[%s6009_s24 + $0x4] ss:$336 sps:$4 sm:$0xff]   ;;  %v5447_v4 = vld [vmem:[%s6009_s24 + $0xc] ss:$336 sps:$4 sm:$0xff]   ;;  %v5449_v5 = vld [vmem:[%s6009_s24] ss:$336 sps:$4 sm:$0xff]   ;;  %s6371_s6 = scalar_lea.vmem %s6738_s4, %s5433_s29 }
  0x12   : > { %2220 = vmatprep.subr.bf16.mxu0 %v5445_v3  ;;  %v5450_v6 = vld [vmem:[%s6009_s24 + $0x8] ss:$336 sps:$4 sm:$0xff]   ;;  %2261 = vmatprep.subr.bf16.mxu1 %v5447_v4  ;;  %v5451_v7 = vld [vmem:[%s6009_s24 + $0x2a4] ss:$336 sps:$4 sm:$0xff]   ;;  %v5453_v8 = vld [vmem:[%s6009_s24 + $0x2ac] ss:$336 sps:$4 sm:$0xff]  }
  0x13   : > { %2221 = vmatpush1.bf16.msra.mxu0 %v5449_v5  ;;  %2262 = vmatpush1.bf16.msra.mxu1 %v5450_v6  ;;  %v5455_v9 = vld [vmem:[%s6009_s24 + $0x2a0] ss:$336 sps:$4 sm:$0xff]   ;;  %v5456_v10 = vld [vmem:[%s6009_s24 + $0x2a8] ss:$336 sps:$4 sm:$0xff]   ;;  %v5457_v11 = vld [vmem:[%s6009_s24 + $0x544] ss:$336 sps:$4 sm:$0xff]  }
  0x14   : > { %2222 = vmatprep.subr.bf16.mxu0 %v5451_v7  ;;  %2263 = vmatprep.subr.bf16.mxu1 %v5453_v8  ;;  %v5459_v12 = vld [vmem:[%s6009_s24 + $0x54c] ss:$336 sps:$4 sm:$0xff]   ;;  %v5461_v13 = vld [vmem:[%s6009_s24 + $0x540] ss:$336 sps:$4 sm:$0xff]   ;;  %v5462_v14 = vld [vmem:[%s6009_s24 + $0x548] ss:$336 sps:$4 sm:$0xff]  }
  0x15   : > { %v5463_v15 = vld [vmem:[%s6009_s24 + $0x7e4] ss:$336 sps:$4 sm:$0xff]   ;;  %v5465_v16 = vld [vmem:[%s6009_s24 + $0x7ec] ss:$336 sps:$4 sm:$0xff]   ;;  %v5467_v17 = vld [vmem:[%s6009_s24 + $0x7e0] ss:$336 sps:$4 sm:$0xff]  }
  0x16   : > { %v5468_v18 = vld [vmem:[%s6009_s24 + $0x7e8] ss:$336 sps:$4 sm:$0xff]   ;;  %v5471_v19 = vld [vmem:[%s6009_s24 + $0x14] ss:$336 sps:$4 sm:$0xff]   ;;  %v5474_v20 = vld [vmem:[%s6009_s24 + $0x1c] ss:$336 sps:$4 sm:$0xff]  }
  0x17   : > { %2223 = vmatpush1.bf16.msra.mxu0 %v5455_v9  ;;  %2264 = vmatpush1.bf16.msra.mxu1 %v5456_v10  ;;  %v5469_v22 = vld [vmem:[%s6009_s24 + $0x10] ss:$336 sps:$4 sm:$0xff]   ;;  %v5472_v23 = vld [vmem:[%s6009_s24 + $0x18] ss:$336 sps:$4 sm:$0xff]   ;;  %v5477_v24 = vld [vmem:[%s6009_s24 + $0x2b4] ss:$336 sps:$4 sm:$0xff]  }
  0x18   : > { %2224 = vmatprep.subr.bf16.mxu0 %v5457_v11  ;;  %2265 = vmatprep.subr.bf16.mxu1 %v5459_v12  ;;  %v5480_v25 = vld [vmem:[%s6009_s24 + $0x2bc] ss:$336 sps:$4 sm:$0xff]   ;;  %v5475_v26 = vld [vmem:[%s6009_s24 + $0x2b0] ss:$336 sps:$4 sm:$0xff]   ;;  %v5478_v27 = vld [vmem:[%s6009_s24 + $0x2b8] ss:$336 sps:$4 sm:$0xff]  }
  0x19   : > { %v5483_v28 = vld [vmem:[%s6009_s24 + $0x554] ss:$336 sps:$4 sm:$0xff]   ;;  %v5486_v29 = vld [vmem:[%s6009_s24 + $0x55c] ss:$336 sps:$4 sm:$0xff]   ;;  %v5481_v30 = vld [vmem:[%s6009_s24 + $0x550] ss:$336 sps:$4 sm:$0xff]  }
  0x1a   : > { %v5484_v31 = vld [vmem:[%s6009_s24 + $0x558] ss:$336 sps:$4 sm:$0xff]   ;;  %v5489_v32 = vld [vmem:[%s6009_s24 + $0x7f4] ss:$336 sps:$4 sm:$0xff]   ;;  %v5492_v33 = vld [vmem:[%s6009_s24 + $0x7fc] ss:$336 sps:$4 sm:$0xff]  }
  0x1b   : > { %2225 = vmatpush1.bf16.msra.mxu0 %v5461_v13  ;;  %2266 = vmatpush1.bf16.msra.mxu1 %v5462_v14  ;;  %v5487_v34 = vld [vmem:[%s6009_s24 + $0x7f0] ss:$336 sps:$4 sm:$0xff]   ;;  %v5490_v35 = vld [vmem:[%s6009_s24 + $0x7f8] ss:$336 sps:$4 sm:$0xff]   ;;  %v5495_v36 = vld [vmem:[%s6009_s24 + $0x24] ss:$336 sps:$4 sm:$0xff]  }
  0x1c   : > { %2226 = vmatprep.subr.bf16.mxu0 %v5463_v15  ;;  %2267 = vmatprep.subr.bf16.mxu1 %v5465_v16  ;;  %v5498_v37 = vld [vmem:[%s6009_s24 + $0x2c] ss:$336 sps:$4 sm:$0xff]   ;;  %v5493_v38 = vld [vmem:[%s6009_s24 + $0x20] ss:$336 sps:$4 sm:$0xff]   ;;  %v5496_v39 = vld [vmem:[%s6009_s24 + $0x28] ss:$336 sps:$4 sm:$0xff]  }
  0x1d   : > { %v5501_v40 = vld [vmem:[%s6009_s24 + $0x2c4] ss:$336 sps:$4 sm:$0xff]   ;;  %v5504_v41 = vld [vmem:[%s6009_s24 + $0x2cc] ss:$336 sps:$4 sm:$0xff]   ;;  %v5499_v42 = vld [vmem:[%s6009_s24 + $0x2c0] ss:$336 sps:$4 sm:$0xff]  }
  0x1e   : > { %v5502_v43 = vld [vmem:[%s6009_s24 + $0x2c8] ss:$336 sps:$4 sm:$0xff]   ;;  %v5507_v44 = vld [vmem:[%s6009_s24 + $0x564] ss:$336 sps:$4 sm:$0xff]   ;;  %v5510_v45 = vld [vmem:[%s6009_s24 + $0x56c] ss:$336 sps:$4 sm:$0xff]  }
  0x1f   : > { %2227 = vmatpush1.bf16.msra.mxu0 %v5467_v17  ;;  %2268 = vmatpush1.bf16.msra.mxu1 %v5468_v18  ;;  %v5505_v46 = vld [vmem:[%s6009_s24 + $0x560] ss:$336 sps:$4 sm:$0xff]   ;;  %v5508_v47 = vld [vmem:[%s6009_s24 + $0x568] ss:$336 sps:$4 sm:$0xff]   ;;  %v5513_v48 = vld [vmem:[%s6009_s24 + $0x804] ss:$336 sps:$4 sm:$0xff]  }
  0x20   : > { %2302 = vmatprep.subr.bf16.mxu0 %v5471_v19  ;;  %2343 = vmatprep.subr.bf16.mxu1 %v5474_v20  ;;  %v5516_v49 = vld [vmem:[%s6009_s24 + $0x80c] ss:$336 sps:$4 sm:$0xff]   ;;  %v5511_v50 = vld [vmem:[%s6009_s24 + $0x800] ss:$336 sps:$4 sm:$0xff]   ;;  %v5514_v51 = vld [vmem:[%s6009_s24 + $0x808] ss:$336 sps:$4 sm:$0xff]  }
  0x21   : > { %v5519_v52 = vld [vmem:[%s6009_s24 + $0x34] ss:$336 sps:$4 sm:$0xff]   ;;  %v5522_v53 = vld [vmem:[%s6009_s24 + $0x3c] ss:$336 sps:$4 sm:$0xff]   ;;  %v5517_v54 = vld [vmem:[%s6009_s24 + $0x30] ss:$336 sps:$4 sm:$0xff]  }
  0x22   : > { %5346 = vmatmul.mubr.msk.bf16.vlgmr.msra.gmra.mrb[0].mxu0 %vm2216_vm0, %v6032_v21  ;;  %5347 = vmatmul.mubr.msk.bf16.vlgmr.msra.gmra.mrb[0].mxu1 %vm2216_vm0, %v6032_v21  ;;  %v5520_v55 = vld [vmem:[%s6009_s24 + $0x38] ss:$336 sps:$4 sm:$0xff]   ;;  %v5525_v56 = vld [vmem:[%s6009_s24 + $0x2d4] ss:$336 sps:$4 sm:$0xff]   ;;  %v5528_v57 = vld [vmem:[%s6009_s24 + $0x2dc] ss:$336 sps:$4 sm:$0xff]  }
  0x23   : > { %2303 = vmatpush1.bf16.msra.mxu0 %v5469_v22  ;;  %2344 = vmatpush1.bf16.msra.mxu1 %v5472_v23  ;;  %v5523_v58 = vld [vmem:[%s6009_s24 + $0x2d0] ss:$336 sps:$4 sm:$0xff]   ;;  %v5526_v59 = vld [vmem:[%s6009_s24 + $0x2d8] ss:$336 sps:$4 sm:$0xff]   ;;  %v5531_v60 = vld [vmem:[%s6009_s24 + $0x574] ss:$336 sps:$4 sm:$0xff]  }
  0x24   : > { %2304 = vmatprep.subr.bf16.mxu0 %v5477_v24  ;;  %2345 = vmatprep.subr.bf16.mxu1 %v5480_v25  ;;  %v5534_v61 = vld [vmem:[%s6009_s24 + $0x57c] ss:$336 sps:$4 sm:$0xff]   ;;  %v5529_v62 = vld [vmem:[%s6009_s24 + $0x570] ss:$336 sps:$4 sm:$0xff]   ;;  %v5532_v63 = vld [vmem:[%s6009_s24 + $0x578] ss:$336 sps:$4 sm:$0xff]  }
  0x25   : > { %2334 = vmatprep.mubr.bf16.mxu0 %v5959_v0  ;;  %2375 = vmatprep.mubr.bf16.mxu1 %v5959_v0  ;;  %v5537_v1 = vld [vmem:[%s6009_s24 + $0x814] ss:$336 sps:$4 sm:$0xff]   ;;  %v5540_v2 = vld [vmem:[%s6009_s24 + $0x81c] ss:$336 sps:$4 sm:$0xff]   ;;  %v5535_v3 = vld [vmem:[%s6009_s24 + $0x810] ss:$336 sps:$4 sm:$0xff]  }
  0x26   : > { %v5538_v4 = vld [vmem:[%s6009_s24 + $0x818] ss:$336 sps:$4 sm:$0xff]   ;;  %v5543_v5 = vld [vmem:[%s6009_s24 + $0x44] ss:$336 sps:$4 sm:$0xff]   ;;  %v5546_v6 = vld [vmem:[%s6009_s24 + $0x4c] ss:$336 sps:$4 sm:$0xff]  }
  0x27   : > { %2305 = vmatpush1.bf16.msra.mxu0 %v5475_v26  ;;  %2346 = vmatpush1.bf16.msra.mxu1 %v5478_v27  ;;  %v5541_v7 = vld [vmem:[%s6009_s24 + $0x40] ss:$336 sps:$4 sm:$0xff]   ;;  %v5544_v8 = vld [vmem:[%s6009_s24 + $0x48] ss:$336 sps:$4 sm:$0xff]   ;;  %v5549_v9 = vld [vmem:[%s6009_s24 + $0x2e4] ss:$336 sps:$4 sm:$0xff]  }
  0x28   : > { %2306 = vmatprep.subr.bf16.mxu0 %v5483_v28  ;;  %2347 = vmatprep.subr.bf16.mxu1 %v5486_v29  ;;  %v5552_v10 = vld [vmem:[%s6009_s24 + $0x2ec] ss:$336 sps:$4 sm:$0xff]   ;;  %v5547_v11 = vld [vmem:[%s6009_s24 + $0x2e0] ss:$336 sps:$4 sm:$0xff]   ;;  %v5550_v12 = vld [vmem:[%s6009_s24 + $0x2e8] ss:$336 sps:$4 sm:$0xff]  }
  0x29   : > { %v5555_v13 = vld [vmem:[%s6009_s24 + $0x584] ss:$336 sps:$4 sm:$0xff]   ;;  %v5558_v14 = vld [vmem:[%s6009_s24 + $0x58c] ss:$336 sps:$4 sm:$0xff]   ;;  %v5553_v15 = vld [vmem:[%s6009_s24 + $0x580] ss:$336 sps:$4 sm:$0xff]  }
  0x2a   : > { %v5556_v16 = vld [vmem:[%s6009_s24 + $0x588] ss:$336 sps:$4 sm:$0xff]   ;;  %v5561_v17 = vld [vmem:[%s6009_s24 + $0x824] ss:$336 sps:$4 sm:$0xff]   ;;  %v5564_v18 = vld [vmem:[%s6009_s24 + $0x82c] ss:$336 sps:$4 sm:$0xff]  }
  0x2b   : > { %2307 = vmatpush1.bf16.msra.mxu0 %v5481_v30  ;;  %2348 = vmatpush1.bf16.msra.mxu1 %v5484_v31  ;;  %v5559_v19 = vld [vmem:[%s6009_s24 + $0x820] ss:$336 sps:$4 sm:$0xff]   ;;  %v5562_v20 = vld [vmem:[%s6009_s24 + $0x828] ss:$336 sps:$4 sm:$0xff]   ;;  %v5567_v22 = vld [vmem:[%s6009_s24 + $0x54] ss:$336 sps:$4 sm:$0xff]  }
  0x2c   : > { %2308 = vmatprep.subr.bf16.mxu0 %v5489_v32  ;;  %2349 = vmatprep.subr.bf16.mxu1 %v5492_v33  ;;  %v5570_v23 = vld [vmem:[%s6009_s24 + $0x5c] ss:$336 sps:$4 sm:$0xff]   ;;  %v5565_v24 = vld [vmem:[%s6009_s24 + $0x50] ss:$336 sps:$4 sm:$0xff]   ;;  %v5568_v25 = vld [vmem:[%s6009_s24 + $0x58] ss:$336 sps:$4 sm:$0xff]  }
  0x2d   : > { %v5573_v26 = vld [vmem:[%s6009_s24 + $0x2f4] ss:$336 sps:$4 sm:$0xff]   ;;  %v5576_v27 = vld [vmem:[%s6009_s24 + $0x2fc] ss:$336 sps:$4 sm:$0xff]   ;;  %v5571_v28 = vld [vmem:[%s6009_s24 + $0x2f0] ss:$336 sps:$4 sm:$0xff]  }
  0x2e   : > { %v5574_v29 = vld [vmem:[%s6009_s24 + $0x2f8] ss:$336 sps:$4 sm:$0xff]   ;;  %v5579_v30 = vld [vmem:[%s6009_s24 + $0x594] ss:$336 sps:$4 sm:$0xff]   ;;  %v5582_v31 = vld [vmem:[%s6009_s24 + $0x59c] ss:$336 sps:$4 sm:$0xff]  }
  0x2f   : > { %2309 = vmatpush1.bf16.msra.mxu0 %v5487_v34  ;;  %2350 = vmatpush1.bf16.msra.mxu1 %v5490_v35  ;;  %v5577_v32 = vld [vmem:[%s6009_s24 + $0x590] ss:$336 sps:$4 sm:$0xff]   ;;  %v5580_v33 = vld [vmem:[%s6009_s24 + $0x598] ss:$336 sps:$4 sm:$0xff]   ;;  %v5585_v34 = vld [vmem:[%s6009_s24 + $0x834] ss:$336 sps:$4 sm:$0xff]  }
  0x30   : > { %2384 = vmatprep.subr.bf16.mxu0 %v5495_v36  ;;  %2425 = vmatprep.subr.bf16.mxu1 %v5498_v37  ;;  %v5588_v35 = vld [vmem:[%s6009_s24 + $0x83c] ss:$336 sps:$4 sm:$0xff]   ;;  %v5583_v36 = vld [vmem:[%s6009_s24 + $0x830] ss:$336 sps:$4 sm:$0xff]   ;;  %v5586_v37 = vld [vmem:[%s6009_s24 + $0x838] ss:$336 sps:$4 sm:$0xff]  }
  0x32   : > { %5348 = vmatmul.mubr.msk.bf16.vlgmr.msra.gmra.mrb[4].mxu0 %vm2216_vm0, %v6032_v21  ;;  %5349 = vmatmul.mubr.msk.bf16.vlgmr.msra.gmra.mrb[4].mxu1 %vm2216_vm0, %v6032_v21 }
  0x33   : > { %2385 = vmatpush1.bf16.msra.mxu0 %v5493_v38  ;;  %2426 = vmatpush1.bf16.msra.mxu1 %v5496_v39  ;;  %v5591_v38 = vld [vmem:[%s6009_s24 + $0x64] ss:$336 sps:$4 sm:$0xff]   ;;  %v5594_v39 = vld [vmem:[%s6009_s24 + $0x6c] ss:$336 sps:$4 sm:$0xff]  }
  0x34   : > { %2386 = vmatprep.subr.bf16.mxu0 %v5501_v40  ;;  %2427 = vmatprep.subr.bf16.mxu1 %v5504_v41  ;;  %v5589_v40 = vld [vmem:[%s6009_s24 + $0x60] ss:$336 sps:$4 sm:$0xff]   ;;  %v5592_v41 = vld [vmem:[%s6009_s24 + $0x68] ss:$336 sps:$4 sm:$0xff]  }
  0x35   : > { %2416 = vmatprep.mubr.bf16.mxu0 %v5959_v0  ;;  %2457 = vmatprep.mubr.bf16.mxu1 %v5959_v0 }
  0x37   : > { %2387 = vmatpush1.bf16.msra.mxu0 %v5499_v42  ;;  %2428 = vmatpush1.bf16.msra.mxu1 %v5502_v43  ;;  %v5597_v42 = vld [vmem:[%s6009_s24 + $0x304] ss:$336 sps:$4 sm:$0xff]   ;;  %v5600_v43 = vld [vmem:[%s6009_s24 + $0x30c] ss:$336 sps:$4 sm:$0xff]  }
  0x38   : > { %2388 = vmatprep.subr.bf16.mxu0 %v5507_v44  ;;  %2429 = vmatprep.subr.bf16.mxu1 %v5510_v45  ;;  %v5595_v44 = vld [vmem:[%s6009_s24 + $0x300] ss:$336 sps:$4 sm:$0xff]   ;;  %v5598_v45 = vld [vmem:[%s6009_s24 + $0x308] ss:$336 sps:$4 sm:$0xff]  }
  0x3b   : > { %2389 = vmatpush1.bf16.msra.mxu0 %v5505_v46  ;;  %2430 = vmatpush1.bf16.msra.mxu1 %v5508_v47  ;;  %v5603_v46 = vld [vmem:[%s6009_s24 + $0x5a4] ss:$336 sps:$4 sm:$0xff]   ;;  %v5606_v47 = vld [vmem:[%s6009_s24 + $0x5ac] ss:$336 sps:$4 sm:$0xff]  }
  0x3c   : > { %2390 = vmatprep.subr.bf16.mxu0 %v5513_v48  ;;  %2431 = vmatprep.subr.bf16.mxu1 %v5516_v49  ;;  %v5601_v48 = vld [vmem:[%s6009_s24 + $0x5a0] ss:$336 sps:$4 sm:$0xff]   ;;  %v5604_v49 = vld [vmem:[%s6009_s24 + $0x5a8] ss:$336 sps:$4 sm:$0xff]  }
  0x3f   : > { %2391 = vmatpush1.bf16.msra.mxu0 %v5511_v50  ;;  %2432 = vmatpush1.bf16.msra.mxu1 %v5514_v51  ;;  %v5609_v50 = vld [vmem:[%s6009_s24 + $0x844] ss:$336 sps:$4 sm:$0xff]   ;;  %v5612_v51 = vld [vmem:[%s6009_s24 + $0x84c] ss:$336 sps:$4 sm:$0xff]  }
  0x40   : > { %2466 = vmatprep.subr.bf16.mxu0 %v5519_v52  ;;  %2507 = vmatprep.subr.bf16.mxu1 %v5522_v53  ;;  %v5607_v52 = vld [vmem:[%s6009_s24 + $0x840] ss:$336 sps:$4 sm:$0xff]   ;;  %v5610_v53 = vld [vmem:[%s6009_s24 + $0x848] ss:$336 sps:$4 sm:$0xff]  }
  0x42   : > { %5350 = vmatmul.mubr.msk.bf16.vlgmr.msra.gmra.mrb[8].mxu0 %vm2216_vm0, %v6032_v21  ;;  %5351 = vmatmul.mubr.msk.bf16.vlgmr.msra.gmra.mrb[8].mxu1 %vm2216_vm0, %v6032_v21 }
  0x43   : > { %2467 = vmatpush1.bf16.msra.mxu0 %v5517_v54  ;;  %2508 = vmatpush1.bf16.msra.mxu1 %v5520_v55  ;;  %v5615_v54 = vld [vmem:[%s6009_s24 + $0x74] ss:$336 sps:$4 sm:$0xff]   ;;  %v5618_v55 = vld [vmem:[%s6009_s24 + $0x7c] ss:$336 sps:$4 sm:$0xff]  }
  0x44   : > { %2468 = vmatprep.subr.bf16.mxu0 %v5525_v56  ;;  %2509 = vmatprep.subr.bf16.mxu1 %v5528_v57  ;;  %v5613_v56 = vld [vmem:[%s6009_s24 + $0x70] ss:$336 sps:$4 sm:$0xff]   ;;  %v5616_v57 = vld [vmem:[%s6009_s24 + $0x78] ss:$336 sps:$4 sm:$0xff]  }
  0x45   : > { %2498 = vmatprep.mubr.bf16.mxu0 %v5959_v0  ;;  %2539 = vmatprep.mubr.bf16.mxu1 %v5959_v0 }
  0x47   : > { %2469 = vmatpush1.bf16.msra.mxu0 %v5523_v58  ;;  %2510 = vmatpush1.bf16.msra.mxu1 %v5526_v59  ;;  %v5621_v58 = vld [vmem:[%s6009_s24 + $0x314] ss:$336 sps:$4 sm:$0xff]   ;;  %v5624_v59 = vld [vmem:[%s6009_s24 + $0x31c] ss:$336 sps:$4 sm:$0xff]  }
  0x48   : > { %2470 = vmatprep.subr.bf16.mxu0 %v5531_v60  ;;  %2511 = vmatprep.subr.bf16.mxu1 %v5534_v61  ;;  %v5619_v60 = vld [vmem:[%s6009_s24 + $0x310] ss:$336 sps:$4 sm:$0xff]   ;;  %v5622_v61 = vld [vmem:[%s6009_s24 + $0x318] ss:$336 sps:$4 sm:$0xff]  }
  0x4b   : > { %2471 = vmatpush1.bf16.msra.mxu0 %v5529_v62  ;;  %2512 = vmatpush1.bf16.msra.mxu1 %v5532_v63  ;;  %v5627_v62 = vld [vmem:[%s6009_s24 + $0x5b4] ss:$336 sps:$4 sm:$0xff]   ;;  %v5630_v63 = vld [vmem:[%s6009_s24 + $0x5bc] ss:$336 sps:$4 sm:$0xff]  }
  0x4c   : > { %2472 = vmatprep.subr.bf16.mxu0 %v5537_v1  ;;  %2513 = vmatprep.subr.bf16.mxu1 %v5540_v2  ;;  %v5625_v1 = vld [vmem:[%s6009_s24 + $0x5b0] ss:$336 sps:$4 sm:$0xff]   ;;  %v5628_v2 = vld [vmem:[%s6009_s24 + $0x5b8] ss:$336 sps:$4 sm:$0xff]  }
  0x4f   : > { %2473 = vmatpush1.bf16.msra.mxu0 %v5535_v3  ;;  %2514 = vmatpush1.bf16.msra.mxu1 %v5538_v4  ;;  %v5633_v3 = vld [vmem:[%s6009_s24 + $0x854] ss:$336 sps:$4 sm:$0xff]   ;;  %v5636_v4 = vld [vmem:[%s6009_s24 + $0x85c] ss:$336 sps:$4 sm:$0xff]  }
  0x50   : > { %2548 = vmatprep.subr.bf16.mxu0 %v5543_v5  ;;  %2589 = vmatprep.subr.bf16.mxu1 %v5546_v6  ;;  %v5631_v5 = vld [vmem:[%s6009_s24 + $0x850] ss:$336 sps:$4 sm:$0xff]   ;;  %v5634_v6 = vld [vmem:[%s6009_s24 + $0x858] ss:$336 sps:$4 sm:$0xff]  }
  0x52   : > { %5352 = vmatmul.mubr.msk.bf16.vlgmr.msra.gmra.mrb[12].mxu0 %vm2216_vm0, %v6032_v21  ;;  %5353 = vmatmul.mubr.msk.bf16.vlgmr.msra.gmra.mrb[12].mxu1 %vm2216_vm0, %v6032_v21 }
  0x53   : > { %2549 = vmatpush1.bf16.msra.mxu0 %v5541_v7  ;;  %2590 = vmatpush1.bf16.msra.mxu1 %v5544_v8  ;;  %v5639_v7 = vld [vmem:[%s6009_s24 + $0x84] ss:$336 sps:$4 sm:$0xff]   ;;  %v5642_v8 = vld [vmem:[%s6009_s24 + $0x8c] ss:$336 sps:$4 sm:$0xff]  }
  0x54   : > { %2550 = vmatprep.subr.bf16.mxu0 %v5549_v9  ;;  %2591 = vmatprep.subr.bf16.mxu1 %v5552_v10  ;;  %v5637_v9 = vld [vmem:[%s6009_s24 + $0x80] ss:$336 sps:$4 sm:$0xff]   ;;  %v5640_v10 = vld [vmem:[%s6009_s24 + $0x88] ss:$336 sps:$4 sm:$0xff]  }
  0x55   : > { %2580 = vmatprep.mubr.bf16.mxu0 %v5959_v0  ;;  %2621 = vmatprep.mubr.bf16.mxu1 %v5959_v0 }
  0x57   : > { %2551 = vmatpush1.bf16.msra.mxu0 %v5547_v11  ;;  %2592 = vmatpush1.bf16.msra.mxu1 %v5550_v12  ;;  %v5645_v11 = vld [vmem:[%s6009_s24 + $0x324] ss:$336 sps:$4 sm:$0xff]   ;;  %v5648_v12 = vld [vmem:[%s6009_s24 + $0x32c] ss:$336 sps:$4 sm:$0xff]  }
  0x58   : > { %2552 = vmatprep.subr.bf16.mxu0 %v5555_v13  ;;  %2593 = vmatprep.subr.bf16.mxu1 %v5558_v14  ;;  %v5643_v13 = vld [vmem:[%s6009_s24 + $0x320] ss:$336 sps:$4 sm:$0xff]   ;;  %v5646_v14 = vld [vmem:[%s6009_s24 + $0x328] ss:$336 sps:$4 sm:$0xff]  }
  0x5b   : > { %2553 = vmatpush1.bf16.msra.mxu0 %v5553_v15  ;;  %2594 = vmatpush1.bf16.msra.mxu1 %v5556_v16  ;;  %v5651_v15 = vld [vmem:[%s6009_s24 + $0x5c4] ss:$336 sps:$4 sm:$0xff]   ;;  %v5654_v16 = vld [vmem:[%s6009_s24 + $0x5cc] ss:$336 sps:$4 sm:$0xff]  }
  0x5c   : > { %2554 = vmatprep.subr.bf16.mxu0 %v5561_v17  ;;  %2595 = vmatprep.subr.bf16.mxu1 %v5564_v18  ;;  %v5649_v17 = vld [vmem:[%s6009_s24 + $0x5c0] ss:$336 sps:$4 sm:$0xff]   ;;  %v5652_v18 = vld [vmem:[%s6009_s24 + $0x5c8] ss:$336 sps:$4 sm:$0xff]  }
  0x5f   : > { %2555 = vmatpush1.bf16.msra.mxu0 %v5559_v19  ;;  %2596 = vmatpush1.bf16.msra.mxu1 %v5562_v20  ;;  %v5657_v19 = vld [vmem:[%s6009_s24 + $0x864] ss:$336 sps:$4 sm:$0xff]   ;;  %v5660_v20 = vld [vmem:[%s6009_s24 + $0x86c] ss:$336 sps:$4 sm:$0xff]  }
  0x60   : > { %2630 = vmatprep.subr.bf16.mxu0 %v5567_v22  ;;  %2671 = vmatprep.subr.bf16.mxu1 %v5570_v23  ;;  %v5655_v22 = vld [vmem:[%s6009_s24 + $0x860] ss:$336 sps:$4 sm:$0xff]   ;;  %v5658_v23 = vld [vmem:[%s6009_s24 + $0x868] ss:$336 sps:$4 sm:$0xff]  }
  0x62   : > { %5354 = vmatmul.mubr.msk.bf16.vlgmr.msra.gmra.mrb[16].mxu0 %vm2216_vm0, %v6032_v21  ;;  %5355 = vmatmul.mubr.msk.bf16.vlgmr.msra.gmra.mrb[16].mxu1 %vm2216_vm0, %v6032_v21 }
  0x63   : > { %2631 = vmatpush1.bf16.msra.mxu0 %v5565_v24  ;;  %2672 = vmatpush1.bf16.msra.mxu1 %v5568_v25  ;;  %v5663_v24 = vld [vmem:[%s6009_s24 + $0x94] ss:$336 sps:$4 sm:$0xff]   ;;  %v5666_v25 = vld [vmem:[%s6009_s24 + $0x9c] ss:$336 sps:$4 sm:$0xff]  }
  0x64   : > { %2632 = vmatprep.subr.bf16.mxu0 %v5573_v26  ;;  %2673 = vmatprep.subr.bf16.mxu1 %v5576_v27  ;;  %v5661_v26 = vld [vmem:[%s6009_s24 + $0x90] ss:$336 sps:$4 sm:$0xff]   ;;  %v5664_v27 = vld [vmem:[%s6009_s24 + $0x98] ss:$336 sps:$4 sm:$0xff]  }
  0x65   : > { %2662 = vmatprep.mubr.bf16.mxu0 %v5959_v0  ;;  %2703 = vmatprep.mubr.bf16.mxu1 %v5959_v0 }
  0x67   : > { %2633 = vmatpush1.bf16.msra.mxu0 %v5571_v28  ;;  %2674 = vmatpush1.bf16.msra.mxu1 %v5574_v29  ;;  %v5669_v28 = vld [vmem:[%s6009_s24 + $0x334] ss:$336 sps:$4 sm:$0xff]   ;;  %v5672_v29 = vld [vmem:[%s6009_s24 + $0x33c] ss:$336 sps:$4 sm:$0xff]  }
  0x68   : > { %2634 = vmatprep.subr.bf16.mxu0 %v5579_v30  ;;  %2675 = vmatprep.subr.bf16.mxu1 %v5582_v31  ;;  %v5667_v30 = vld [vmem:[%s6009_s24 + $0x330] ss:$336 sps:$4 sm:$0xff]   ;;  %v5670_v31 = vld [vmem:[%s6009_s24 + $0x338] ss:$336 sps:$4 sm:$0xff]  }
  0x6b   : > { %2635 = vmatpush1.bf16.msra.mxu0 %v5577_v32  ;;  %2676 = vmatpush1.bf16.msra.mxu1 %v5580_v33  ;;  %v5675_v32 = vld [vmem:[%s6009_s24 + $0x5d4] ss:$336 sps:$4 sm:$0xff]   ;;  %v5678_v33 = vld [vmem:[%s6009_s24 + $0x5dc] ss:$336 sps:$4 sm:$0xff]  }
  0x6c   : > { %2636 = vmatprep.subr.bf16.mxu0 %v5585_v34  ;;  %2677 = vmatprep.subr.bf16.mxu1 %v5588_v35  ;;  %v5673_v34 = vld [vmem:[%s6009_s24 + $0x5d0] ss:$336 sps:$4 sm:$0xff]   ;;  %v5681_v35 = vld [vmem:[%s6009_s24 + $0x874] ss:$336 sps:$4 sm:$0xff]  }
  0x6f   : > { %2637 = vmatpush1.bf16.msra.mxu0 %v5583_v36  ;;  %2678 = vmatpush1.bf16.msra.mxu1 %v5586_v37  ;;  %v5684_v36 = vld [vmem:[%s6009_s24 + $0x87c] ss:$336 sps:$4 sm:$0xff]   ;;  %v5679_v37 = vld [vmem:[%s6009_s24 + $0x870] ss:$336 sps:$4 sm:$0xff]  }
  0x70   : > { %2712 = vmatprep.subr.bf16.mxu0 %v5591_v38  ;;  %2753 = vmatprep.subr.bf16.mxu1 %v5594_v39  ;;  %v5682_v38 = vld [vmem:[%s6009_s24 + $0x878] ss:$336 sps:$4 sm:$0xff]   ;;  %v5687_v39 = vld [vmem:[%s6009_s24 + $0xa4] ss:$336 sps:$4 sm:$0xff]  }
  0x72   : > { %5356 = vmatmul.mubr.msk.bf16.vlgmr.msra.gmra.mrb[20].mxu0 %vm2216_vm0, %v6032_v21  ;;  %5357 = vmatmul.mubr.msk.bf16.vlgmr.msra.gmra.mrb[20].mxu1 %vm2216_vm0, %v6032_v21 }
  0x73   : > { %2713 = vmatpush1.bf16.msra.mxu0 %v5589_v40  ;;  %2754 = vmatpush1.bf16.msra.mxu1 %v5592_v41  ;;  %v5690_v40 = vld [vmem:[%s6009_s24 + $0xac] ss:$336 sps:$4 sm:$0xff]   ;;  %v5685_v41 = vld [vmem:[%s6009_s24 + $0xa0] ss:$336 sps:$4 sm:$0xff]  }
  0x74   : > { %2714 = vmatprep.subr.bf16.mxu0 %v5597_v42  ;;  %2755 = vmatprep.subr.bf16.mxu1 %v5600_v43  ;;  %v5688_v42 = vld [vmem:[%s6009_s24 + $0xa8] ss:$336 sps:$4 sm:$0xff]   ;;  %v5693_v43 = vld [vmem:[%s6009_s24 + $0x344] ss:$336 sps:$4 sm:$0xff]  }
  0x75   : > { %2744 = vmatprep.mubr.bf16.mxu0 %v5959_v0  ;;  %2785 = vmatprep.mubr.bf16.mxu1 %v5959_v0 }
  0x77   : > { %2715 = vmatpush1.bf16.msra.mxu0 %v5595_v44  ;;  %2756 = vmatpush1.bf16.msra.mxu1 %v5598_v45  ;;  %v5696_v44 = vld [vmem:[%s6009_s24 + $0x34c] ss:$336 sps:$4 sm:$0xff]   ;;  %v6239_v45 = vld [vmem:[%s6735_s1] sm:$0x3] }
  0x78   : > { %2716 = vmatprep.subr.bf16.mxu0 %v5603_v46  ;;  %2757 = vmatprep.subr.bf16.mxu1 %v5606_v47  ;;  %v5691_v46 = vld [vmem:[%s6009_s24 + $0x340] ss:$336 sps:$4 sm:$0xff]   ;;  %v5694_v47 = vld [vmem:[%s6009_s24 + $0x348] ss:$336 sps:$4 sm:$0xff]  }
  0x7b   : > { %2717 = vmatpush1.bf16.msra.mxu0 %v5601_v48  ;;  %2758 = vmatpush1.bf16.msra.mxu1 %v5604_v49  ;;  %v5699_v48 = vld [vmem:[%s6009_s24 + $0x5e4] ss:$336 sps:$4 sm:$0xff]   ;;  %v5702_v49 = vld [vmem:[%s6009_s24 + $0x5ec] ss:$336 sps:$4 sm:$0xff]  }
  0x7c   : > { %2718 = vmatprep.subr.bf16.mxu0 %v5609_v50  ;;  %2759 = vmatprep.subr.bf16.mxu1 %v5612_v51  ;;  %v5697_v50 = vld [vmem:[%s6009_s24 + $0x5e0] ss:$336 sps:$4 sm:$0xff]   ;;  %v5700_v51 = vld [vmem:[%s6009_s24 + $0x5e8] ss:$336 sps:$4 sm:$0xff]  }
  0x7f   : > { %2719 = vmatpush1.bf16.msra.mxu0 %v5607_v52  ;;  %2760 = vmatpush1.bf16.msra.mxu1 %v5610_v53  ;;  %v5705_v52 = vld [vmem:[%s6009_s24 + $0x884] ss:$336 sps:$4 sm:$0xff]   ;;  %v5708_v53 = vld [vmem:[%s6009_s24 + $0x88c] ss:$336 sps:$4 sm:$0xff]  }
  0x80   : > { %2794 = vmatprep.subr.bf16.mxu0 %v5615_v54  ;;  %2835 = vmatprep.subr.bf16.mxu1 %v5618_v55  ;;  %v5703_v54 = vld [vmem:[%s6009_s24 + $0x880] ss:$336 sps:$4 sm:$0xff]   ;;  %v5706_v55 = vld [vmem:[%s6009_s24 + $0x888] ss:$336 sps:$4 sm:$0xff]  }
  0x82   : > { %5358 = vmatmul.mubr.msk.bf16.vlgmr.msra.gmra.mrb[24].mxu0 %vm2216_vm0, %v6032_v21  ;;  %5359 = vmatmul.mubr.msk.bf16.vlgmr.msra.gmra.mrb[24].mxu1 %vm2216_vm0, %v6032_v21 }
  0x83   : > { %2795 = vmatpush1.bf16.msra.mxu0 %v5613_v56  ;;  %2836 = vmatpush1.bf16.msra.mxu1 %v5616_v57  ;;  %v5711_v56 = vld [vmem:[%s6009_s24 + $0xb4] ss:$336 sps:$4 sm:$0xff]   ;;  %v5714_v57 = vld [vmem:[%s6009_s24 + $0xbc] ss:$336 sps:$4 sm:$0xff]  }
  0x84   : > { %2796 = vmatprep.subr.bf16.mxu0 %v5621_v58  ;;  %2837 = vmatprep.subr.bf16.mxu1 %v5624_v59  ;;  %v5709_v58 = vld [vmem:[%s6009_s24 + $0xb0] ss:$336 sps:$4 sm:$0xff]   ;;  %v5712_v59 = vld [vmem:[%s6009_s24 + $0xb8] ss:$336 sps:$4 sm:$0xff]  }
  0x85   : > { %2826 = vmatprep.mubr.bf16.mxu0 %v5959_v0  ;;  %2867 = vmatprep.mubr.bf16.mxu1 %v5959_v0 }
  0x87   : > { %2797 = vmatpush1.bf16.msra.mxu0 %v5619_v60  ;;  %2838 = vmatpush1.bf16.msra.mxu1 %v5622_v61  ;;  %v5717_v60 = vld [vmem:[%s6009_s24 + $0x354] ss:$336 sps:$4 sm:$0xff]   ;;  %v5720_v61 = vld [vmem:[%s6009_s24 + $0x35c] ss:$336 sps:$4 sm:$0xff]  }
  0x88   : > { %2798 = vmatprep.subr.bf16.mxu0 %v5627_v62  ;;  %2839 = vmatprep.subr.bf16.mxu1 %v5630_v63  ;;  %v5715_v62 = vld [vmem:[%s6009_s24 + $0x350] ss:$336 sps:$4 sm:$0xff]   ;;  %v5718_v63 = vld [vmem:[%s6009_s24 + $0x358] ss:$336 sps:$4 sm:$0xff]  }
  0x8b   : > { %2799 = vmatpush1.bf16.msra.mxu0 %v5625_v1  ;;  %2840 = vmatpush1.bf16.msra.mxu1 %v5628_v2  ;;  %v5723_v1 = vld [vmem:[%s6009_s24 + $0x5f4] ss:$336 sps:$4 sm:$0xff]   ;;  %v5726_v2 = vld [vmem:[%s6009_s24 + $0x5fc] ss:$336 sps:$4 sm:$0xff]  }
  0x8c   : > { %2800 = vmatprep.subr.bf16.mxu0 %v5633_v3  ;;  %2841 = vmatprep.subr.bf16.mxu1 %v5636_v4  ;;  %v5721_v3 = vld [vmem:[%s6009_s24 + $0x5f0] ss:$336 sps:$4 sm:$0xff]   ;;  %v5724_v4 = vld [vmem:[%s6009_s24 + $0x5f8] ss:$336 sps:$4 sm:$0xff]  }
  0x8f   : > { %2801 = vmatpush1.bf16.msra.mxu0 %v5631_v5  ;;  %2842 = vmatpush1.bf16.msra.mxu1 %v5634_v6  ;;  %v5729_v5 = vld [vmem:[%s6009_s24 + $0x894] ss:$336 sps:$4 sm:$0xff]   ;;  %v5732_v6 = vld [vmem:[%s6009_s24 + $0x89c] ss:$336 sps:$4 sm:$0xff]  }
  0x90   : > { %2876 = vmatprep.subr.bf16.mxu0 %v5639_v7  ;;  %2917 = vmatprep.subr.bf16.mxu1 %v5642_v8  ;;  %v5727_v7 = vld [vmem:[%s6009_s24 + $0x890] ss:$336 sps:$4 sm:$0xff]   ;;  %v5730_v8 = vld [vmem:[%s6009_s24 + $0x898] ss:$336 sps:$4 sm:$0xff]  }
  0x92   : > { %5360 = vmatmul.mubr.msk.bf16.vlgmr.msra.gmra.mrb[28].mxu0 %vm2216_vm0, %v6032_v21  ;;  %5361 = vmatmul.mubr.msk.bf16.vlgmr.msra.gmra.mrb[28].mxu1 %vm2216_vm0, %v6032_v21 }
  0x93   : > { %2877 = vmatpush1.bf16.msra.mxu0 %v5637_v9  ;;  %2918 = vmatpush1.bf16.msra.mxu1 %v5640_v10  ;;  %v5735_v9 = vld [vmem:[%s6009_s24 + $0xc4] ss:$336 sps:$4 sm:$0xff]   ;;  %v5738_v10 = vld [vmem:[%s6009_s24 + $0xcc] ss:$336 sps:$4 sm:$0xff]  }
  0x94   : > { %2878 = vmatprep.subr.bf16.mxu0 %v5645_v11  ;;  %2919 = vmatprep.subr.bf16.mxu1 %v5648_v12  ;;  %v5733_v11 = vld [vmem:[%s6009_s24 + $0xc0] ss:$336 sps:$4 sm:$0xff]   ;;  %v5736_v12 = vld [vmem:[%s6009_s24 + $0xc8] ss:$336 sps:$4 sm:$0xff]  }
  0x95   : > { %2908 = vmatprep.mubr.bf16.mxu0 %v5959_v0  ;;  %2949 = vmatprep.mubr.bf16.mxu1 %v5959_v0 }
  0x97   : > { %2879 = vmatpush1.bf16.msra.mxu0 %v5643_v13  ;;  %2920 = vmatpush1.bf16.msra.mxu1 %v5646_v14  ;;  %v5741_v13 = vld [vmem:[%s6009_s24 + $0x364] ss:$336 sps:$4 sm:$0xff]   ;;  %v5744_v14 = vld [vmem:[%s6009_s24 + $0x36c] ss:$336 sps:$4 sm:$0xff]  }
  0x98   : > { %2880 = vmatprep.subr.bf16.mxu0 %v5651_v15  ;;  %2921 = vmatprep.subr.bf16.mxu1 %v5654_v16  ;;  %v5739_v15 = vld [vmem:[%s6009_s24 + $0x360] ss:$336 sps:$4 sm:$0xff]   ;;  %v5742_v16 = vld [vmem:[%s6009_s24 + $0x368] ss:$336 sps:$4 sm:$0xff]  }
  0x9b   : > { %2881 = vmatpush1.bf16.msra.mxu0 %v5649_v17  ;;  %2922 = vmatpush1.bf16.msra.mxu1 %v5652_v18  ;;  %v5747_v17 = vld [vmem:[%s6009_s24 + $0x604] ss:$336 sps:$4 sm:$0xff]   ;;  %v5750_v18 = vld [vmem:[%s6009_s24 + $0x60c] ss:$336 sps:$4 sm:$0xff]  }
  0x9c   : > { %2882 = vmatprep.subr.bf16.mxu0 %v5657_v19  ;;  %2923 = vmatprep.subr.bf16.mxu1 %v5660_v20  ;;  %v5745_v19 = vld [vmem:[%s6009_s24 + $0x600] ss:$336 sps:$4 sm:$0xff]   ;;  %v5748_v20 = vld [vmem:[%s6009_s24 + $0x608] ss:$336 sps:$4 sm:$0xff]  }
  0x9f   : > { %2883 = vmatpush1.bf16.msra.mxu0 %v5655_v22  ;;  %2924 = vmatpush1.bf16.msra.mxu1 %v5658_v23  ;;  %v5753_v22 = vld [vmem:[%s6009_s24 + $0x8a4] ss:$336 sps:$4 sm:$0xff]   ;;  %v5756_v23 = vld [vmem:[%s6009_s24 + $0x8ac] ss:$336 sps:$4 sm:$0xff]  }
  0xa0   : > { %2958 = vmatprep.subr.bf16.mxu0 %v5663_v24  ;;  %2999 = vmatprep.subr.bf16.mxu1 %v5666_v25  ;;  %v5751_v24 = vld [vmem:[%s6009_s24 + $0x8a0] ss:$336 sps:$4 sm:$0xff]   ;;  %v5754_v25 = vld [vmem:[%s6009_s24 + $0x8a8] ss:$336 sps:$4 sm:$0xff]  }
  0xa2   : > { %5362 = vmatmul.mubr.msk.bf16.vlgmr.msra.gmra.mrb[32].mxu0 %vm2216_vm0, %v6032_v21  ;;  %5363 = vmatmul.mubr.msk.bf16.vlgmr.msra.gmra.mrb[32].mxu1 %vm2216_vm0, %v6032_v21  ;;  %v5676_v21 = vld [vmem:[%s6009_s24 + $0x5d8] ss:$336 sps:$4 sm:$0xff]  }
  0xa3   : > { %2959 = vmatpush1.bf16.msra.mxu0 %v5661_v26  ;;  %3000 = vmatpush1.bf16.msra.mxu1 %v5664_v27  ;;  %v5759_v26 = vld [vmem:[%s6009_s24 + $0xd4] ss:$336 sps:$4 sm:$0xff]   ;;  %v5762_v27 = vld [vmem:[%s6009_s24 + $0xdc] ss:$336 sps:$4 sm:$0xff]  }
  0xa4   : > { %2960 = vmatprep.subr.bf16.mxu0 %v5669_v28  ;;  %3001 = vmatprep.subr.bf16.mxu1 %v5672_v29  ;;  %v5757_v28 = vld [vmem:[%s6009_s24 + $0xd0] ss:$336 sps:$4 sm:$0xff]   ;;  %v5760_v29 = vld [vmem:[%s6009_s24 + $0xd8] ss:$336 sps:$4 sm:$0xff]  }
  0xa5   : > { %2990 = vmatprep.mubr.bf16.mxu0 %v5959_v0  ;;  %3031 = vmatprep.mubr.bf16.mxu1 %v5959_v0 }
  0xa7   : > { %2961 = vmatpush1.bf16.msra.mxu0 %v5667_v30  ;;  %3002 = vmatpush1.bf16.msra.mxu1 %v5670_v31  ;;  %v5765_v30 = vld [vmem:[%s6009_s24 + $0x374] ss:$336 sps:$4 sm:$0xff]   ;;  %v5768_v31 = vld [vmem:[%s6009_s24 + $0x37c] ss:$336 sps:$4 sm:$0xff]  }
  0xa8   : > { %2962 = vmatprep.subr.bf16.mxu0 %v5675_v32  ;;  %3003 = vmatprep.subr.bf16.mxu1 %v5678_v33  ;;  %v5763_v32 = vld [vmem:[%s6009_s24 + $0x370] ss:$336 sps:$4 sm:$0xff]   ;;  %v5766_v33 = vld [vmem:[%s6009_s24 + $0x378] ss:$336 sps:$4 sm:$0xff]  }
  0xab   : > { %2963 = vmatpush1.bf16.msra.mxu0 %v5673_v34  ;;  %3004 = vmatpush1.bf16.msra.mxu1 %v5676_v21  ;;  %v5771_v34 = vld [vmem:[%s6009_s24 + $0x614] ss:$336 sps:$4 sm:$0xff]   ;;  %v5774_v21 = vld [vmem:[%s6009_s24 + $0x61c] ss:$336 sps:$4 sm:$0xff]  }
  0xac   : > { %2964 = vmatprep.subr.bf16.mxu0 %v5681_v35  ;;  %3005 = vmatprep.subr.bf16.mxu1 %v5684_v36  ;;  %v5769_v35 = vld [vmem:[%s6009_s24 + $0x610] ss:$336 sps:$4 sm:$0xff]   ;;  %v5772_v36 = vld [vmem:[%s6009_s24 + $0x618] ss:$336 sps:$4 sm:$0xff]  }
  0xaf   : > { %2965 = vmatpush1.bf16.msra.mxu0 %v5679_v37  ;;  %3006 = vmatpush1.bf16.msra.mxu1 %v5682_v38  ;;  %v5777_v37 = vld [vmem:[%s6009_s24 + $0x8b4] ss:$336 sps:$4 sm:$0xff]   ;;  %v5780_v38 = vld [vmem:[%s6009_s24 + $0x8bc] ss:$336 sps:$4 sm:$0xff]  }
  0xb0   : > { %3040 = vmatprep.subr.bf16.mxu0 %v5687_v39  ;;  %3081 = vmatprep.subr.bf16.mxu1 %v5690_v40  ;;  %v5775_v39 = vld [vmem:[%s6009_s24 + $0x8b0] ss:$336 sps:$4 sm:$0xff]   ;;  %v5778_v40 = vld [vmem:[%s6009_s24 + $0x8b8] ss:$336 sps:$4 sm:$0xff]  }
  0xb2   : > { %5364 = vmatmul.mubr.msk.bf16.vlgmr.msra.gmra.mrb[36].mxu0 %vm2216_vm0, %v6239_v45  ;;  %5365 = vmatmul.mubr.msk.bf16.vlgmr.msra.gmra.mrb[36].mxu1 %vm2216_vm0, %v6239_v45 }
  0xb3   : > { %3041 = vmatpush1.bf16.msra.mxu0 %v5685_v41  ;;  %3082 = vmatpush1.bf16.msra.mxu1 %v5688_v42  ;;  %v5783_v41 = vld [vmem:[%s6009_s24 + $0xe4] ss:$336 sps:$4 sm:$0xff]   ;;  %v5786_v42 = vld [vmem:[%s6009_s24 + $0xec] ss:$336 sps:$4 sm:$0xff]  }
  0xb4   : > { %3042 = vmatprep.subr.bf16.mxu0 %v5693_v43  ;;  %3083 = vmatprep.subr.bf16.mxu1 %v5696_v44  ;;  %v6325_v43 = vpop.permute.xlu0 %3945  ;;  %v5781_v44 = vld [vmem:[%s6009_s24 + $0xe0] ss:$336 sps:$4 sm:$0xff]  }
  0xb5   : > { %3072 = vmatprep.mubr.bf16.mxu0 %v5959_v0  ;;  %3113 = vmatprep.mubr.bf16.mxu1 %v5959_v0 }
  0xb7   : > { %3043 = vmatpush1.bf16.msra.mxu0 %v5691_v46  ;;  %3084 = vmatpush1.bf16.msra.mxu1 %v5694_v47  ;;  %v5784_v46 = vld [vmem:[%s6009_s24 + $0xe8] ss:$336 sps:$4 sm:$0xff]   ;;  %v5789_v47 = vld [vmem:[%s6009_s24 + $0x384] ss:$336 sps:$4 sm:$0xff]  }
  0xb8   : > { %3044 = vmatprep.subr.bf16.mxu0 %v5699_v48  ;;  %3085 = vmatprep.subr.bf16.mxu1 %v5702_v49  ;;  %v5792_v48 = vld [vmem:[%s6009_s24 + $0x38c] ss:$336 sps:$4 sm:$0xff]   ;;  %v4547_v49 = vlaneseq }
  0xbb   : > { %3045 = vmatpush1.bf16.msra.mxu0 %v5697_v50  ;;  %3086 = vmatpush1.bf16.msra.mxu1 %v5700_v51  ;;  %v5787_v50 = vld [vmem:[%s6009_s24 + $0x380] ss:$336 sps:$4 sm:$0xff]   ;;  %v5790_v51 = vld [vmem:[%s6009_s24 + $0x388] ss:$336 sps:$4 sm:$0xff]  }
  0xbc   : > { %3046 = vmatprep.subr.bf16.mxu0 %v5705_v52  ;;  %3087 = vmatprep.subr.bf16.mxu1 %v5708_v53  ;;  %v6337_v52 = vpop.permute.xlu0 %4035  ;;  %v5795_v53 = vld [vmem:[%s6009_s24 + $0x624] ss:$336 sps:$4 sm:$0xff]  }
  0xbf   : > { %3047 = vmatpush1.bf16.msra.mxu0 %v5703_v54  ;;  %3088 = vmatpush1.bf16.msra.mxu1 %v5706_v55  ;;  %v5798_v54 = vld [vmem:[%s6009_s24 + $0x62c] ss:$336 sps:$4 sm:$0xff]   ;;  %v5960_v55 = vmov 1983009808  }
  0xc0   : > { %3122 = vmatprep.subr.bf16.mxu0 %v5711_v56  ;;  %3163 = vmatprep.subr.bf16.mxu1 %v5714_v57  ;;  %v4545_v56 = vunpack.c.l.s4 %v5960_v55  ;;  %v5817_v55 = vld [vmem:[%s6009_s24 + $0x630] ss:$336 sps:$4 sm:$0xff]  }
  0xc2   : > { %5366 = vmatmul.mubr.msk.bf16.vlgmr.msra.gmra.mrb[40].mxu0 %vm2216_vm0, %v6239_v45  ;;  %5367 = vmatmul.mubr.msk.bf16.vlgmr.msra.gmra.mrb[40].mxu1 %vm2216_vm0, %v6239_v45 }
  0xc3   : > { %3123 = vmatpush1.bf16.msra.mxu0 %v5709_v58  ;;  %3164 = vmatpush1.bf16.msra.mxu1 %v5712_v59 }
  0xc4   : > { %3124 = vmatprep.subr.bf16.mxu0 %v5717_v60  ;;  %3165 = vmatprep.subr.bf16.mxu1 %v5720_v61 }
  0xc5   : > { %3154 = vmatprep.mubr.bf16.mxu0 %v5959_v0  ;;  %3195 = vmatprep.mubr.bf16.mxu1 %v5959_v0 }
  0xc7   : > { %3125 = vmatpush1.bf16.msra.mxu0 %v5715_v62  ;;  %3166 = vmatpush1.bf16.msra.mxu1 %v5718_v63  ;;  %v4548_v63 = vshrl.u32 %v4547_v49, 7 }
  0xc8   : > { %3126 = vmatprep.subr.bf16.mxu0 %v5723_v1  ;;  %3167 = vmatprep.subr.bf16.mxu1 %v5726_v2 }
  0xcb   : > { %3127 = vmatpush1.bf16.msra.mxu0 %v5721_v3  ;;  %3168 = vmatpush1.bf16.msra.mxu1 %v5724_v4 }
  0xcc   : > { %3128 = vmatprep.subr.bf16.mxu0 %v5729_v5  ;;  %3169 = vmatprep.subr.bf16.mxu1 %v5732_v6  ;;  %v5793_v5 = vld [vmem:[%s6009_s24 + $0x620] ss:$336 sps:$4 sm:$0xff]   ;;  %v5796_v6 = vld [vmem:[%s6009_s24 + $0x628] ss:$336 sps:$4 sm:$0xff]  }
  0xcf   : > { %3129 = vmatpush1.bf16.msra.mxu0 %v5727_v7  ;;  %3170 = vmatpush1.bf16.msra.mxu1 %v5730_v8 }
  0xd0   : > { %3204 = vmatprep.subr.bf16.mxu0 %v5735_v9  ;;  %3245 = vmatprep.subr.bf16.mxu1 %v5738_v10  ;;  %v5801_v9 = vld [vmem:[%s6009_s24 + $0x8c4] ss:$336 sps:$4 sm:$0xff]   ;;  %v5804_v10 = vld [vmem:[%s6009_s24 + $0x8cc] ss:$336 sps:$4 sm:$0xff]  }
  0xd2   : > { %5368 = vmatmul.mubr.msk.bf16.vlgmr.msra.gmra.mrb[44].mxu0 %vm2216_vm0, %v6239_v45  ;;  %5369 = vmatmul.mubr.msk.bf16.vlgmr.msra.gmra.mrb[44].mxu1 %vm2216_vm0, %v6239_v45 }
  0xd3   : > { %3205 = vmatpush1.bf16.msra.mxu0 %v5733_v11  ;;  %3246 = vmatpush1.bf16.msra.mxu1 %v5736_v12  ;;  %v4546_v11 = vunpack.c.0.s8 %v4545_v56  ;;  %v5820_v56 = vld [vmem:[%s6009_s24 + $0x638] ss:$336 sps:$4 sm:$0xff]  }
  0xd4   : > { %3206 = vmatprep.subr.bf16.mxu0 %v5741_v13  ;;  %3247 = vmatprep.subr.bf16.mxu1 %v5744_v14  ;;  %v5799_v14 = vld [vmem:[%s6009_s24 + $0x8c0] ss:$336 sps:$4 sm:$0xff]  }
  0xd5   : > { %3236 = vmatprep.mubr.bf16.mxu0 %v5959_v0  ;;  %3277 = vmatprep.mubr.bf16.mxu1 %v5959_v0 }
  0xd7   : > { %3207 = vmatpush1.bf16.msra.mxu0 %v5739_v15  ;;  %3248 = vmatpush1.bf16.msra.mxu1 %v5742_v16  ;;  %v5802_v15 = vld [vmem:[%s6009_s24 + $0x8c8] ss:$336 sps:$4 sm:$0xff]  }
  0xd8   : > { %3208 = vmatprep.subr.bf16.mxu0 %v5747_v17  ;;  %3249 = vmatprep.subr.bf16.mxu1 %v5750_v18 }
  0xdb   : > { %3209 = vmatpush1.bf16.msra.mxu0 %v5745_v19  ;;  %3250 = vmatpush1.bf16.msra.mxu1 %v5748_v20 }
  0xdc   : > { %3210 = vmatprep.subr.bf16.mxu0 %v5753_v22  ;;  %3251 = vmatprep.subr.bf16.mxu1 %v5756_v23  ;;  %v5807_v23 = vld [vmem:[%s6009_s24 + $0xf4] ss:$336 sps:$4 sm:$0xff]  }
  0xdf   : > { %3211 = vmatpush1.bf16.msra.mxu0 %v5751_v24  ;;  %3252 = vmatpush1.bf16.msra.mxu1 %v5754_v25  ;;  %v5810_v24 = vld [vmem:[%s6009_s24 + $0xfc] ss:$336 sps:$4 sm:$0xff]   ;;  %v6359_v25 = vsub.s32 %v4546_v11, %v4548_v63 }
  0xe0   : > { %3286 = vmatprep.subr.bf16.mxu0 %v5759_v26  ;;  %3327 = vmatprep.subr.bf16.mxu1 %v5762_v27  ;;  %v5834_v11 = vld [vmem:[%s6009_s24 + $0x10c] ss:$336 sps:$4 sm:$0xff]  }
  0xe2   : > { %5370 = vmatmul.mubr.msk.bf16.vlgmr.msra.gmra.mrb[48].mxu0 %vm2216_vm0, %v6239_v45  ;;  %5371 = vmatmul.mubr.msk.bf16.vlgmr.msra.gmra.mrb[48].mxu1 %vm2216_vm0, %v6239_v45 }
  0xe3   : > { %3287 = vmatpush1.bf16.msra.mxu0 %v5757_v28  ;;  %3328 = vmatpush1.bf16.msra.mxu1 %v5760_v29 }
  0xe4   : > { %3288 = vmatprep.subr.bf16.mxu0 %v5765_v30  ;;  %3329 = vmatprep.subr.bf16.mxu1 %v5768_v31 }
  0xe5   : > { %3318 = vmatprep.mubr.bf16.mxu0 %v5959_v0  ;;  %3359 = vmatprep.mubr.bf16.mxu1 %v5959_v0 }
  0xe7   : > { %3289 = vmatpush1.bf16.msra.mxu0 %v5763_v32  ;;  %3330 = vmatpush1.bf16.msra.mxu1 %v5766_v33  ;;  %v5805_v32 = vld [vmem:[%s6009_s24 + $0xf0] ss:$336 sps:$4 sm:$0xff]   ;;  %v5808_v33 = vld [vmem:[%s6009_s24 + $0xf8] ss:$336 sps:$4 sm:$0xff]  }
  0xe8   : > { %3290 = vmatprep.subr.bf16.mxu0 %v5771_v34  ;;  %3331 = vmatprep.subr.bf16.mxu1 %v5774_v21 }
  0xeb   : > { %3291 = vmatpush1.bf16.msra.mxu0 %v5769_v35  ;;  %3332 = vmatpush1.bf16.msra.mxu1 %v5772_v36  ;;  %v5813_v35 = vld [vmem:[%s6009_s24 + $0x394] ss:$336 sps:$4 sm:$0xff]   ;;  %v5816_v36 = vld [vmem:[%s6009_s24 + $0x39c] ss:$336 sps:$4 sm:$0xff]  }
  0xec   : > { %3292 = vmatprep.subr.bf16.mxu0 %v5777_v37  ;;  %3333 = vmatprep.subr.bf16.mxu1 %v5780_v38  ;;  %v5811_v38 = vld [vmem:[%s6009_s24 + $0x390] ss:$336 sps:$4 sm:$0xff]  }
  0xef   : > { %3293 = vmatpush1.bf16.msra.mxu0 %v5775_v39  ;;  %3334 = vmatpush1.bf16.msra.mxu1 %v5778_v40  ;;  %v5814_v39 = vld [vmem:[%s6009_s24 + $0x398] ss:$336 sps:$4 sm:$0xff]   ;;  %v5819_v40 = vld [vmem:[%s6009_s24 + $0x634] ss:$336 sps:$4 sm:$0xff]  }
  0xf0   : > { %3368 = vmatprep.subr.bf16.mxu0 %v5783_v41  ;;  %3409 = vmatprep.subr.bf16.mxu1 %v5786_v42  ;;  %v5822_v41 = vld [vmem:[%s6009_s24 + $0x63c] ss:$336 sps:$4 sm:$0xff]  }
  0xf2   : > { %5372 = vmatmul.mubr.msk.bf16.vlgmr.msra.gmra.mrb[52].mxu0 %vm2216_vm0, %v6239_v45  ;;  %5373 = vmatmul.mubr.msk.bf16.vlgmr.msra.gmra.mrb[52].mxu1 %vm2216_vm0, %v6239_v45 }
  0xf3   : > { %3369 = vmatpush1.bf16.msra.mxu0 %v5781_v44  ;;  %3410 = vmatpush1.bf16.msra.mxu1 %v5784_v46 }
  0xf4   : > { %3370 = vmatprep.subr.bf16.mxu0 %v5789_v47  ;;  %3411 = vmatprep.subr.bf16.mxu1 %v5792_v48 }
  0xf5   : > { %v2254_v57 = vpop.f32.mrb[0].mxu0  ;;  %v2295_v58 = vpop.f32.mrb[0].mxu1  ;;  %3400 = vmatprep.mubr.bf16.mxu0 %v5959_v0  ;;  %3441 = vmatprep.mubr.bf16.mxu1 %v5959_v0 }
  0xf6   : > { %v3948_v59 = vmul.f32 %v6325_v43, %v2254_v57  ;;  %v3950_v60 = vmul.f32 %v6325_v43, %v2295_v58  ;;  %v2256_v61 = vpop.f32.mrb[1].mxu0  ;;  %v2297_v62 = vpop.f32.mrb[1].mxu1 }
  0xf7   : > { %v3949_v1 = vmul.f32 %v6325_v43, %v2256_v61  ;;  %v3951_v2 = vmul.f32 %v6325_v43, %v2297_v62  ;;  %v2258_v3 = vpop.f32.mrb[2].mxu0  ;;  %v2299_v4 = vpop.f32.mrb[2].mxu1  ;;  %3371 = vmatpush1.bf16.msra.mxu0 %v5787_v50  ;;  %3412 = vmatpush1.bf16.msra.mxu1 %v5790_v51  ;;  %v5825_v61 = vld [vmem:[%s6009_s24 + $0x8d4] ss:$336 sps:$4 sm:$0xff]   ;;  %v5828_v62 = vld [vmem:[%s6009_s24 + $0x8dc] ss:$336 sps:$4 sm:$0xff]  }
  0xf8   : > { %v2259_v7 = vpop.f32.mrb[3].mxu0  ;;  %v2300_v8 = vpop.f32.mrb[3].mxu1  ;;  %3372 = vmatprep.subr.bf16.mxu0 %v5795_v53  ;;  %3413 = vmatprep.subr.bf16.mxu1 %v5798_v54  ;;  %v4038_v12 = vadd.f32 %v6337_v52, %v3948_v59  ;;  %v4040_v13 = vadd.f32 %v6337_v52, %v3950_v60  ;;  %v5826_v3 = vld [vmem:[%s6009_s24 + $0x8d8] ss:$336 sps:$4 sm:$0xff]  }
  0xf9   : > { %v4039_v16 = vadd.f32 %v6337_v52, %v3949_v1  ;;  %v4041_v17 = vadd.f32 %v6337_v52, %v3951_v2  ;;  %v5823_v2 = vld [vmem:[%s6009_s24 + $0x8d0] ss:$336 sps:$4 sm:$0xff]  }
  0xfa   : > { %vm4122_vm1 = vcmp.ge.f32.partialorder %v4038_v12, 0.0  ;;  %vm4124_vm2 = vcmp.ge.f32.partialorder %v4040_v13, 0.0  ;;  %v4206_v18 = vmul.f32 0.01, %v4038_v12  ;;  %v4208_v19 = vmul.f32 0.01, %v4040_v13 }
  0xfb   : > { %3373 = vmatpush1.bf16.msra.mxu0 %v5793_v5  ;;  %3414 = vmatpush1.bf16.msra.mxu1 %v5796_v6  ;;  %vm4123_vm3 = vcmp.ge.f32.partialorder %v4039_v16, 0.0  ;;  %vm4125_vm4 = vcmp.ge.f32.partialorder %v4041_v17, 0.0  ;;  %v4207_v20 = vmul.f32 0.01, %v4039_v16  ;;  %v4209_v22 = vmul.f32 0.01, %v4041_v17 }
  0xfc   : > { %3374 = vmatprep.subr.bf16.mxu0 %v5801_v9  ;;  %3415 = vmatprep.subr.bf16.mxu1 %v5804_v10  ;;  %v4290_v26 = vsel %vm4122_vm1, %v4038_v12, %v4206_v18  ;;  %v4292_v27 = vsel %vm4124_vm2, %v4040_v13, %v4208_v19  ;;  %v5831_v10 = vld [vmem:[%s6009_s24 + $0x104] ss:$336 sps:$4 sm:$0xff]  }
  0xfd   : > { %v4291_v28 = vsel %vm4123_vm3, %v4039_v16, %v4207_v20  ;;  %v4293_v29 = vsel %vm4125_vm4, %v4041_v17, %v4209_v22  ;;  %v5829_v16 = vld [vmem:[%s6009_s24 + $0x100] ss:$336 sps:$4 sm:$0xff]   ;;  %v5832_v17 = vld [vmem:[%s6009_s24 + $0x108] ss:$336 sps:$4 sm:$0xff]   ;;  %v5837_v20 = vld [vmem:[%s6009_s24 + $0x3a4] ss:$336 sps:$4 sm:$0xff]  }
  0xfe   : > { %v5388_v30 = vpack.c.bf16 %v4291_v28, %v4290_v26  ;;  %v5389_v31 = vpack.c.bf16 %v4293_v29, %v4292_v27  ;;  %v5840_v22 = vld [vmem:[%s6009_s24 + $0x3ac] ss:$336 sps:$4 sm:$0xff]   ;;  %v5838_v26 = vld [vmem:[%s6009_s24 + $0x3a8] ss:$336 sps:$4 sm:$0xff]   ;;  %v5843_v27 = vld [vmem:[%s6009_s24 + $0x644] ss:$336 sps:$4 sm:$0xff]  }
  0xff   : > { %3375 = vmatpush1.bf16.msra.mxu0 %v5799_v14  ;;  %3416 = vmatpush1.bf16.msra.mxu1 %v5802_v15  ;;  %v5846_v28 = vld [vmem:[%s6009_s24 + $0x64c] ss:$336 sps:$4 sm:$0xff]  }
 0x100   : > { %3450 = vmatprep.subr.bf16.mxu0 %v5807_v23  ;;  %3491 = vmatprep.subr.bf16.mxu1 %v5810_v24  ;;  %v4550_v34 = vrot.slane %v5388_v30, %v6359_v25  ;;  %v4557_v21 = vrot.slane %v5389_v31, %v6359_v25  ;;  %v5835_v24 = vld [vmem:[%s6009_s24 + $0x3a0] ss:$336 sps:$4 sm:$0xff]  }
 0x102   : > { %5374 = vmatmul.mubr.msk.bf16.vlgmr.msra.gmra.mrb[56].mxu0 %vm2216_vm0, %v6239_v45  ;;  %5375 = vmatmul.mubr.msk.bf16.vlgmr.msra.gmra.mrb[56].mxu1 %vm2216_vm0, %v6239_v45  ;;  %v4558_v37 = vcombine.low %v4550_v34, %v4557_v21 }
 0x103   : > { %3451 = vmatpush1.bf16.msra.mxu0 %v5805_v32  ;;  %3492 = vmatpush1.bf16.msra.mxu1 %v5808_v33 }
 0x104   : > { %4920 = vst [vmem:[%s6371_s6] sm:$0xff] %v4558_v37  ;;  %3452 = vmatprep.subr.bf16.mxu0 %v5813_v35  ;;  %3493 = vmatprep.subr.bf16.mxu1 %v5816_v36 }
 0x105   : > { %v2336_v42 = vpop.f32.mrb[4].mxu0  ;;  %v2377_v44 = vpop.f32.mrb[4].mxu1  ;;  %3482 = vmatprep.mubr.bf16.mxu0 %v5959_v0  ;;  %3523 = vmatprep.mubr.bf16.mxu1 %v5959_v0 }
 0x106   : > { %v3952_v46 = vmul.f32 %v6325_v43, %v2336_v42  ;;  %v3954_v47 = vmul.f32 %v6325_v43, %v2377_v44  ;;  %v2338_v48 = vpop.f32.mrb[5].mxu0  ;;  %v2379_v49 = vpop.f32.mrb[5].mxu1 }
 0x107   : > { %v3953_v50 = vmul.f32 %v6325_v43, %v2338_v48  ;;  %v3955_v51 = vmul.f32 %v6325_v43, %v2379_v49  ;;  %v2340_v53 = vpop.f32.mrb[6].mxu0  ;;  %v2381_v54 = vpop.f32.mrb[6].mxu1  ;;  %3453 = vmatpush1.bf16.msra.mxu0 %v5811_v38  ;;  %3494 = vmatpush1.bf16.msra.mxu1 %v5814_v39  ;;  %v5841_v38 = vld [vmem:[%s6009_s24 + $0x640] ss:$336 sps:$4 sm:$0xff]   ;;  %v5844_v39 = vld [vmem:[%s6009_s24 + $0x648] ss:$336 sps:$4 sm:$0xff]  }
 0x108   : > { %v4042_v57 = vadd.f32 %v6337_v52, %v3952_v46  ;;  %v4044_v58 = vadd.f32 %v6337_v52, %v3954_v47  ;;  %v2341_v59 = vpop.f32.mrb[7].mxu0  ;;  %v2382_v60 = vpop.f32.mrb[7].mxu1  ;;  %3454 = vmatprep.subr.bf16.mxu0 %v5819_v40  ;;  %3495 = vmatprep.subr.bf16.mxu1 %v5822_v41  ;;  %v5849_v46 = vld [vmem:[%s6009_s24 + $0x8e4] ss:$336 sps:$4 sm:$0xff]   ;;  %v5852_v47 = vld [vmem:[%s6009_s24 + $0x8ec] ss:$336 sps:$4 sm:$0xff]  }
 0x109   : > { %v4043_v63 = vadd.f32 %v6337_v52, %v3953_v50  ;;  %v4045_v1 = vadd.f32 %v6337_v52, %v3955_v51  ;;  %v5847_v50 = vld [vmem:[%s6009_s24 + $0x8e0] ss:$336 sps:$4 sm:$0xff]   ;;  %v5850_v51 = vld [vmem:[%s6009_s24 + $0x8e8] ss:$336 sps:$4 sm:$0xff]   ;;  %v5855_v59 = vld [vmem:[%s6009_s24 + $0x114] ss:$336 sps:$4 sm:$0xff]  }
 0x10a   : > { %vm4126_vm5 = vcmp.ge.f32.partialorder %v4042_v57, 0.0  ;;  %v4210_v4 = vmul.f32 0.01, %v4042_v57  ;;  %vm4128_vm6 = vcmp.ge.f32.partialorder %v4044_v58, 0.0  ;;  %v4212_v5 = vmul.f32 0.01, %v4044_v58 }
 0x10b   : > { %vm4127_vm7 = vcmp.ge.f32.partialorder %v4043_v63, 0.0  ;;  %v4211_v6 = vmul.f32 0.01, %v4043_v63  ;;  %vm4129_vm8 = vcmp.ge.f32.partialorder %v4045_v1, 0.0  ;;  %v4213_v7 = vmul.f32 0.01, %v4045_v1  ;;  %3455 = vmatpush1.bf16.msra.mxu0 %v5817_v55  ;;  %3496 = vmatpush1.bf16.msra.mxu1 %v5820_v56 }
 0x10c   : > { %v4294_v8 = vsel %vm4126_vm5, %v4042_v57, %v4210_v4  ;;  %v4296_v9 = vsel %vm4128_vm6, %v4044_v58, %v4212_v5  ;;  %3456 = vmatprep.subr.bf16.mxu0 %v5825_v61  ;;  %3497 = vmatprep.subr.bf16.mxu1 %v5828_v62  ;;  %v5858_v60 = vld [vmem:[%s6009_s24 + $0x11c] ss:$336 sps:$4 sm:$0xff]  }
 0x10d   : > { %v4295_v12 = vsel %vm4127_vm7, %v4043_v63, %v4211_v6  ;;  %v4297_v13 = vsel %vm4129_vm8, %v4045_v1, %v4213_v7  ;;  %v5861_v6 = vld [vmem:[%s6009_s24 + $0x3b4] ss:$336 sps:$4 sm:$0xff]   ;;  %v5864_v7 = vld [vmem:[%s6009_s24 + $0x3bc] ss:$336 sps:$4 sm:$0xff]  }
 0x10e   : > { %v5390_v14 = vpack.c.bf16 %v4295_v12, %v4294_v8  ;;  %v5391_v15 = vpack.c.bf16 %v4297_v13, %v4296_v9  ;;  %v5859_v9 = vld [vmem:[%s6009_s24 + $0x3b0] ss:$336 sps:$4 sm:$0xff]   ;;  %v5870_v12 = vld [vmem:[%s6009_s24 + $0x65c] ss:$336 sps:$4 sm:$0xff]  }
 0x10f   : > { %3457 = vmatpush1.bf16.msra.mxu0 %v5823_v2  ;;  %3498 = vmatpush1.bf16.msra.mxu1 %v5826_v3  ;;  %v5853_v2 = vld [vmem:[%s6009_s24 + $0x110] ss:$336 sps:$4 sm:$0xff]   ;;  %v5856_v3 = vld [vmem:[%s6009_s24 + $0x118] ss:$336 sps:$4 sm:$0xff]  }
 0x110   : > { %v4567_v18 = vrot.slane %v5390_v14, %v6359_v25  ;;  %v4574_v19 = vrot.slane %v5391_v15, %v6359_v25  ;;  %3532 = vmatprep.subr.bf16.mxu0 %v5831_v10  ;;  %3573 = vmatprep.subr.bf16.mxu1 %v5834_v11  ;;  %v5862_v10 = vld [vmem:[%s6009_s24 + $0x3b8] ss:$336 sps:$4 sm:$0xff]   ;;  %v5867_v11 = vld [vmem:[%s6009_s24 + $0x654] ss:$336 sps:$4 sm:$0xff]  }
 0x112   : > { %v4575_v23 = vcombine.low %v4567_v18, %v4574_v19  ;;  %5376 = vmatmul.mubr.msk.bf16.vlgmr.msra.gmra.mrb[60].mxu0 %vm2216_vm0, %v6239_v45  ;;  %5377 = vmatmul.mubr.msk.bf16.vlgmr.msra.gmra.mrb[60].mxu1 %vm2216_vm0, %v6239_v45 }
 0x113   : > { %3533 = vmatpush1.bf16.msra.mxu0 %v5829_v16  ;;  %3574 = vmatpush1.bf16.msra.mxu1 %v5832_v17 }
 0x114   : > { %4921 = vst [vmem:[%s6371_s6 + $0x8] sm:$0xff] %v4575_v23  ;;  %3534 = vmatprep.subr.bf16.mxu0 %v5837_v20  ;;  %3575 = vmatprep.subr.bf16.mxu1 %v5840_v22  ;;  %v5865_v23 = vld [vmem:[%s6009_s24 + $0x650] ss:$336 sps:$4 sm:$0xff]  }
 0x115   : > { %v2418_v29 = vpop.f32.mrb[8].mxu0  ;;  %v2459_v30 = vpop.f32.mrb[8].mxu1  ;;  %3564 = vmatprep.mubr.bf16.mxu0 %v5959_v0  ;;  %3605 = vmatprep.mubr.bf16.mxu1 %v5959_v0 }
 0x116   : > { %v3956_v31 = vmul.f32 %v6325_v43, %v2418_v29  ;;  %v3958_v32 = vmul.f32 %v6325_v43, %v2459_v30  ;;  %v2420_v33 = vpop.f32.mrb[9].mxu0  ;;  %v2461_v34 = vpop.f32.mrb[9].mxu1  ;;  %v5873_v30 = vld [vmem:[%s6009_s24 + $0x8f4] ss:$336 sps:$4 sm:$0xff]  }
 0x117   : > { %v3957_v21 = vmul.f32 %v6325_v43, %v2420_v33  ;;  %v3959_v35 = vmul.f32 %v6325_v43, %v2461_v34  ;;  %v2422_v36 = vpop.f32.mrb[10].mxu0  ;;  %v2463_v37 = vpop.f32.mrb[10].mxu1  ;;  %3535 = vmatpush1.bf16.msra.mxu0 %v5835_v24  ;;  %3576 = vmatpush1.bf16.msra.mxu1 %v5838_v26  ;;  %v5868_v24 = vld [vmem:[%s6009_s24 + $0x658] ss:$336 sps:$4 sm:$0xff]   ;;  %v5871_v34 = vld [vmem:[%s6009_s24 + $0x8f0] ss:$336 sps:$4 sm:$0xff]  }
 0x118   : > { %v4046_v40 = vadd.f32 %v6337_v52, %v3956_v31  ;;  %v4048_v41 = vadd.f32 %v6337_v52, %v3958_v32  ;;  %v2423_v42 = vpop.f32.mrb[11].mxu0  ;;  %v2464_v44 = vpop.f32.mrb[11].mxu1  ;;  %3536 = vmatprep.subr.bf16.mxu0 %v5843_v27  ;;  %3577 = vmatprep.subr.bf16.mxu1 %v5846_v28  ;;  %v5876_v31 = vld [vmem:[%s6009_s24 + $0x8fc] ss:$336 sps:$4 sm:$0xff]  }
 0x119   : > { %v4047_v48 = vadd.f32 %v6337_v52, %v3957_v21  ;;  %v4049_v49 = vadd.f32 %v6337_v52, %v3959_v35  ;;  %v5874_v21 = vld [vmem:[%s6009_s24 + $0x8f8] ss:$336 sps:$4 sm:$0xff]   ;;  %v5882_v42 = vld [vmem:[%s6009_s24 + $0x12c] ss:$336 sps:$4 sm:$0xff]  }
 0x11a   : > { %vm4130_vm9 = vcmp.ge.f32.partialorder %v4046_v40, 0.0  ;;  %v4214_v53 = vmul.f32 0.01, %v4046_v40  ;;  %vm4132_vm10 = vcmp.ge.f32.partialorder %v4048_v41, 0.0  ;;  %v4216_v54 = vmul.f32 0.01, %v4048_v41 }
 0x11b   : > { %vm4131_vm11 = vcmp.ge.f32.partialorder %v4047_v48, 0.0  ;;  %v4215_v55 = vmul.f32 0.01, %v4047_v48  ;;  %vm4133_vm12 = vcmp.ge.f32.partialorder %v4049_v49, 0.0  ;;  %v4217_v56 = vmul.f32 0.01, %v4049_v49  ;;  %3537 = vmatpush1.bf16.msra.mxu0 %v5841_v38  ;;  %3578 = vmatpush1.bf16.msra.mxu1 %v5844_v39 }
 0x11c   : > { %v4298_v57 = vsel %vm4130_vm9, %v4046_v40, %v4214_v53  ;;  %v4300_v58 = vsel %vm4132_vm10, %v4048_v41, %v4216_v54  ;;  %3538 = vmatprep.subr.bf16.mxu0 %v5849_v46  ;;  %3579 = vmatprep.subr.bf16.mxu1 %v5852_v47  ;;  %v5879_v41 = vld [vmem:[%s6009_s24 + $0x124] ss:$336 sps:$4 sm:$0xff]  }
 0x11d   : > { %v4299_v61 = vsel %vm4131_vm11, %v4047_v48, %v4215_v55  ;;  %v4301_v62 = vsel %vm4133_vm12, %v4049_v49, %v4217_v56  ;;  %v5877_v49 = vld [vmem:[%s6009_s24 + $0x120] ss:$336 sps:$4 sm:$0xff]   ;;  %v5885_v54 = vld [vmem:[%s6009_s24 + $0x3c4] ss:$336 sps:$4 sm:$0xff]   ;;  %v5888_v55 = vld [vmem:[%s6009_s24 + $0x3cc] ss:$336 sps:$4 sm:$0xff]  }
 0x11e   : > { %v5392_v63 = vpack.c.bf16 %v4299_v61, %v4298_v57  ;;  %v5393_v1 = vpack.c.bf16 %v4301_v62, %v4300_v58  ;;  %v6475_v57 = vld [vmem:[%s6735_s1] sm:$0x3]  ;;  %v5894_v61 = vld [vmem:[%s6009_s24 + $0x66c] ss:$336 sps:$4 sm:$0xff]  }
 0x11f   : > { %3539 = vmatpush1.bf16.msra.mxu0 %v5847_v50  ;;  %3580 = vmatpush1.bf16.msra.mxu1 %v5850_v51  ;;  %v5880_v50 = vld [vmem:[%s6009_s24 + $0x128] ss:$336 sps:$4 sm:$0xff]   ;;  %v5883_v58 = vld [vmem:[%s6009_s24 + $0x3c0] ss:$336 sps:$4 sm:$0xff]  }
 0x120   : > { %v4584_v4 = vrot.slane %v5392_v63, %v6359_v25  ;;  %v4591_v5 = vrot.slane %v5393_v1, %v6359_v25  ;;  %3614 = vmatprep.subr.bf16.mxu0 %v5855_v59  ;;  %3655 = vmatprep.subr.bf16.mxu1 %v5858_v60  ;;  %v5886_v59 = vld [vmem:[%s6009_s24 + $0x3c8] ss:$336 sps:$4 sm:$0xff]   ;;  %v5891_v60 = vld [vmem:[%s6009_s24 + $0x664] ss:$336 sps:$4 sm:$0xff]  }
 0x122   : > { %v4592_v8 = vcombine.low %v4584_v4, %v4591_v5  ;;  %5378 = vmatmul.mubr.msk.bf16.vlgmr.msra.gmra.mrb[64].mxu0 %vm2216_vm0, %v6239_v45  ;;  %5379 = vmatmul.mubr.msk.bf16.vlgmr.msra.gmra.mrb[64].mxu1 %vm2216_vm0, %v6239_v45 }
 0x123   : > { %3615 = vmatpush1.bf16.msra.mxu0 %v5853_v2  ;;  %3656 = vmatpush1.bf16.msra.mxu1 %v5856_v3 }
 0x124   : > { %4922 = vst [vmem:[%s6371_s6 + $0x10] sm:$0xff] %v4592_v8  ;;  %3616 = vmatprep.subr.bf16.mxu0 %v5861_v6  ;;  %3657 = vmatprep.subr.bf16.mxu1 %v5864_v7 }
 0x125   : > { %v2500_v13 = vpop.f32.mrb[12].mxu0  ;;  %v2541_v14 = vpop.f32.mrb[12].mxu1  ;;  %3646 = vmatprep.mubr.bf16.mxu0 %v5959_v0  ;;  %3687 = vmatprep.mubr.bf16.mxu1 %v5959_v0 }
 0x126   : > { %v3960_v15 = vmul.f32 %v6325_v43, %v2500_v13  ;;  %v3962_v45 = vmul.f32 %v6325_v43, %v2541_v14  ;;  %v2502_v16 = vpop.f32.mrb[13].mxu0  ;;  %v2543_v17 = vpop.f32.mrb[13].mxu1 }
 0x127   : > { %v3961_v18 = vmul.f32 %v6325_v43, %v2502_v16  ;;  %v3963_v19 = vmul.f32 %v6325_v43, %v2543_v17  ;;  %v2504_v20 = vpop.f32.mrb[14].mxu0  ;;  %v2545_v22 = vpop.f32.mrb[14].mxu1  ;;  %3617 = vmatpush1.bf16.msra.mxu0 %v5859_v9  ;;  %3658 = vmatpush1.bf16.msra.mxu1 %v5862_v10  ;;  %v5889_v9 = vld [vmem:[%s6009_s24 + $0x660] ss:$336 sps:$4 sm:$0xff]   ;;  %v5892_v10 = vld [vmem:[%s6009_s24 + $0x668] ss:$336 sps:$4 sm:$0xff]  }
 0x128   : > { %v4050_v26 = vadd.f32 %v6337_v52, %v3960_v15  ;;  %v4052_v27 = vadd.f32 %v6337_v52, %v3962_v45  ;;  %v2505_v28 = vpop.f32.mrb[15].mxu0  ;;  %v2546_v29 = vpop.f32.mrb[15].mxu1  ;;  %3618 = vmatprep.subr.bf16.mxu0 %v5867_v11  ;;  %3659 = vmatprep.subr.bf16.mxu1 %v5870_v12  ;;  %v5897_v15 = vld [vmem:[%s6009_s24 + $0x904] ss:$336 sps:$4 sm:$0xff]   ;;  %v5900_v45 = vld [vmem:[%s6009_s24 + $0x90c] ss:$336 sps:$4 sm:$0xff]  }
 0x129   : > { %v4051_v32 = vadd.f32 %v6337_v52, %v3961_v18  ;;  %v4053_v33 = vadd.f32 %v6337_v52, %v3963_v19  ;;  %v5895_v18 = vld [vmem:[%s6009_s24 + $0x900] ss:$336 sps:$4 sm:$0xff]   ;;  %v5898_v19 = vld [vmem:[%s6009_s24 + $0x908] ss:$336 sps:$4 sm:$0xff]   ;;  %v5903_v28 = vld [vmem:[%s6009_s24 + $0x134] ss:$336 sps:$4 sm:$0xff]  }
 0x12a   : > { %vm4134_vm13 = vcmp.ge.f32.partialorder %v4050_v26, 0.0  ;;  %v4218_v35 = vmul.f32 0.01, %v4050_v26  ;;  %vm4136_vm14 = vcmp.ge.f32.partialorder %v4052_v27, 0.0  ;;  %v4220_v36 = vmul.f32 0.01, %v4052_v27 }
 0x12b   : > { %vm4135_vm15 = vcmp.ge.f32.partialorder %v4051_v32, 0.0  ;;  %v4219_v37 = vmul.f32 0.01, %v4051_v32  ;;  %vm4137_vm1 = vcmp.ge.f32.partialorder %v4053_v33, 0.0  ;;  %v4221_v38 = vmul.f32 0.01, %v4053_v33  ;;  %3619 = vmatpush1.bf16.msra.mxu0 %v5865_v23  ;;  %3660 = vmatpush1.bf16.msra.mxu1 %v5868_v24 }
 0x12c   : > { %v4302_v39 = vsel %vm4134_vm13, %v4050_v26, %v4218_v35  ;;  %v4304_v40 = vsel %vm4136_vm14, %v4052_v27, %v4220_v36  ;;  %3620 = vmatprep.subr.bf16.mxu0 %v5873_v30  ;;  %3661 = vmatprep.subr.bf16.mxu1 %v5876_v31  ;;  %v5906_v29 = vld [vmem:[%s6009_s24 + $0x13c] ss:$336 sps:$4 sm:$0xff]  }
 0x12d   : > { %v4303_v44 = vsel %vm4135_vm15, %v4051_v32, %v4219_v37  ;;  %v4305_v46 = vsel %vm4137_vm1, %v4053_v33, %v4221_v38  ;;  %v5909_v37 = vld [vmem:[%s6009_s24 + $0x3d4] ss:$336 sps:$4 sm:$0xff]   ;;  %v5912_v38 = vld [vmem:[%s6009_s24 + $0x3dc] ss:$336 sps:$4 sm:$0xff]  }
 0x12e   : > { %v5394_v47 = vpack.c.bf16 %v4303_v44, %v4302_v39  ;;  %v5395_v48 = vpack.c.bf16 %v4305_v46, %v4304_v40  ;;  %v5907_v40 = vld [vmem:[%s6009_s24 + $0x3d0] ss:$336 sps:$4 sm:$0xff]   ;;  %v5918_v44 = vld [vmem:[%s6009_s24 + $0x67c] ss:$336 sps:$4 sm:$0xff]  }
 0x12f   : > { %3621 = vmatpush1.bf16.msra.mxu0 %v5871_v34  ;;  %3662 = vmatpush1.bf16.msra.mxu1 %v5874_v21  ;;  %v5901_v34 = vld [vmem:[%s6009_s24 + $0x130] ss:$336 sps:$4 sm:$0xff]   ;;  %v5904_v21 = vld [vmem:[%s6009_s24 + $0x138] ss:$336 sps:$4 sm:$0xff]  }
 0x130   : > { %v4601_v51 = vrot.slane %v5394_v47, %v6359_v25  ;;  %v4608_v53 = vrot.slane %v5395_v48, %v6359_v25  ;;  %3696 = vmatprep.subr.bf16.mxu0 %v5879_v41  ;;  %3737 = vmatprep.subr.bf16.mxu1 %v5882_v42  ;;  %v5910_v41 = vld [vmem:[%s6009_s24 + $0x3d8] ss:$336 sps:$4 sm:$0xff]   ;;  %v5915_v42 = vld [vmem:[%s6009_s24 + $0x674] ss:$336 sps:$4 sm:$0xff]  }
 0x132   : > { %v4609_v56 = vcombine.low %v4601_v51, %v4608_v53  ;;  %5380 = vmatmul.mubr.msk.bf16.vlgmr.msra.gmra.mrb[68].mxu0 %vm2216_vm0, %v6475_v57  ;;  %5381 = vmatmul.mubr.msk.bf16.vlgmr.msra.gmra.mrb[68].mxu1 %vm2216_vm0, %v6475_v57 }
 0x133   : > { %3697 = vmatpush1.bf16.msra.mxu0 %v5877_v49  ;;  %3738 = vmatpush1.bf16.msra.mxu1 %v5880_v50 }
 0x134   : > { %4923 = vst [vmem:[%s6371_s6 + $0x18] sm:$0xff] %v4609_v56  ;;  %3698 = vmatprep.subr.bf16.mxu0 %v5885_v54  ;;  %3739 = vmatprep.subr.bf16.mxu1 %v5888_v55 }
 0x135   : > { %v2582_v62 = vpop.f32.mrb[16].mxu0  ;;  %v2623_v63 = vpop.f32.mrb[16].mxu1  ;;  %3728 = vmatprep.mubr.bf16.mxu0 %v5959_v0  ;;  %3769 = vmatprep.mubr.bf16.mxu1 %v5959_v0 }
 0x136   : > { %v3964_v1 = vmul.f32 %v6325_v43, %v2582_v62  ;;  %v3966_v2 = vmul.f32 %v6325_v43, %v2623_v63  ;;  %v2584_v3 = vpop.f32.mrb[17].mxu0  ;;  %v2625_v4 = vpop.f32.mrb[17].mxu1 }
 0x137   : > { %v3965_v5 = vmul.f32 %v6325_v43, %v2584_v3  ;;  %v3967_v6 = vmul.f32 %v6325_v43, %v2625_v4  ;;  %v2586_v7 = vpop.f32.mrb[18].mxu0  ;;  %v2627_v8 = vpop.f32.mrb[18].mxu1  ;;  %3699 = vmatpush1.bf16.msra.mxu0 %v5883_v58  ;;  %3740 = vmatpush1.bf16.msra.mxu1 %v5886_v59  ;;  %v5913_v58 = vld [vmem:[%s6009_s24 + $0x670] ss:$336 sps:$4 sm:$0xff]   ;;  %v5916_v59 = vld [vmem:[%s6009_s24 + $0x678] ss:$336 sps:$4 sm:$0xff]  }
 0x138   : > { %v4054_v11 = vadd.f32 %v6337_v52, %v3964_v1  ;;  %v4056_v12 = vadd.f32 %v6337_v52, %v3966_v2  ;;  %v2587_v13 = vpop.f32.mrb[19].mxu0  ;;  %v2628_v14 = vpop.f32.mrb[19].mxu1  ;;  %3700 = vmatprep.subr.bf16.mxu0 %v5891_v60  ;;  %3741 = vmatprep.subr.bf16.mxu1 %v5894_v61  ;;  %v5921_v1 = vld [vmem:[%s6009_s24 + $0x914] ss:$336 sps:$4 sm:$0xff]   ;;  %v5924_v2 = vld [vmem:[%s6009_s24 + $0x91c] ss:$336 sps:$4 sm:$0xff]  }
 0x139   : > { %v4055_v16 = vadd.f32 %v6337_v52, %v3965_v5  ;;  %v4057_v17 = vadd.f32 %v6337_v52, %v3967_v6  ;;  %v5919_v5 = vld [vmem:[%s6009_s24 + $0x910] ss:$336 sps:$4 sm:$0xff]   ;;  %v5922_v6 = vld [vmem:[%s6009_s24 + $0x918] ss:$336 sps:$4 sm:$0xff]   ;;  %v5927_v13 = vld [vmem:[%s6009_s24 + $0x144] ss:$336 sps:$4 sm:$0xff]  }
 0x13a   : > { %vm4138_vm2 = vcmp.ge.f32.partialorder %v4054_v11, 0.0  ;;  %v4222_v20 = vmul.f32 0.01, %v4054_v11  ;;  %vm4140_vm3 = vcmp.ge.f32.partialorder %v4056_v12, 0.0  ;;  %v4224_v22 = vmul.f32 0.01, %v4056_v12 }
 0x13b   : > { %vm4139_vm4 = vcmp.ge.f32.partialorder %v4055_v16, 0.0  ;;  %v4223_v23 = vmul.f32 0.01, %v4055_v16  ;;  %vm4141_vm5 = vcmp.ge.f32.partialorder %v4057_v17, 0.0  ;;  %v4225_v24 = vmul.f32 0.01, %v4057_v17  ;;  %3701 = vmatpush1.bf16.msra.mxu0 %v5889_v9  ;;  %3742 = vmatpush1.bf16.msra.mxu1 %v5892_v10 }
 0x13c   : > { %v4306_v26 = vsel %vm4138_vm2, %v4054_v11, %v4222_v20  ;;  %v4308_v27 = vsel %vm4140_vm3, %v4056_v12, %v4224_v22  ;;  %3702 = vmatprep.subr.bf16.mxu0 %v5897_v15  ;;  %3743 = vmatprep.subr.bf16.mxu1 %v5900_v45  ;;  %v5930_v14 = vld [vmem:[%s6009_s24 + $0x14c] ss:$336 sps:$4 sm:$0xff]  }
 0x13d   : > { %v4307_v30 = vsel %vm4139_vm4, %v4055_v16, %v4223_v23  ;;  %v4309_v31 = vsel %vm4141_vm5, %v4057_v17, %v4225_v24  ;;  %v5933_v23 = vld [vmem:[%s6009_s24 + $0x3e4] ss:$336 sps:$4 sm:$0xff]   ;;  %v5936_v24 = vld [vmem:[%s6009_s24 + $0x3ec] ss:$336 sps:$4 sm:$0xff]  }
 0x13e   : > { %v5396_v32 = vpack.c.bf16 %v4307_v30, %v4306_v26  ;;  %v5397_v33 = vpack.c.bf16 %v4309_v31, %v4308_v27  ;;  %v5931_v27 = vld [vmem:[%s6009_s24 + $0x3e0] ss:$336 sps:$4 sm:$0xff]   ;;  %v5942_v30 = vld [vmem:[%s6009_s24 + $0x68c] ss:$336 sps:$4 sm:$0xff]  }
 0x13f   : > { %3703 = vmatpush1.bf16.msra.mxu0 %v5895_v18  ;;  %3744 = vmatpush1.bf16.msra.mxu1 %v5898_v19  ;;  %v5925_v18 = vld [vmem:[%s6009_s24 + $0x140] ss:$336 sps:$4 sm:$0xff]   ;;  %v5928_v19 = vld [vmem:[%s6009_s24 + $0x148] ss:$336 sps:$4 sm:$0xff]  }
 0x140   : > { %v4618_v35 = vrot.slane %v5396_v32, %v6359_v25  ;;  %v4625_v36 = vrot.slane %v5397_v33, %v6359_v25  ;;  %3778 = vmatprep.subr.bf16.mxu0 %v5903_v28  ;;  %3819 = vmatprep.subr.bf16.mxu1 %v5906_v29  ;;  %v5934_v28 = vld [vmem:[%s6009_s24 + $0x3e8] ss:$336 sps:$4 sm:$0xff]   ;;  %v5939_v29 = vld [vmem:[%s6009_s24 + $0x684] ss:$336 sps:$4 sm:$0xff]  }
 0x142   : > { %v4626_v39 = vcombine.low %v4618_v35, %v4625_v36  ;;  %5382 = vmatmul.mubr.msk.bf16.vlgmr.msra.gmra.mrb[72].mxu0 %vm2216_vm0, %v6475_v57  ;;  %5383 = vmatmul.mubr.msk.bf16.vlgmr.msra.gmra.mrb[72].mxu1 %vm2216_vm0, %v6475_v57 }
 0x143   : > { %3779 = vmatpush1.bf16.msra.mxu0 %v5901_v34  ;;  %3820 = vmatpush1.bf16.msra.mxu1 %v5904_v21 }
 0x144   : > { %4924 = vst [vmem:[%s6371_s6 + $0x20] sm:$0xff] %v4626_v39  ;;  %3780 = vmatprep.subr.bf16.mxu0 %v5909_v37  ;;  %3821 = vmatprep.subr.bf16.mxu1 %v5912_v38 }
 0x145   : > { %v2664_v46 = vpop.f32.mrb[20].mxu0  ;;  %v2705_v47 = vpop.f32.mrb[20].mxu1  ;;  %3810 = vmatprep.mubr.bf16.mxu0 %v5959_v0  ;;  %3851 = vmatprep.mubr.bf16.mxu1 %v5959_v0 }
 0x146   : > { %v3968_v48 = vmul.f32 %v6325_v43, %v2664_v46  ;;  %v3970_v49 = vmul.f32 %v6325_v43, %v2705_v47  ;;  %v2666_v50 = vpop.f32.mrb[21].mxu0  ;;  %v2707_v51 = vpop.f32.mrb[21].mxu1  ;;  %v5945_v47 = vld [vmem:[%s6009_s24 + $0x924] ss:$336 sps:$4 sm:$0xff]  }
 0x147   : > { %v3969_v53 = vmul.f32 %v6325_v43, %v2666_v50  ;;  %v3971_v54 = vmul.f32 %v6325_v43, %v2707_v51  ;;  %v2668_v55 = vpop.f32.mrb[22].mxu0  ;;  %v2709_v56 = vpop.f32.mrb[22].mxu1  ;;  %3781 = vmatpush1.bf16.msra.mxu0 %v5907_v40  ;;  %3822 = vmatpush1.bf16.msra.mxu1 %v5910_v41  ;;  %v5937_v40 = vld [vmem:[%s6009_s24 + $0x680] ss:$336 sps:$4 sm:$0xff]  }
 0x148   : > { %v4058_v60 = vadd.f32 %v6337_v52, %v3968_v48  ;;  %v4060_v61 = vadd.f32 %v6337_v52, %v3970_v49  ;;  %v2669_v62 = vpop.f32.mrb[23].mxu0  ;;  %v2710_v63 = vpop.f32.mrb[23].mxu1  ;;  %3782 = vmatprep.subr.bf16.mxu0 %v5915_v42  ;;  %3823 = vmatprep.subr.bf16.mxu1 %v5918_v44  ;;  %v5948_v48 = vld [vmem:[%s6009_s24 + $0x92c] ss:$336 sps:$4 sm:$0xff]   ;;  %v5943_v51 = vld [vmem:[%s6009_s24 + $0x920] ss:$336 sps:$4 sm:$0xff]  }
 0x149   : > { %v4059_v3 = vadd.f32 %v6337_v52, %v3969_v53  ;;  %v4061_v4 = vadd.f32 %v6337_v52, %v3971_v54  ;;  %v5946_v53 = vld [vmem:[%s6009_s24 + $0x928] ss:$336 sps:$4 sm:$0xff]  }
 0x14a   : > { %vm4142_vm6 = vcmp.ge.f32.partialorder %v4058_v60, 0.0  ;;  %v4226_v7 = vmul.f32 0.01, %v4058_v60  ;;  %vm4144_vm7 = vcmp.ge.f32.partialorder %v4060_v61, 0.0  ;;  %v4228_v8 = vmul.f32 0.01, %v4060_v61 }
 0x14b   : > { %vm4143_vm8 = vcmp.ge.f32.partialorder %v4059_v3, 0.0  ;;  %v4227_v9 = vmul.f32 0.01, %v4059_v3  ;;  %vm4145_vm9 = vcmp.ge.f32.partialorder %v4061_v4, 0.0  ;;  %v4229_v10 = vmul.f32 0.01, %v4061_v4  ;;  %3783 = vmatpush1.bf16.msra.mxu0 %v5913_v58  ;;  %3824 = vmatpush1.bf16.msra.mxu1 %v5916_v59 }
 0x14c   : > { %v4310_v11 = vsel %vm4142_vm6, %v4058_v60, %v4226_v7  ;;  %v4312_v12 = vsel %vm4144_vm7, %v4060_v61, %v4228_v8  ;;  %3784 = vmatprep.subr.bf16.mxu0 %v5921_v1  ;;  %3825 = vmatprep.subr.bf16.mxu1 %v5924_v2 }
 0x14d   : > { %v4311_v15 = vsel %vm4143_vm8, %v4059_v3, %v4227_v9  ;;  %v4313_v45 = vsel %vm4145_vm9, %v4061_v4, %v4229_v10 }
 0x14e   : > { %v5398_v16 = vpack.c.bf16 %v4311_v15, %v4310_v11  ;;  %v5399_v17 = vpack.c.bf16 %v4313_v45, %v4312_v12 }
 0x14f   : > { %3785 = vmatpush1.bf16.msra.mxu0 %v5919_v5  ;;  %3826 = vmatpush1.bf16.msra.mxu1 %v5922_v6 }
 0x150   : > { %v4635_v20 = vrot.slane %v5398_v16, %v6359_v25  ;;  %v4642_v22 = vrot.slane %v5399_v17, %v6359_v25  ;;  %3860 = vmatprep.subr.bf16.mxu0 %v5927_v13  ;;  %3901 = vmatprep.subr.bf16.mxu1 %v5930_v14 }
 0x152   : > { %v4643_v26 = vcombine.low %v4635_v20, %v4642_v22  ;;  %5384 = vmatmul.mubr.msk.bf16.vlgmr.msra.gmra.mrb[76].mxu0 %vm2216_vm0, %v6475_v57  ;;  %5385 = vmatmul.mubr.msk.bf16.vlgmr.msra.gmra.mrb[76].mxu1 %vm2216_vm0, %v6475_v57 }
 0x153   : > { %3861 = vmatpush1.bf16.msra.mxu0 %v5925_v18  ;;  %3902 = vmatpush1.bf16.msra.mxu1 %v5928_v19 }
 0x154   : > { %4925 = vst [vmem:[%s6371_s6 + $0x28] sm:$0xff] %v4643_v26  ;;  %3862 = vmatprep.subr.bf16.mxu0 %v5933_v23  ;;  %3903 = vmatprep.subr.bf16.mxu1 %v5936_v24 }
 0x155   : > { %v2746_v31 = vpop.f32.mrb[24].mxu0  ;;  %v2787_v32 = vpop.f32.mrb[24].mxu1  ;;  %3892 = vmatprep.mubr.bf16.mxu0 %v5959_v0  ;;  %3933 = vmatprep.mubr.bf16.mxu1 %v5959_v0  ;;  %v5940_v0 = vld [vmem:[%s6009_s24 + $0x688] ss:$336 sps:$4 sm:$0xff]  }
 0x156   : > { %v3972_v33 = vmul.f32 %v6325_v43, %v2746_v31  ;;  %v3974_v34 = vmul.f32 %v6325_v43, %v2787_v32  ;;  %v2748_v21 = vpop.f32.mrb[25].mxu0  ;;  %v2789_v35 = vpop.f32.mrb[25].mxu1 }
 0x157   : > { %v3973_v36 = vmul.f32 %v6325_v43, %v2748_v21  ;;  %v3975_v37 = vmul.f32 %v6325_v43, %v2789_v35  ;;  %v2750_v38 = vpop.f32.mrb[26].mxu0  ;;  %v2791_v39 = vpop.f32.mrb[26].mxu1  ;;  %3863 = vmatpush1.bf16.msra.mxu0 %v5931_v27  ;;  %3904 = vmatpush1.bf16.msra.mxu1 %v5934_v28 }
 0x158   : > { %v4062_v41 = vadd.f32 %v6337_v52, %v3972_v33  ;;  %v4064_v42 = vadd.f32 %v6337_v52, %v3974_v34  ;;  %v2751_v44 = vpop.f32.mrb[27].mxu0  ;;  %v2792_v46 = vpop.f32.mrb[27].mxu1  ;;  %3864 = vmatprep.subr.bf16.mxu0 %v5939_v29  ;;  %3905 = vmatprep.subr.bf16.mxu1 %v5942_v30 }
 0x159   : > { %v4063_v49 = vadd.f32 %v6337_v52, %v3973_v36  ;;  %v4065_v50 = vadd.f32 %v6337_v52, %v3975_v37 }
 0x15a   : > { %vm4146_vm10 = vcmp.ge.f32.partialorder %v4062_v41, 0.0  ;;  %v4230_v54 = vmul.f32 0.01, %v4062_v41  ;;  %vm4148_vm11 = vcmp.ge.f32.partialorder %v4064_v42, 0.0  ;;  %v4232_v55 = vmul.f32 0.01, %v4064_v42 }
 0x15b   : > { %vm4147_vm12 = vcmp.ge.f32.partialorder %v4063_v49, 0.0  ;;  %v4231_v56 = vmul.f32 0.01, %v4063_v49  ;;  %vm4149_vm13 = vcmp.ge.f32.partialorder %v4065_v50, 0.0  ;;  %v4233_v58 = vmul.f32 0.01, %v4065_v50  ;;  %3865 = vmatpush1.bf16.msra.mxu0 %v5937_v40  ;;  %3906 = vmatpush1.bf16.msra.mxu1 %v5940_v0 }
 0x15c   : > { %v4314_v59 = vsel %vm4146_vm10, %v4062_v41, %v4230_v54  ;;  %v4316_v60 = vsel %vm4148_vm11, %v4064_v42, %v4232_v55  ;;  %3866 = vmatprep.subr.bf16.mxu0 %v5945_v47  ;;  %3907 = vmatprep.subr.bf16.mxu1 %v5948_v48 }
 0x15d   : > { %v4315_v61 = vsel %vm4147_vm12, %v4063_v49, %v4231_v56  ;;  %v4317_v62 = vsel %vm4149_vm13, %v4065_v50, %v4233_v58 }
 0x15e   : > { %v5400_v63 = vpack.c.bf16 %v4315_v61, %v4314_v59  ;;  %v5401_v1 = vpack.c.bf16 %v4317_v62, %v4316_v60 }
 0x15f   : > { %3867 = vmatpush1.bf16.msra.mxu0 %v5943_v51  ;;  %3908 = vmatpush1.bf16.msra.mxu1 %v5946_v53 }
 0x160   : > { %v4652_v2 = vrot.slane %v5400_v63, %v6359_v25  ;;  %v4659_v3 = vrot.slane %v5401_v1, %v6359_v25 }
 0x162   : > { %v4660_v4 = vcombine.low %v4652_v2, %v4659_v3  ;;  %5386 = vmatmul.mubr.msk.bf16.vlgmr.msra.gmra.mrb[80].mxu0 %vm2216_vm0, %v6475_v57  ;;  %5387 = vmatmul.mubr.msk.bf16.vlgmr.msra.gmra.mrb[80].mxu1 %vm2216_vm0, %v6475_v57 }
 0x164   : > { %4926 = vst [vmem:[%s6371_s6 + $0x30] sm:$0xff] %v4660_v4 }
 0x165   : > { %v2828_v5 = vpop.f32.mrb[28].mxu0  ;;  %v2869_v6 = vpop.f32.mrb[28].mxu1 }
 0x166   : > { %v3976_v7 = vmul.f32 %v6325_v43, %v2828_v5  ;;  %v3978_v8 = vmul.f32 %v6325_v43, %v2869_v6  ;;  %v2830_v9 = vpop.f32.mrb[29].mxu0  ;;  %v2871_v10 = vpop.f32.mrb[29].mxu1 }
 0x167   : > { %v3977_v11 = vmul.f32 %v6325_v43, %v2830_v9  ;;  %v3979_v12 = vmul.f32 %v6325_v43, %v2871_v10  ;;  %v2832_v13 = vpop.f32.mrb[30].mxu0  ;;  %v2873_v14 = vpop.f32.mrb[30].mxu1 }
 0x168   : > { %v4066_v15 = vadd.f32 %v6337_v52, %v3976_v7  ;;  %v4068_v45 = vadd.f32 %v6337_v52, %v3978_v8  ;;  %v2833_v57 = vpop.f32.mrb[31].mxu0  ;;  %v2874_v16 = vpop.f32.mrb[31].mxu1 }
 0x169   : > { %v4067_v17 = vadd.f32 %v6337_v52, %v3977_v11  ;;  %v4069_v18 = vadd.f32 %v6337_v52, %v3979_v12 }
 0x16a   : > { %vm4150_vm0 = vcmp.ge.f32.partialorder %v4066_v15, 0.0  ;;  %v4234_v19 = vmul.f32 0.01, %v4066_v15  ;;  %vm4152_vm14 = vcmp.ge.f32.partialorder %v4068_v45, 0.0  ;;  %v4236_v20 = vmul.f32 0.01, %v4068_v45 }
 0x16b   : > { %vm4151_vm15 = vcmp.ge.f32.partialorder %v4067_v17, 0.0  ;;  %v4235_v22 = vmul.f32 0.01, %v4067_v17  ;;  %vm4153_vm1 = vcmp.ge.f32.partialorder %v4069_v18, 0.0  ;;  %v4237_v23 = vmul.f32 0.01, %v4069_v18 }
 0x16c   : > { %v4318_v24 = vsel %vm4150_vm0, %v4066_v15, %v4234_v19  ;;  %v4320_v26 = vsel %vm4152_vm14, %v4068_v45, %v4236_v20 }
 0x16d   : > { %v4319_v27 = vsel %vm4151_vm15, %v4067_v17, %v4235_v22  ;;  %v4321_v28 = vsel %vm4153_vm1, %v4069_v18, %v4237_v23 }
 0x16e   : > { %v5402_v29 = vpack.c.bf16 %v4319_v27, %v4318_v24  ;;  %v5403_v30 = vpack.c.bf16 %v4321_v28, %v4320_v26 }
 0x170   : > { %v4669_v31 = vrot.slane %v5402_v29, %v6359_v25  ;;  %v4676_v32 = vrot.slane %v5403_v30, %v6359_v25 }
 0x172   : > { %v4677_v33 = vcombine.low %v4669_v31, %v4676_v32 }
 0x174   : > { %4927 = vst [vmem:[%s6371_s6 + $0x38] sm:$0xff] %v4677_v33 }
 0x175   : > { %v2910_v34 = vpop.f32.mrb[32].mxu0  ;;  %v2951_v21 = vpop.f32.mrb[32].mxu1 }
 0x176   : > { %v3980_v35 = vmul.f32 %v6325_v43, %v2910_v34  ;;  %v3982_v36 = vmul.f32 %v6325_v43, %v2951_v21  ;;  %v2912_v37 = vpop.f32.mrb[33].mxu0  ;;  %v2953_v38 = vpop.f32.mrb[33].mxu1 }
 0x177   : > { %v3981_v39 = vmul.f32 %v6325_v43, %v2912_v37  ;;  %v3983_v40 = vmul.f32 %v6325_v43, %v2953_v38  ;;  %v2914_v0 = vpop.f32.mrb[34].mxu0  ;;  %v2955_v41 = vpop.f32.mrb[34].mxu1 }
 0x178   : > { %v4070_v42 = vadd.f32 %v6337_v52, %v3980_v35  ;;  %v4072_v44 = vadd.f32 %v6337_v52, %v3982_v36  ;;  %v2915_v46 = vpop.f32.mrb[35].mxu0  ;;  %v2956_v47 = vpop.f32.mrb[35].mxu1 }
 0x179   : > { %v4071_v48 = vadd.f32 %v6337_v52, %v3981_v39  ;;  %v4073_v49 = vadd.f32 %v6337_v52, %v3983_v40 }
 0x17a   : > { %vm4154_vm2 = vcmp.ge.f32.partialorder %v4070_v42, 0.0  ;;  %v4238_v50 = vmul.f32 0.01, %v4070_v42  ;;  %vm4156_vm3 = vcmp.ge.f32.partialorder %v4072_v44, 0.0  ;;  %v4240_v51 = vmul.f32 0.01, %v4072_v44 }
 0x17b   : > { %vm4155_vm4 = vcmp.ge.f32.partialorder %v4071_v48, 0.0  ;;  %v4239_v53 = vmul.f32 0.01, %v4071_v48  ;;  %vm4157_vm5 = vcmp.ge.f32.partialorder %v4073_v49, 0.0  ;;  %v4241_v54 = vmul.f32 0.01, %v4073_v49 }
 0x17c   : > { %v4322_v55 = vsel %vm4154_vm2, %v4070_v42, %v4238_v50  ;;  %v4324_v56 = vsel %vm4156_vm3, %v4072_v44, %v4240_v51 }
 0x17d   : > { %v4323_v58 = vsel %vm4155_vm4, %v4071_v48, %v4239_v53  ;;  %v4325_v59 = vsel %vm4157_vm5, %v4073_v49, %v4241_v54 }
 0x17e   : > { %v5404_v60 = vpack.c.bf16 %v4323_v58, %v4322_v55  ;;  %v5405_v61 = vpack.c.bf16 %v4325_v59, %v4324_v56 }
 0x180   : > { %v4686_v62 = vrot.slane %v5404_v60, %v6359_v25  ;;  %v4693_v63 = vrot.slane %v5405_v61, %v6359_v25 }
 0x182   : > { %v4694_v1 = vcombine.low %v4686_v62, %v4693_v63 }
 0x184   : > { %4928 = vst [vmem:[%s6371_s6 + $0x40] sm:$0xff] %v4694_v1 }
 0x185   : > { %v2992_v2 = vpop.f32.mrb[36].mxu0  ;;  %v3033_v3 = vpop.f32.mrb[36].mxu1 }
 0x186   : > { %v3984_v4 = vmul.f32 %v6325_v43, %v2992_v2  ;;  %v3986_v5 = vmul.f32 %v6325_v43, %v3033_v3  ;;  %v2994_v6 = vpop.f32.mrb[37].mxu0  ;;  %v3035_v7 = vpop.f32.mrb[37].mxu1 }
 0x187   : > { %v3985_v8 = vmul.f32 %v6325_v43, %v2994_v6  ;;  %v3987_v9 = vmul.f32 %v6325_v43, %v3035_v7  ;;  %v2996_v10 = vpop.f32.mrb[38].mxu0  ;;  %v3037_v11 = vpop.f32.mrb[38].mxu1 }
 0x188   : > { %v4074_v12 = vadd.f32 %v6337_v52, %v3984_v4  ;;  %v4076_v13 = vadd.f32 %v6337_v52, %v3986_v5  ;;  %v2997_v14 = vpop.f32.mrb[39].mxu0  ;;  %v3038_v15 = vpop.f32.mrb[39].mxu1 }
 0x189   : > { %v4075_v45 = vadd.f32 %v6337_v52, %v3985_v8  ;;  %v4077_v57 = vadd.f32 %v6337_v52, %v3987_v9 }
 0x18a   : > { %vm4158_vm6 = vcmp.ge.f32.partialorder %v4074_v12, 0.0  ;;  %v4242_v16 = vmul.f32 0.01, %v4074_v12  ;;  %vm4160_vm7 = vcmp.ge.f32.partialorder %v4076_v13, 0.0  ;;  %v4244_v17 = vmul.f32 0.01, %v4076_v13 }
 0x18b   : > { %vm4159_vm8 = vcmp.ge.f32.partialorder %v4075_v45, 0.0  ;;  %v4243_v18 = vmul.f32 0.01, %v4075_v45  ;;  %vm4161_vm9 = vcmp.ge.f32.partialorder %v4077_v57, 0.0  ;;  %v4245_v19 = vmul.f32 0.01, %v4077_v57 }
 0x18c   : > { %v4326_v20 = vsel %vm4158_vm6, %v4074_v12, %v4242_v16  ;;  %v4328_v22 = vsel %vm4160_vm7, %v4076_v13, %v4244_v17 }
 0x18d   : > { %v4327_v23 = vsel %vm4159_vm8, %v4075_v45, %v4243_v18  ;;  %v4329_v24 = vsel %vm4161_vm9, %v4077_v57, %v4245_v19 }
 0x18e   : > { %v5406_v26 = vpack.c.bf16 %v4327_v23, %v4326_v20  ;;  %v5407_v27 = vpack.c.bf16 %v4329_v24, %v4328_v22 }
 0x190   : > { %v4703_v28 = vrot.slane %v5406_v26, %v6359_v25  ;;  %v4710_v29 = vrot.slane %v5407_v27, %v6359_v25 }
 0x192   : > { %v4711_v30 = vcombine.low %v4703_v28, %v4710_v29 }
 0x194   : > { %4929 = vst [vmem:[%s6371_s6 + $0x48] sm:$0xff] %v4711_v30 }
 0x195   : > { %v3074_v31 = vpop.f32.mrb[40].mxu0  ;;  %v3115_v32 = vpop.f32.mrb[40].mxu1 }
 0x196   : > { %v3988_v33 = vmul.f32 %v6325_v43, %v3074_v31  ;;  %v3990_v34 = vmul.f32 %v6325_v43, %v3115_v32  ;;  %v3076_v21 = vpop.f32.mrb[41].mxu0  ;;  %v3117_v35 = vpop.f32.mrb[41].mxu1 }
 0x197   : > { %v3989_v36 = vmul.f32 %v6325_v43, %v3076_v21  ;;  %v3991_v37 = vmul.f32 %v6325_v43, %v3117_v35  ;;  %v3078_v38 = vpop.f32.mrb[42].mxu0  ;;  %v3119_v39 = vpop.f32.mrb[42].mxu1 }
 0x198   : > { %v4078_v40 = vadd.f32 %v6337_v52, %v3988_v33  ;;  %v4080_v0 = vadd.f32 %v6337_v52, %v3990_v34  ;;  %v3079_v41 = vpop.f32.mrb[43].mxu0  ;;  %v3120_v42 = vpop.f32.mrb[43].mxu1 }
 0x199   : > { %v4079_v44 = vadd.f32 %v6337_v52, %v3989_v36  ;;  %v4081_v46 = vadd.f32 %v6337_v52, %v3991_v37 }
 0x19a   : > { %vm4162_vm10 = vcmp.ge.f32.partialorder %v4078_v40, 0.0  ;;  %v4246_v47 = vmul.f32 0.01, %v4078_v40  ;;  %vm4164_vm11 = vcmp.ge.f32.partialorder %v4080_v0, 0.0  ;;  %v4248_v48 = vmul.f32 0.01, %v4080_v0 }
 0x19b   : > { %vm4163_vm12 = vcmp.ge.f32.partialorder %v4079_v44, 0.0  ;;  %v4247_v49 = vmul.f32 0.01, %v4079_v44  ;;  %vm4165_vm13 = vcmp.ge.f32.partialorder %v4081_v46, 0.0  ;;  %v4249_v50 = vmul.f32 0.01, %v4081_v46 }
 0x19c   : > { %v4330_v51 = vsel %vm4162_vm10, %v4078_v40, %v4246_v47  ;;  %v4332_v53 = vsel %vm4164_vm11, %v4080_v0, %v4248_v48 }
 0x19d   : > { %v4331_v54 = vsel %vm4163_vm12, %v4079_v44, %v4247_v49  ;;  %v4333_v55 = vsel %vm4165_vm13, %v4081_v46, %v4249_v50 }
 0x19e   : > { %v5408_v56 = vpack.c.bf16 %v4331_v54, %v4330_v51  ;;  %v5409_v58 = vpack.c.bf16 %v4333_v55, %v4332_v53 }
 0x1a0   : > { %v4720_v59 = vrot.slane %v5408_v56, %v6359_v25  ;;  %v4727_v60 = vrot.slane %v5409_v58, %v6359_v25 }
 0x1a2   : > { %v4728_v61 = vcombine.low %v4720_v59, %v4727_v60 }
 0x1a4   : > { %4930 = vst [vmem:[%s6371_s6 + $0x50] sm:$0xff] %v4728_v61 }
 0x1a5   : > { %v3156_v62 = vpop.f32.mrb[44].mxu0  ;;  %v3197_v63 = vpop.f32.mrb[44].mxu1 }
 0x1a6   : > { %v3992_v1 = vmul.f32 %v6325_v43, %v3156_v62  ;;  %v3994_v2 = vmul.f32 %v6325_v43, %v3197_v63  ;;  %v3158_v3 = vpop.f32.mrb[45].mxu0  ;;  %v3199_v4 = vpop.f32.mrb[45].mxu1 }
 0x1a7   : > { %v3993_v5 = vmul.f32 %v6325_v43, %v3158_v3  ;;  %v3995_v6 = vmul.f32 %v6325_v43, %v3199_v4  ;;  %v3160_v7 = vpop.f32.mrb[46].mxu0  ;;  %v3201_v8 = vpop.f32.mrb[46].mxu1 }
 0x1a8   : > { %v4082_v9 = vadd.f32 %v6337_v52, %v3992_v1  ;;  %v4084_v10 = vadd.f32 %v6337_v52, %v3994_v2  ;;  %v3161_v11 = vpop.f32.mrb[47].mxu0  ;;  %v3202_v12 = vpop.f32.mrb[47].mxu1 }
 0x1a9   : > { %v4083_v13 = vadd.f32 %v6337_v52, %v3993_v5  ;;  %v4085_v14 = vadd.f32 %v6337_v52, %v3995_v6 }
 0x1aa   : > { %vm4166_vm0 = vcmp.ge.f32.partialorder %v4082_v9, 0.0  ;;  %v4250_v15 = vmul.f32 0.01, %v4082_v9  ;;  %vm4168_vm14 = vcmp.ge.f32.partialorder %v4084_v10, 0.0  ;;  %v4252_v45 = vmul.f32 0.01, %v4084_v10 }
 0x1ab   : > { %vm4167_vm15 = vcmp.ge.f32.partialorder %v4083_v13, 0.0  ;;  %v4251_v57 = vmul.f32 0.01, %v4083_v13  ;;  %vm4169_vm1 = vcmp.ge.f32.partialorder %v4085_v14, 0.0  ;;  %v4253_v16 = vmul.f32 0.01, %v4085_v14 }
 0x1ac   : > { %v4334_v17 = vsel %vm4166_vm0, %v4082_v9, %v4250_v15  ;;  %v4336_v18 = vsel %vm4168_vm14, %v4084_v10, %v4252_v45 }
 0x1ad   : > { %v4335_v19 = vsel %vm4167_vm15, %v4083_v13, %v4251_v57  ;;  %v4337_v20 = vsel %vm4169_vm1, %v4085_v14, %v4253_v16 }
 0x1ae   : > { %v5410_v22 = vpack.c.bf16 %v4335_v19, %v4334_v17  ;;  %v5411_v23 = vpack.c.bf16 %v4337_v20, %v4336_v18 }
 0x1b0   : > { %v4737_v24 = vrot.slane %v5410_v22, %v6359_v25  ;;  %v4744_v26 = vrot.slane %v5411_v23, %v6359_v25 }
 0x1b2   : > { %v4745_v27 = vcombine.low %v4737_v24, %v4744_v26 }
 0x1b4   : > { %4931 = vst [vmem:[%s6371_s6 + $0x58] sm:$0xff] %v4745_v27 }
 0x1b5   : > { %v3238_v28 = vpop.f32.mrb[48].mxu0  ;;  %v3279_v29 = vpop.f32.mrb[48].mxu1 }
 0x1b6   : > { %v3996_v30 = vmul.f32 %v6325_v43, %v3238_v28  ;;  %v3998_v31 = vmul.f32 %v6325_v43, %v3279_v29  ;;  %v3240_v32 = vpop.f32.mrb[49].mxu0  ;;  %v3281_v33 = vpop.f32.mrb[49].mxu1 }
 0x1b7   : > { %v3997_v34 = vmul.f32 %v6325_v43, %v3240_v32  ;;  %v3999_v21 = vmul.f32 %v6325_v43, %v3281_v33  ;;  %v3242_v35 = vpop.f32.mrb[50].mxu0  ;;  %v3283_v36 = vpop.f32.mrb[50].mxu1 }
 0x1b8   : > { %v4086_v37 = vadd.f32 %v6337_v52, %v3996_v30  ;;  %v4088_v38 = vadd.f32 %v6337_v52, %v3998_v31  ;;  %v3243_v39 = vpop.f32.mrb[51].mxu0  ;;  %v3284_v40 = vpop.f32.mrb[51].mxu1 }
 0x1b9   : > { %v4087_v0 = vadd.f32 %v6337_v52, %v3997_v34  ;;  %v4089_v41 = vadd.f32 %v6337_v52, %v3999_v21 }
 0x1ba   : > { %vm4170_vm2 = vcmp.ge.f32.partialorder %v4086_v37, 0.0  ;;  %v4254_v42 = vmul.f32 0.01, %v4086_v37  ;;  %vm4172_vm3 = vcmp.ge.f32.partialorder %v4088_v38, 0.0  ;;  %v4256_v44 = vmul.f32 0.01, %v4088_v38 }
 0x1bb   : > { %vm4171_vm4 = vcmp.ge.f32.partialorder %v4087_v0, 0.0  ;;  %v4255_v46 = vmul.f32 0.01, %v4087_v0  ;;  %vm4173_vm5 = vcmp.ge.f32.partialorder %v4089_v41, 0.0  ;;  %v4257_v47 = vmul.f32 0.01, %v4089_v41 }
 0x1bc   : > { %v4338_v48 = vsel %vm4170_vm2, %v4086_v37, %v4254_v42  ;;  %v4340_v49 = vsel %vm4172_vm3, %v4088_v38, %v4256_v44 }
 0x1bd   : > { %v4339_v50 = vsel %vm4171_vm4, %v4087_v0, %v4255_v46  ;;  %v4341_v51 = vsel %vm4173_vm5, %v4089_v41, %v4257_v47 }
 0x1be   : > { %v5412_v53 = vpack.c.bf16 %v4339_v50, %v4338_v48  ;;  %v5413_v54 = vpack.c.bf16 %v4341_v51, %v4340_v49 }
 0x1c0   : > { %v4754_v55 = vrot.slane %v5412_v53, %v6359_v25  ;;  %v4761_v56 = vrot.slane %v5413_v54, %v6359_v25 }
 0x1c2   : > { %v4762_v58 = vcombine.low %v4754_v55, %v4761_v56 }
 0x1c4   : > { %4932 = vst [vmem:[%s6371_s6 + $0x60] sm:$0xff] %v4762_v58 }
 0x1c5   : > { %v3320_v59 = vpop.f32.mrb[52].mxu0  ;;  %v3361_v60 = vpop.f32.mrb[52].mxu1 }
 0x1c6   : > { %v4000_v61 = vmul.f32 %v6325_v43, %v3320_v59  ;;  %v4002_v62 = vmul.f32 %v6325_v43, %v3361_v60  ;;  %v3322_v63 = vpop.f32.mrb[53].mxu0  ;;  %v3363_v1 = vpop.f32.mrb[53].mxu1 }
 0x1c7   : > { %v4001_v2 = vmul.f32 %v6325_v43, %v3322_v63  ;;  %v4003_v3 = vmul.f32 %v6325_v43, %v3363_v1  ;;  %v3324_v4 = vpop.f32.mrb[54].mxu0  ;;  %v3365_v5 = vpop.f32.mrb[54].mxu1 }
 0x1c8   : > { %v4090_v6 = vadd.f32 %v6337_v52, %v4000_v61  ;;  %v4092_v7 = vadd.f32 %v6337_v52, %v4002_v62  ;;  %v3325_v8 = vpop.f32.mrb[55].mxu0  ;;  %v3366_v9 = vpop.f32.mrb[55].mxu1 }
 0x1c9   : > { %v4091_v10 = vadd.f32 %v6337_v52, %v4001_v2  ;;  %v4093_v11 = vadd.f32 %v6337_v52, %v4003_v3 }
 0x1ca   : > { %vm4174_vm6 = vcmp.ge.f32.partialorder %v4090_v6, 0.0  ;;  %v4258_v12 = vmul.f32 0.01, %v4090_v6  ;;  %vm4176_vm7 = vcmp.ge.f32.partialorder %v4092_v7, 0.0  ;;  %v4260_v13 = vmul.f32 0.01, %v4092_v7 }
 0x1cb   : > { %vm4175_vm8 = vcmp.ge.f32.partialorder %v4091_v10, 0.0  ;;  %v4259_v14 = vmul.f32 0.01, %v4091_v10  ;;  %vm4177_vm9 = vcmp.ge.f32.partialorder %v4093_v11, 0.0  ;;  %v4261_v15 = vmul.f32 0.01, %v4093_v11 }
 0x1cc   : > { %v4342_v45 = vsel %vm4174_vm6, %v4090_v6, %v4258_v12  ;;  %v4344_v57 = vsel %vm4176_vm7, %v4092_v7, %v4260_v13 }
 0x1cd   : > { %v4343_v16 = vsel %vm4175_vm8, %v4091_v10, %v4259_v14  ;;  %v4345_v17 = vsel %vm4177_vm9, %v4093_v11, %v4261_v15 }
 0x1ce   : > { %v5414_v18 = vpack.c.bf16 %v4343_v16, %v4342_v45  ;;  %v5415_v19 = vpack.c.bf16 %v4345_v17, %v4344_v57 }
 0x1d0   : > { %v4771_v20 = vrot.slane %v5414_v18, %v6359_v25  ;;  %v4778_v22 = vrot.slane %v5415_v19, %v6359_v25 }
 0x1d2   : > { %v4779_v23 = vcombine.low %v4771_v20, %v4778_v22 }
 0x1d4   : > { %4933 = vst [vmem:[%s6371_s6 + $0x68] sm:$0xff] %v4779_v23 }
 0x1d5   : > { %v3402_v24 = vpop.f32.mrb[56].mxu0  ;;  %v3443_v26 = vpop.f32.mrb[56].mxu1 }
 0x1d6   : > { %v4004_v27 = vmul.f32 %v6325_v43, %v3402_v24  ;;  %v4006_v28 = vmul.f32 %v6325_v43, %v3443_v26  ;;  %v3404_v29 = vpop.f32.mrb[57].mxu0  ;;  %v3445_v30 = vpop.f32.mrb[57].mxu1 }
 0x1d7   : > { %v4005_v31 = vmul.f32 %v6325_v43, %v3404_v29  ;;  %v4007_v32 = vmul.f32 %v6325_v43, %v3445_v30  ;;  %v3406_v33 = vpop.f32.mrb[58].mxu0  ;;  %v3447_v34 = vpop.f32.mrb[58].mxu1 }
 0x1d8   : > { %v4094_v21 = vadd.f32 %v6337_v52, %v4004_v27  ;;  %v4096_v35 = vadd.f32 %v6337_v52, %v4006_v28  ;;  %v3407_v36 = vpop.f32.mrb[59].mxu0  ;;  %v3448_v37 = vpop.f32.mrb[59].mxu1 }
 0x1d9   : > { %v4095_v38 = vadd.f32 %v6337_v52, %v4005_v31  ;;  %v4097_v39 = vadd.f32 %v6337_v52, %v4007_v32 }
 0x1da   : > { %vm4178_vm10 = vcmp.ge.f32.partialorder %v4094_v21, 0.0  ;;  %v4262_v40 = vmul.f32 0.01, %v4094_v21  ;;  %vm4180_vm11 = vcmp.ge.f32.partialorder %v4096_v35, 0.0  ;;  %v4264_v0 = vmul.f32 0.01, %v4096_v35 }
 0x1db   : > { %vm4179_vm12 = vcmp.ge.f32.partialorder %v4095_v38, 0.0  ;;  %v4263_v41 = vmul.f32 0.01, %v4095_v38  ;;  %vm4181_vm13 = vcmp.ge.f32.partialorder %v4097_v39, 0.0  ;;  %v4265_v42 = vmul.f32 0.01, %v4097_v39 }
 0x1dc   : > { %v4346_v44 = vsel %vm4178_vm10, %v4094_v21, %v4262_v40  ;;  %v4348_v46 = vsel %vm4180_vm11, %v4096_v35, %v4264_v0 }
 0x1dd   : > { %v4347_v47 = vsel %vm4179_vm12, %v4095_v38, %v4263_v41  ;;  %v4349_v48 = vsel %vm4181_vm13, %v4097_v39, %v4265_v42 }
 0x1de   : > { %v5416_v49 = vpack.c.bf16 %v4347_v47, %v4346_v44  ;;  %v5417_v50 = vpack.c.bf16 %v4349_v48, %v4348_v46 }
 0x1e0   : > { %v4788_v51 = vrot.slane %v5416_v49, %v6359_v25  ;;  %v4795_v53 = vrot.slane %v5417_v50, %v6359_v25 }
 0x1e2   : > { %v4796_v54 = vcombine.low %v4788_v51, %v4795_v53 }
 0x1e4   : > { %4934 = vst [vmem:[%s6371_s6 + $0x70] sm:$0xff] %v4796_v54 }
 0x1e5   : > { %v3484_v55 = vpop.f32.mrb[60].mxu0  ;;  %v3525_v56 = vpop.f32.mrb[60].mxu1 }
 0x1e6   : > { %v4008_v58 = vmul.f32 %v6325_v43, %v3484_v55  ;;  %v4010_v59 = vmul.f32 %v6325_v43, %v3525_v56  ;;  %v3486_v60 = vpop.f32.mrb[61].mxu0  ;;  %v3527_v61 = vpop.f32.mrb[61].mxu1 }
 0x1e7   : > { %v4009_v62 = vmul.f32 %v6325_v43, %v3486_v60  ;;  %v4011_v63 = vmul.f32 %v6325_v43, %v3527_v61  ;;  %v3488_v1 = vpop.f32.mrb[62].mxu0  ;;  %v3529_v2 = vpop.f32.mrb[62].mxu1 }
 0x1e8   : > { %v4098_v3 = vadd.f32 %v6337_v52, %v4008_v58  ;;  %v4100_v4 = vadd.f32 %v6337_v52, %v4010_v59  ;;  %v3489_v5 = vpop.f32.mrb[63].mxu0  ;;  %v3530_v6 = vpop.f32.mrb[63].mxu1 }
 0x1e9   : > { %v4099_v7 = vadd.f32 %v6337_v52, %v4009_v62  ;;  %v4101_v8 = vadd.f32 %v6337_v52, %v4011_v63 }
 0x1ea   : > { %vm4182_vm0 = vcmp.ge.f32.partialorder %v4098_v3, 0.0  ;;  %v4266_v9 = vmul.f32 0.01, %v4098_v3  ;;  %vm4184_vm14 = vcmp.ge.f32.partialorder %v4100_v4, 0.0  ;;  %v4268_v10 = vmul.f32 0.01, %v4100_v4 }
 0x1eb   : > { %vm4183_vm15 = vcmp.ge.f32.partialorder %v4099_v7, 0.0  ;;  %v4267_v11 = vmul.f32 0.01, %v4099_v7  ;;  %vm4185_vm1 = vcmp.ge.f32.partialorder %v4101_v8, 0.0  ;;  %v4269_v12 = vmul.f32 0.01, %v4101_v8 }
 0x1ec   : > { %v4350_v13 = vsel %vm4182_vm0, %v4098_v3, %v4266_v9  ;;  %v4352_v14 = vsel %vm4184_vm14, %v4100_v4, %v4268_v10 }
 0x1ed   : > { %v4351_v15 = vsel %vm4183_vm15, %v4099_v7, %v4267_v11  ;;  %v4353_v45 = vsel %vm4185_vm1, %v4101_v8, %v4269_v12 }
 0x1ee   : > { %v5418_v57 = vpack.c.bf16 %v4351_v15, %v4350_v13  ;;  %v5419_v16 = vpack.c.bf16 %v4353_v45, %v4352_v14 }
 0x1f0   : > { %v4805_v17 = vrot.slane %v5418_v57, %v6359_v25  ;;  %v4812_v18 = vrot.slane %v5419_v16, %v6359_v25 }
 0x1f2   : > { %v4813_v19 = vcombine.low %v4805_v17, %v4812_v18 }
 0x1f4   : > { %4935 = vst [vmem:[%s6371_s6 + $0x78] sm:$0xff] %v4813_v19 }
 0x1f5   : > { %v3566_v20 = vpop.f32.mrb[64].mxu0  ;;  %v3607_v22 = vpop.f32.mrb[64].mxu1 }
 0x1f6   : > { %v4012_v23 = vmul.f32 %v6325_v43, %v3566_v20  ;;  %v4014_v24 = vmul.f32 %v6325_v43, %v3607_v22  ;;  %v3568_v26 = vpop.f32.mrb[65].mxu0  ;;  %v3609_v27 = vpop.f32.mrb[65].mxu1 }
 0x1f7   : > { %v4013_v28 = vmul.f32 %v6325_v43, %v3568_v26  ;;  %v4015_v29 = vmul.f32 %v6325_v43, %v3609_v27  ;;  %v3570_v30 = vpop.f32.mrb[66].mxu0  ;;  %v3611_v31 = vpop.f32.mrb[66].mxu1 }
 0x1f8   : > { %v4102_v32 = vadd.f32 %v6337_v52, %v4012_v23  ;;  %v4104_v33 = vadd.f32 %v6337_v52, %v4014_v24  ;;  %v3571_v34 = vpop.f32.mrb[67].mxu0  ;;  %v3612_v21 = vpop.f32.mrb[67].mxu1 }
 0x1f9   : > { %v4103_v35 = vadd.f32 %v6337_v52, %v4013_v28  ;;  %v4105_v36 = vadd.f32 %v6337_v52, %v4015_v29 }
 0x1fa   : > { %vm4186_vm2 = vcmp.ge.f32.partialorder %v4102_v32, 0.0  ;;  %v4270_v37 = vmul.f32 0.01, %v4102_v32  ;;  %vm4188_vm3 = vcmp.ge.f32.partialorder %v4104_v33, 0.0  ;;  %v4272_v38 = vmul.f32 0.01, %v4104_v33 }
 0x1fb   : > { %vm4187_vm4 = vcmp.ge.f32.partialorder %v4103_v35, 0.0  ;;  %v4271_v39 = vmul.f32 0.01, %v4103_v35  ;;  %vm4189_vm5 = vcmp.ge.f32.partialorder %v4105_v36, 0.0  ;;  %v4273_v40 = vmul.f32 0.01, %v4105_v36 }
 0x1fc   : > { %v4354_v0 = vsel %vm4186_vm2, %v4102_v32, %v4270_v37  ;;  %v4356_v41 = vsel %vm4188_vm3, %v4104_v33, %v4272_v38  ;;  %vm4940_vm2 = vcmask 1041408   ;;  %vm4941_vm3 = vcmask 1043458  }
 0x1fd   : > { %v4355_v42 = vsel %vm4187_vm4, %v4103_v35, %v4271_v39  ;;  %v4357_v44 = vsel %vm4189_vm5, %v4105_v36, %v4273_v40  ;;  %vm4943_vm4 = vcmask 1045508  }
 0x1fe   : > { %v5420_v46 = vpack.c.bf16 %v4355_v42, %v4354_v0  ;;  %v5421_v47 = vpack.c.bf16 %v4357_v44, %v4356_v41 }
 0x200   : > { %v4822_v48 = vrot.slane %v5420_v46, %v6359_v25  ;;  %v4829_v49 = vrot.slane %v5421_v47, %v6359_v25 }
 0x202   : > { %v4830_v50 = vcombine.low %v4822_v48, %v4829_v49 }
 0x204   : > { %4936 = vst [vmem:[%s6371_s6 + $0x80] sm:$0xff] %v4830_v50 }
 0x205   : > { %v3648_v51 = vpop.f32.mrb[68].mxu0  ;;  %v3689_v53 = vpop.f32.mrb[68].mxu1 }
 0x206   : > { %v4016_v54 = vmul.f32 %v6325_v43, %v3648_v51  ;;  %v4018_v55 = vmul.f32 %v6325_v43, %v3689_v53  ;;  %v3650_v56 = vpop.f32.mrb[69].mxu0  ;;  %v3691_v58 = vpop.f32.mrb[69].mxu1 }
 0x207   : > { %v4017_v59 = vmul.f32 %v6325_v43, %v3650_v56  ;;  %v4019_v60 = vmul.f32 %v6325_v43, %v3691_v58  ;;  %v3652_v61 = vpop.f32.mrb[70].mxu0  ;;  %v3693_v62 = vpop.f32.mrb[70].mxu1 }
 0x208   : > { %v4106_v63 = vadd.f32 %v6337_v52, %v4016_v54  ;;  %v4108_v1 = vadd.f32 %v6337_v52, %v4018_v55  ;;  %v3653_v2 = vpop.f32.mrb[71].mxu0  ;;  %v3694_v3 = vpop.f32.mrb[71].mxu1 }
 0x209   : > { %v4107_v4 = vadd.f32 %v6337_v52, %v4017_v59  ;;  %v4109_v5 = vadd.f32 %v6337_v52, %v4019_v60 }
 0x20a   : > { %vm4190_vm6 = vcmp.ge.f32.partialorder %v4106_v63, 0.0  ;;  %v4274_v6 = vmul.f32 0.01, %v4106_v63  ;;  %vm4192_vm7 = vcmp.ge.f32.partialorder %v4108_v1, 0.0  ;;  %v4276_v7 = vmul.f32 0.01, %v4108_v1 }
 0x20b   : > { %vm4191_vm8 = vcmp.ge.f32.partialorder %v4107_v4, 0.0  ;;  %v4275_v8 = vmul.f32 0.01, %v4107_v4  ;;  %vm4193_vm9 = vcmp.ge.f32.partialorder %v4109_v5, 0.0  ;;  %v4277_v9 = vmul.f32 0.01, %v4109_v5 }
 0x20c   : > { %v4358_v10 = vsel %vm4190_vm6, %v4106_v63, %v4274_v6  ;;  %v4360_v11 = vsel %vm4192_vm7, %v4108_v1, %v4276_v7 }
 0x20d   : > { %v4359_v12 = vsel %vm4191_vm8, %v4107_v4, %v4275_v8  ;;  %v4361_v13 = vsel %vm4193_vm9, %v4109_v5, %v4277_v9  ;;  %vm4942_vm9 = vmor %vm4941_vm3, %vm4940_vm2 }
 0x20e   : > { %v5422_v14 = vpack.c.bf16 %v4359_v12, %v4358_v10  ;;  %v5423_v15 = vpack.c.bf16 %v4361_v13, %v4360_v11 }
 0x210   : > { %v4839_v45 = vrot.slane %v5422_v14, %v6359_v25  ;;  %v4846_v57 = vrot.slane %v5423_v15, %v6359_v25 }
 0x212   : > { %v4847_v16 = vcombine.low %v4839_v45, %v4846_v57 }
 0x214   : > { %4937 = vst [vmem:[%s6371_s6 + $0x88] sm:$0xff] %v4847_v16 }
 0x215   : > { %v3730_v17 = vpop.f32.mrb[72].mxu0  ;;  %v3771_v18 = vpop.f32.mrb[72].mxu1 }
 0x216   : > { %v4020_v19 = vmul.f32 %v6325_v43, %v3730_v17  ;;  %v4022_v20 = vmul.f32 %v6325_v43, %v3771_v18  ;;  %v3732_v22 = vpop.f32.mrb[73].mxu0  ;;  %v3773_v23 = vpop.f32.mrb[73].mxu1 }
 0x217   : > { %v4021_v24 = vmul.f32 %v6325_v43, %v3732_v22  ;;  %v4023_v26 = vmul.f32 %v6325_v43, %v3773_v23  ;;  %v3734_v27 = vpop.f32.mrb[74].mxu0  ;;  %v3775_v28 = vpop.f32.mrb[74].mxu1 }
 0x218   : > { %v4110_v29 = vadd.f32 %v6337_v52, %v4020_v19  ;;  %v4112_v30 = vadd.f32 %v6337_v52, %v4022_v20  ;;  %v3735_v31 = vpop.f32.mrb[75].mxu0  ;;  %v3776_v32 = vpop.f32.mrb[75].mxu1 }
 0x219   : > { %v4111_v33 = vadd.f32 %v6337_v52, %v4021_v24  ;;  %v4113_v34 = vadd.f32 %v6337_v52, %v4023_v26 }
 0x21a   : > { %vm4194_vm10 = vcmp.ge.f32.partialorder %v4110_v29, 0.0  ;;  %v4278_v21 = vmul.f32 0.01, %v4110_v29  ;;  %vm4196_vm11 = vcmp.ge.f32.partialorder %v4112_v30, 0.0  ;;  %v4280_v35 = vmul.f32 0.01, %v4112_v30 }
 0x21b   : > { %vm4195_vm12 = vcmp.ge.f32.partialorder %v4111_v33, 0.0  ;;  %v4279_v36 = vmul.f32 0.01, %v4111_v33  ;;  %vm4197_vm13 = vcmp.ge.f32.partialorder %v4113_v34, 0.0  ;;  %v4281_v37 = vmul.f32 0.01, %v4113_v34 }
 0x21c   : > { %v4362_v38 = vsel %vm4194_vm10, %v4110_v29, %v4278_v21  ;;  %v4364_v39 = vsel %vm4196_vm11, %v4112_v30, %v4280_v35  ;;  %vm4944_vm10 = vmor %vm4943_vm4, %vm4942_vm9  ;;  %vm4945_vm11 = vcmask 195590  }
 0x21d   : > { %v4363_v40 = vsel %vm4195_vm12, %v4111_v33, %v4279_v36  ;;  %v4365_v0 = vsel %vm4197_vm13, %v4113_v34, %v4281_v37  ;;  %vm4946_vm12 = vmor %vm4945_vm11, %vm4944_vm10 }
 0x21e   : > { %v5424_v41 = vpack.c.bf16 %v4363_v40, %v4362_v38  ;;  %v5425_v42 = vpack.c.bf16 %v4365_v0, %v4364_v39 }
 0x220   : > { %v4856_v44 = vrot.slane %v5424_v41, %v6359_v25  ;;  %v4863_v46 = vrot.slane %v5425_v42, %v6359_v25 }
 0x222   : > { %v4864_v47 = vcombine.low %v4856_v44, %v4863_v46 }
 0x224   : > { %4938 = vst [vmem:[%s6371_s6 + $0x90] sm:$0xff] %v4864_v47 }
 0x225   : > { %v3812_v48 = vpop.f32.mrb[76].mxu0  ;;  %v3853_v49 = vpop.f32.mrb[76].mxu1 }
 0x226   : > { %v4024_v50 = vmul.f32 %v6325_v43, %v3812_v48  ;;  %v4026_v51 = vmul.f32 %v6325_v43, %v3853_v49  ;;  %v3814_v53 = vpop.f32.mrb[77].mxu0  ;;  %v3855_v54 = vpop.f32.mrb[77].mxu1 }
 0x227   : > { %v4025_v55 = vmul.f32 %v6325_v43, %v3814_v53  ;;  %v4027_v56 = vmul.f32 %v6325_v43, %v3855_v54  ;;  %v3816_v58 = vpop.f32.mrb[78].mxu0  ;;  %v3857_v59 = vpop.f32.mrb[78].mxu1 }
 0x228   : > { %v4114_v60 = vadd.f32 %v6337_v52, %v4024_v50  ;;  %v4116_v61 = vadd.f32 %v6337_v52, %v4026_v51  ;;  %v3817_v62 = vpop.f32.mrb[79].mxu0  ;;  %v3858_v63 = vpop.f32.mrb[79].mxu1 }
 0x229   : > { %v4115_v1 = vadd.f32 %v6337_v52, %v4025_v55  ;;  %v4117_v2 = vadd.f32 %v6337_v52, %v4027_v56 }
 0x22a   : > { %vm4198_vm0 = vcmp.ge.f32.partialorder %v4114_v60, 0.0  ;;  %v4282_v3 = vmul.f32 0.01, %v4114_v60  ;;  %vm4200_vm14 = vcmp.ge.f32.partialorder %v4116_v61, 0.0  ;;  %v4284_v4 = vmul.f32 0.01, %v4116_v61 }
 0x22b   : > { %vm4199_vm15 = vcmp.ge.f32.partialorder %v4115_v1, 0.0  ;;  %v4283_v5 = vmul.f32 0.01, %v4115_v1  ;;  %vm4201_vm1 = vcmp.ge.f32.partialorder %v4117_v2, 0.0  ;;  %v4285_v6 = vmul.f32 0.01, %v4117_v2 }
 0x22c   : > { %v4366_v7 = vsel %vm4198_vm0, %v4114_v60, %v4282_v3  ;;  %v4368_v8 = vsel %vm4200_vm14, %v4116_v61, %v4284_v4 }
 0x22d   : > { %v4367_v9 = vsel %vm4199_vm15, %v4115_v1, %v4283_v5  ;;  %v4369_v10 = vsel %vm4201_vm1, %v4117_v2, %v4285_v6 }
 0x22e   : > { %v5426_v11 = vpack.c.bf16 %v4367_v9, %v4366_v7  ;;  %v5427_v12 = vpack.c.bf16 %v4369_v10, %v4368_v8 }
 0x230   : > { %v4873_v13 = vrot.slane %v5426_v11, %v6359_v25  ;;  %v4880_v14 = vrot.slane %v5427_v12, %v6359_v25 }
 0x232   : > { %v4881_v15 = vcombine.low %v4873_v13, %v4880_v14 }
 0x234   : > { %4939 = vst [vmem:[%s6371_s6 + $0x98] sm:$0xff] %v4881_v15 }
 0x235   : > { %v3894_v45 = vpop.f32.mrb[80].mxu0  ;;  %v3935_v57 = vpop.f32.mrb[80].mxu1 }
 0x236   : > { %v4028_v16 = vmul.f32 %v6325_v43, %v3894_v45  ;;  %v4030_v17 = vmul.f32 %v6325_v43, %v3935_v57  ;;  %v3896_v18 = vpop.f32.mrb[81].mxu0  ;;  %v3937_v19 = vpop.f32.mrb[81].mxu1 }
 0x237   : > { %v4029_v20 = vmul.f32 %v6325_v43, %v3896_v18  ;;  %v4031_v22 = vmul.f32 %v6325_v43, %v3937_v19  ;;  %v3898_v23 = vpop.f32.mrb[82].mxu0  ;;  %v3939_v24 = vpop.f32.mrb[82].mxu1 }
 0x238   : > { %v4118_v26 = vadd.f32 %v6337_v52, %v4028_v16  ;;  %v4120_v27 = vadd.f32 %v6337_v52, %v4030_v17  ;;  %v3899_v28 = vpop.f32.mrb[83].mxu0  ;;  %v3940_v29 = vpop.f32.mrb[83].mxu1 }
 0x239   : > { %v4119_v30 = vadd.f32 %v6337_v52, %v4029_v20  ;;  %v4121_v31 = vadd.f32 %v6337_v52, %v4031_v22 }
 0x23a   : > { %vm4202_vm5 = vcmp.ge.f32.partialorder %v4118_v26, 0.0  ;;  %v4286_v32 = vmul.f32 0.01, %v4118_v26  ;;  %vm4204_vm6 = vcmp.ge.f32.partialorder %v4120_v27, 0.0  ;;  %v4288_v33 = vmul.f32 0.01, %v4120_v27 }
 0x23b   : > { %vm4203_vm7 = vcmp.ge.f32.partialorder %v4119_v30, 0.0  ;;  %v4287_v43 = vmul.f32 0.01, %v4119_v30  ;;  %vm4205_vm8 = vcmp.ge.f32.partialorder %v4121_v31, 0.0  ;;  %v4289_v34 = vmul.f32 0.01, %v4121_v31 }
 0x23c   : > { %v4370_v21 = vsel %vm4202_vm5, %v4118_v26, %v4286_v32  ;;  %v4372_v35 = vsel %vm4204_vm6, %v4120_v27, %v4288_v33 }
 0x23d   : > { %v4371_v36 = vsel %vm4203_vm7, %v4119_v30, %v4287_v43  ;;  %v4373_v37 = vsel %vm4205_vm8, %v4121_v31, %v4289_v34 }
 0x23e   : > { %v5428_v38 = vpack.c.bf16 %v4371_v36, %v4370_v21  ;;  %v5429_v39 = vpack.c.bf16 %v4373_v37, %v4372_v35 }
 0x240   : > { %v4890_v52 = vrot.slane %v5428_v38, %v6359_v25  ;;  %v4897_v40 = vrot.slane %v5429_v39, %v6359_v25 }
 0x242   : > { %v4898_v0 = vcombine.low %v4890_v52, %v4897_v40 }
 0x244   : > { %4947 = vst.msk [vmem:[%s6371_s6 + $0xa0] sm:$0xff] %vm4946_vm12, %v4898_v0 }
 0x245 PF: > { %s14_s15 = sadd.s32 1, %s5957_s15  }
 0x246   : > { %p11_p4 = scmp.ge.s32.totalorder %s14_s15, 4  }
 0x248   :  { %13 = sbr.rel (!%p11_p4) target bundleno = 1 (0x1), region = 66 }

// kernel: netd_forward.5
= control target key start
LH: loop header
LB: loop body
LE: loop exit
PB: predicated region body
PF: predicated region fallthrough
CT: control target
= control target key end

     0   :  { %s1481_s15 = smov 0   ;;  %s1666_s0 = inlined_call_operand.vmem [shape: bf16[2,256,1000], index: 0, kind: input, shape index: {}]   ;;  %s1667_s1 = inlined_call_operand.vmem [shape: bf16[8,256], index: 1, kind: input, shape index: {}]   ;;  %s1668_s2 = inlined_call_operand.vmem [shape: f32[8,1], index: 2, kind: input, shape index: {}]   ;;  %s1669_s3 = inlined_call_operand.vmem [shape: f32[8,1], index: 3, kind: input, shape index: {}]   ;;  %s1670_s4 = inlined_call_operand.vmem [shape: bf16[2,8,1000], index: 4, kind: output, shape index: {}]  }
   0x1 LB: > { %s1284_s16 = sadd.s32 4294967295, %s1453_s15   ;;  %p1288_p0 = scmp.ge.s32.totalorder %s1453_s15, 1  ;;  %s1453_s15 = sphi %s1481_s15, %s14_s15  }
   0x2   : > { %p162_p1 = scmp.lt.s32.totalorder %s1453_s15, 3 }
   0x4   : > { %p163_p2 = pnand %p1288_p0, %p162_p1 }
   0x5   : > { %p188_p3 = scmp.lt.s32.totalorder (!%p163_p2), %s1284_s16, 1  ;;  %v1492_v0 = vld [vmem:[%s1667_s1] sm:$0xff] (!%p163_p2)  ;;  %v1455_v28 = vmov (!%p163_p2), 0   ;;  %vm1225_vm4 = vcmask (!%p163_p2), 1043456   ;;  %vm1226_vm6 = vcmask (!%p163_p2), 850948  }
   0x6   : > { %166 = sbr.rel (%p163_p2) target bundleno = 371 (0x173), region = 36  ;;  %v1496_v1 = vcombine.high (!%p163_p2), %v1492_v0, %v1492_v0  ;;  %1444 = vset.pattern.permute.xlu0 (!%p163_p2), %v1455_v28  ;;  %vm1227_vm10 = vmor (!%p163_p2), %vm1226_vm6, %vm1225_vm4 }
   0x8   : > { %1006 = vmatprep.mubr.bf16.mxu0 (!%p163_p2), %v1496_v1  ;;  %1047 = vmatprep.mubr.bf16.mxu1 (!%p163_p2), %v1496_v1 }
   0xd   : > { %s1672_s16 = smov (!%p188_p3, %s1284_s16), 1 }
   0xe   : > { %s1429_s19 = sshll.u32 %s1672_s16, 10  ;;  %s1430_s27 = sshll.u32 %s1672_s16, 5 }
   0xf   : > { %s1506_s22 = scalar_lea.vmem %s1666_s0, %s1429_s19  ;;  %s1656_s30 = scalar_lea.vmem %s1670_s4, %s1430_s27 }
  0x10   : > { %v199_v2 = vld [vmem:[%s1506_s22] sm:$0xff]  ;;  %v200_v4 = vld [vmem:[%s1506_s22 + $0x8] sm:$0xff] }
  0x11   : > { %v203_v3 = vld [vmem:[%s1506_s22 + $0x20] sm:$0xff]  ;;  %v204_v6 = vld [vmem:[%s1506_s22 + $0x28] sm:$0xff] }
  0x12   : > { %v1296_v5 = vcombine.high %v199_v2, %v203_v3  ;;  %v1295_v7 = vcombine.low %v199_v2, %v203_v3  ;;  %v207_v8 = vld [vmem:[%s1506_s22 + $0x40] sm:$0xff]  ;;  %v1298_v10 = vcombine.high %v200_v4, %v204_v6  ;;  %v1297_v11 = vcombine.low %v200_v4, %v204_v6  ;;  %v208_v13 = vld [vmem:[%s1506_s22 + $0x48] sm:$0xff] }
  0x13   : > { %v211_v9 = vld [vmem:[%s1506_s22 + $0x60] sm:$0xff]  ;;  %v212_v14 = vld [vmem:[%s1506_s22 + $0x68] sm:$0xff] }
  0x14   : > { %v1304_v12 = vcombine.high %v207_v8, %v211_v9  ;;  %v215_v15 = vld [vmem:[%s1506_s22 + $0x80] sm:$0xff]  ;;  %974 = vmatprep.subr.bf16.mxu0 %v1296_v5  ;;  %v1306_v16 = vcombine.high %v208_v13, %v212_v14  ;;  %v216_v18 = vld [vmem:[%s1506_s22 + $0x88] sm:$0xff]  ;;  %1015 = vmatprep.subr.bf16.mxu1 %v1298_v10  ;;  %v1303_v20 = vcombine.low %v207_v8, %v211_v9 }
  0x15   : > { %v219_v17 = vld [vmem:[%s1506_s22 + $0xa0] sm:$0xff]  ;;  %v220_v19 = vld [vmem:[%s1506_s22 + $0xa8] sm:$0xff]  ;;  %975 = vmatpush1.bf16.msra.mxu0 %v1295_v7  ;;  %1016 = vmatpush1.bf16.msra.mxu1 %v1297_v11  ;;  %v1305_v21 = vcombine.low %v208_v13, %v212_v14 }
  0x16   : > { %976 = vmatprep.subr.bf16.mxu0 %v1304_v12  ;;  %v1312_v22 = vcombine.high %v215_v15, %v219_v17  ;;  %1017 = vmatprep.subr.bf16.mxu1 %v1306_v16  ;;  %v1314_v23 = vcombine.high %v216_v18, %v220_v19  ;;  %v223_v24 = vld [vmem:[%s1506_s22 + $0xc0] sm:$0xff]  ;;  %v224_v26 = vld [vmem:[%s1506_s22 + $0xc8] sm:$0xff]  ;;  %v1311_v29 = vcombine.low %v215_v15, %v219_v17 }
  0x17   : > { %v227_v25 = vld [vmem:[%s1506_s22 + $0xe0] sm:$0xff]  ;;  %v228_v27 = vld [vmem:[%s1506_s22 + $0xe8] sm:$0xff]  ;;  %v1313_v30 = vcombine.low %v216_v18, %v220_v19 }
  0x18   : > { %v1320_v31 = vcombine.high %v223_v24, %v227_v25  ;;  %v1322_v32 = vcombine.high %v224_v26, %v228_v27  ;;  %v231_v33 = vld [vmem:[%s1506_s22 + $0x100] sm:$0xff]  ;;  %v232_v35 = vld [vmem:[%s1506_s22 + $0x108] sm:$0xff]  ;;  %v1319_v37 = vcombine.low %v223_v24, %v227_v25  ;;  %v1321_v38 = vcombine.low %v224_v26, %v228_v27 }
  0x19   : > { %977 = vmatpush1.bf16.msra.mxu0 %v1303_v20  ;;  %1018 = vmatpush1.bf16.msra.mxu1 %v1305_v21  ;;  %v235_v34 = vld [vmem:[%s1506_s22 + $0x120] sm:$0xff]  ;;  %v236_v36 = vld [vmem:[%s1506_s22 + $0x128] sm:$0xff] }
  0x1a   : > { %978 = vmatprep.subr.bf16.mxu0 %v1312_v22  ;;  %1019 = vmatprep.subr.bf16.mxu1 %v1314_v23  ;;  %v1328_v39 = vcombine.high %v231_v33, %v235_v34  ;;  %v1330_v40 = vcombine.high %v232_v35, %v236_v36  ;;  %v239_v41 = vld [vmem:[%s1506_s22 + $0x140] sm:$0xff]  ;;  %v240_v43 = vld [vmem:[%s1506_s22 + $0x148] sm:$0xff]  ;;  %v1327_v45 = vcombine.low %v231_v33, %v235_v34 }
  0x1b   : > { %v243_v42 = vld [vmem:[%s1506_s22 + $0x160] sm:$0xff]  ;;  %v244_v44 = vld [vmem:[%s1506_s22 + $0x168] sm:$0xff]  ;;  %v1329_v46 = vcombine.low %v232_v35, %v236_v36 }
  0x1c   : > { %v1336_v47 = vcombine.high %v239_v41, %v243_v42  ;;  %v1338_v48 = vcombine.high %v240_v43, %v244_v44  ;;  %v247_v49 = vld [vmem:[%s1506_s22 + $0x180] sm:$0xff]  ;;  %v248_v51 = vld [vmem:[%s1506_s22 + $0x188] sm:$0xff]  ;;  %v1335_v53 = vcombine.low %v239_v41, %v243_v42  ;;  %v1337_v54 = vcombine.low %v240_v43, %v244_v44 }
  0x1d   : > { %979 = vmatpush1.bf16.msra.mxu0 %v1311_v29  ;;  %1020 = vmatpush1.bf16.msra.mxu1 %v1313_v30  ;;  %v251_v50 = vld [vmem:[%s1506_s22 + $0x1a0] sm:$0xff]  ;;  %v252_v52 = vld [vmem:[%s1506_s22 + $0x1a8] sm:$0xff] }
  0x1e   : > { %980 = vmatprep.subr.bf16.mxu0 %v1320_v31  ;;  %1021 = vmatprep.subr.bf16.mxu1 %v1322_v32  ;;  %v1344_v55 = vcombine.high %v247_v49, %v251_v50  ;;  %v1346_v56 = vcombine.high %v248_v51, %v252_v52  ;;  %v255_v57 = vld [vmem:[%s1506_s22 + $0x1c0] sm:$0xff]  ;;  %v256_v59 = vld [vmem:[%s1506_s22 + $0x1c8] sm:$0xff]  ;;  %v1343_v61 = vcombine.low %v247_v49, %v251_v50 }
  0x1f   : > { %v259_v58 = vld [vmem:[%s1506_s22 + $0x1e0] sm:$0xff]  ;;  %v260_v60 = vld [vmem:[%s1506_s22 + $0x1e8] sm:$0xff]  ;;  %v1345_v62 = vcombine.low %v248_v51, %v252_v52 }
  0x20   : > { %v1352_v63 = vcombine.high %v255_v57, %v259_v58  ;;  %v1354_v2 = vcombine.high %v256_v59, %v260_v60  ;;  %v263_v3 = vld [vmem:[%s1506_s22 + $0x200] sm:$0xff]  ;;  %v264_v5 = vld [vmem:[%s1506_s22 + $0x208] sm:$0xff]  ;;  %v1351_v7 = vcombine.low %v255_v57, %v259_v58  ;;  %v1353_v8 = vcombine.low %v256_v59, %v260_v60 }
  0x21   : > { %981 = vmatpush1.bf16.msra.mxu0 %v1319_v37  ;;  %1022 = vmatpush1.bf16.msra.mxu1 %v1321_v38  ;;  %v267_v4 = vld [vmem:[%s1506_s22 + $0x220] sm:$0xff]  ;;  %v268_v6 = vld [vmem:[%s1506_s22 + $0x228] sm:$0xff] }
  0x22   : > { %982 = vmatprep.subr.bf16.mxu0 %v1328_v39  ;;  %1023 = vmatprep.subr.bf16.mxu1 %v1330_v40  ;;  %v1360_v9 = vcombine.high %v263_v3, %v267_v4  ;;  %v1362_v10 = vcombine.high %v264_v5, %v268_v6  ;;  %v271_v11 = vld [vmem:[%s1506_s22 + $0x240] sm:$0xff]  ;;  %v272_v13 = vld [vmem:[%s1506_s22 + $0x248] sm:$0xff]  ;;  %v1359_v15 = vcombine.low %v263_v3, %v267_v4 }
  0x23   : > { %v275_v12 = vld [vmem:[%s1506_s22 + $0x260] sm:$0xff]  ;;  %v276_v14 = vld [vmem:[%s1506_s22 + $0x268] sm:$0xff]  ;;  %v1361_v16 = vcombine.low %v264_v5, %v268_v6 }
  0x24   : > { %v1368_v17 = vcombine.high %v271_v11, %v275_v12  ;;  %v1370_v18 = vcombine.high %v272_v13, %v276_v14  ;;  %v279_v19 = vld [vmem:[%s1506_s22 + $0x280] sm:$0xff]  ;;  %v280_v21 = vld [vmem:[%s1506_s22 + $0x288] sm:$0xff]  ;;  %v1367_v23 = vcombine.low %v271_v11, %v275_v12  ;;  %v1369_v24 = vcombine.low %v272_v13, %v276_v14 }
  0x25   : > { %983 = vmatpush1.bf16.msra.mxu0 %v1327_v45  ;;  %1024 = vmatpush1.bf16.msra.mxu1 %v1329_v46  ;;  %v283_v20 = vld [vmem:[%s1506_s22 + $0x2a0] sm:$0xff]  ;;  %v284_v22 = vld [vmem:[%s1506_s22 + $0x2a8] sm:$0xff] }
  0x26   : > { %984 = vmatprep.subr.bf16.mxu0 %v1336_v47  ;;  %1025 = vmatprep.subr.bf16.mxu1 %v1338_v48  ;;  %v1376_v25 = vcombine.high %v279_v19, %v283_v20  ;;  %v1378_v26 = vcombine.high %v280_v21, %v284_v22  ;;  %v287_v27 = vld [vmem:[%s1506_s22 + $0x2c0] sm:$0xff]  ;;  %v288_v29 = vld [vmem:[%s1506_s22 + $0x2c8] sm:$0xff]  ;;  %v1375_v31 = vcombine.low %v279_v19, %v283_v20  ;;  %v214_v19 = vld [vmem:[%s1506_s22 + $0x78] sm:$0xff] }
  0x27   : > { %v291_v28 = vld [vmem:[%s1506_s22 + $0x2e0] sm:$0xff]  ;;  %v292_v30 = vld [vmem:[%s1506_s22 + $0x2e8] sm:$0xff]  ;;  %v1377_v32 = vcombine.low %v280_v21, %v284_v22 }
  0x28   : > { %v1384_v33 = vcombine.high %v287_v27, %v291_v28  ;;  %v1386_v34 = vcombine.high %v288_v29, %v292_v30  ;;  %v295_v35 = vld [vmem:[%s1506_s22 + $0x300] sm:$0xff]  ;;  %v296_v38 = vld [vmem:[%s1506_s22 + $0x308] sm:$0xff]  ;;  %v1383_v40 = vcombine.low %v287_v27, %v291_v28  ;;  %v1385_v42 = vcombine.low %v288_v29, %v292_v30 }
  0x29   : > { %985 = vmatpush1.bf16.msra.mxu0 %v1335_v53  ;;  %1026 = vmatpush1.bf16.msra.mxu1 %v1337_v54  ;;  %v299_v36 = vld [vmem:[%s1506_s22 + $0x320] sm:$0xff]  ;;  %v300_v39 = vld [vmem:[%s1506_s22 + $0x328] sm:$0xff] }
  0x2a   : > { %986 = vmatprep.subr.bf16.mxu0 %v1344_v55  ;;  %1027 = vmatprep.subr.bf16.mxu1 %v1346_v56  ;;  %v1138_v37 = vld [vmem:[%s1668_s2] sm:$0xff]  ;;  %v1392_v43 = vcombine.high %v295_v35, %v299_v36  ;;  %v1394_v44 = vcombine.high %v296_v38, %v300_v39  ;;  %v304_v47 = vld [vmem:[%s1506_s22 + $0x348] sm:$0xff]  ;;  %v1391_v49 = vcombine.low %v295_v35, %v299_v36 }
  0x2b   : > { %1141 = vperm.xlu0 %1444, %v1138_v37   ;;  %v1152_v41 = vld [vmem:[%s1669_s3] sm:$0xff]  ;;  %v308_v48 = vld [vmem:[%s1506_s22 + $0x368] sm:$0xff]  ;;  %v1393_v50 = vcombine.low %v296_v38, %v300_v39  ;;  %v233_v39 = vld [vmem:[%s1506_s22 + $0x110] sm:$0xff] }
  0x2c   : > { %v303_v45 = vld [vmem:[%s1506_s22 + $0x340] sm:$0xff]  ;;  %v1402_v52 = vcombine.high %v304_v47, %v308_v48  ;;  %v312_v55 = vld [vmem:[%s1506_s22 + $0x388] sm:$0xff]  ;;  %v1401_v58 = vcombine.low %v304_v47, %v308_v48  ;;  %v245_v47 = vld [vmem:[%s1506_s22 + $0x170] sm:$0xff] }
  0x2d   : > { %987 = vmatpush1.bf16.msra.mxu0 %v1343_v61  ;;  %1028 = vmatpush1.bf16.msra.mxu1 %v1345_v62  ;;  %v307_v46 = vld [vmem:[%s1506_s22 + $0x360] sm:$0xff]  ;;  %v316_v56 = vld [vmem:[%s1506_s22 + $0x3a8] sm:$0xff]  ;;  %v242_v48 = vld [vmem:[%s1506_s22 + $0x158] sm:$0xff] }
  0x2e   : > { %988 = vmatprep.subr.bf16.mxu0 %v1352_v63  ;;  %1029 = vmatprep.subr.bf16.mxu1 %v1354_v2  ;;  %v1400_v51 = vcombine.high %v303_v45, %v307_v46  ;;  %v311_v53 = vld [vmem:[%s1506_s22 + $0x380] sm:$0xff]  ;;  %v1399_v57 = vcombine.low %v303_v45, %v307_v46  ;;  %v1410_v60 = vcombine.high %v312_v55, %v316_v56  ;;  %v320_v63 = vld [vmem:[%s1506_s22 + $0x3c8] sm:$0xff]  ;;  %v241_v46 = vld [vmem:[%s1506_s22 + $0x150] sm:$0xff] }
  0x2f   : > { %1155 = vperm.xlu0 %1444, %v1152_v41   ;;  %v315_v54 = vld [vmem:[%s1506_s22 + $0x3a0] sm:$0xff]  ;;  %v324_v2 = vld [vmem:[%s1506_s22 + $0x3e8] sm:$0xff]  ;;  %v1409_v4 = vcombine.low %v312_v55, %v316_v56  ;;  %v234_v41 = vld [vmem:[%s1506_s22 + $0x118] sm:$0xff] }
  0x30   : > { %v1408_v59 = vcombine.high %v311_v53, %v315_v54  ;;  %v319_v61 = vld [vmem:[%s1506_s22 + $0x3c0] sm:$0xff]  ;;  %v1407_v3 = vcombine.low %v311_v53, %v315_v54  ;;  %v1418_v6 = vcombine.high %v320_v63, %v324_v2  ;;  %v1417_v12 = vcombine.low %v320_v63, %v324_v2  ;;  %v249_v54 = vld [vmem:[%s1506_s22 + $0x190] sm:$0xff]  ;;  %v250_v56 = vld [vmem:[%s1506_s22 + $0x198] sm:$0xff] }
  0x31   : > { %989 = vmatpush1.bf16.msra.mxu0 %v1351_v7  ;;  %1030 = vmatpush1.bf16.msra.mxu1 %v1353_v8  ;;  %v323_v62 = vld [vmem:[%s1506_s22 + $0x3e0] sm:$0xff]  ;;  %v201_v7 = vld [vmem:[%s1506_s22 + $0x10] sm:$0xff]  ;;  %v258_v2 = vld [vmem:[%s1506_s22 + $0x1d8] sm:$0xff] }
  0x32   : > { %990 = vmatprep.subr.bf16.mxu0 %v1360_v9  ;;  %1031 = vmatprep.subr.bf16.mxu1 %v1362_v10  ;;  %v1416_v5 = vcombine.high %v319_v61, %v323_v62  ;;  %v205_v8 = vld [vmem:[%s1506_s22 + $0x30] sm:$0xff]  ;;  %v202_v9 = vld [vmem:[%s1506_s22 + $0x18] sm:$0xff]  ;;  %v1415_v11 = vcombine.low %v319_v61, %v323_v62 }
  0x33   : > { %v206_v10 = vld [vmem:[%s1506_s22 + $0x38] sm:$0xff]  ;;  %v1300_v13 = vcombine.high %v201_v7, %v205_v8  ;;  %v1299_v20 = vcombine.low %v201_v7, %v205_v8  ;;  %v253_v55 = vld [vmem:[%s1506_s22 + $0x1b0] sm:$0xff] }
  0x34   : > { %v1302_v14 = vcombine.high %v202_v9, %v206_v10  ;;  %v1301_v21 = vcombine.low %v202_v9, %v206_v10  ;;  %v257_v62 = vld [vmem:[%s1506_s22 + $0x1d0] sm:$0xff]  ;;  %v266_v10 = vld [vmem:[%s1506_s22 + $0x218] sm:$0xff] }
  0x35   : > { %991 = vmatpush1.bf16.msra.mxu0 %v1359_v15  ;;  %1032 = vmatpush1.bf16.msra.mxu1 %v1361_v16  ;;  %v209_v15 = vld [vmem:[%s1506_s22 + $0x50] sm:$0xff] }
  0x36   : > { %992 = vmatprep.subr.bf16.mxu0 %v1368_v17  ;;  %1033 = vmatprep.subr.bf16.mxu1 %v1370_v18  ;;  %v213_v16 = vld [vmem:[%s1506_s22 + $0x70] sm:$0xff]  ;;  %v1586_v17 = vcombine.low %v1492_v0, %v1492_v0  ;;  %v210_v18 = vld [vmem:[%s1506_s22 + $0x58] sm:$0xff] }
  0x37   : > { %v1308_v22 = vcombine.high %v209_v15, %v213_v16  ;;  %v218_v0 = vld [vmem:[%s1506_s22 + $0x98] sm:$0xff]  ;;  %v1307_v27 = vcombine.low %v209_v15, %v213_v16  ;;  %v1309_v28 = vcombine.low %v210_v18, %v214_v19  ;;  %v261_v63 = vld [vmem:[%s1506_s22 + $0x1f0] sm:$0xff] }
  0x38   : > { %v265_v8 = vld [vmem:[%s1506_s22 + $0x210] sm:$0xff] }
  0x39   : > { %993 = vmatpush1.bf16.msra.mxu0 %v1367_v23  ;;  %1034 = vmatpush1.bf16.msra.mxu1 %v1369_v24  ;;  %v1310_v23 = vcombine.high %v210_v18, %v214_v19  ;;  %v217_v24 = vld [vmem:[%s1506_s22 + $0x90] sm:$0xff]  ;;  %v274_v19 = vld [vmem:[%s1506_s22 + $0x258] sm:$0xff] }
  0x3a   : > { %994 = vmatprep.subr.bf16.mxu0 %v1376_v25  ;;  %1035 = vmatprep.subr.bf16.mxu1 %v1378_v26  ;;  %v221_v25 = vld [vmem:[%s1506_s22 + $0xb0] sm:$0xff]  ;;  %v222_v26 = vld [vmem:[%s1506_s22 + $0xb8] sm:$0xff] }
  0x3b   : > { %v1316_v29 = vcombine.high %v217_v24, %v221_v25  ;;  %v1318_v30 = vcombine.high %v218_v0, %v222_v26  ;;  %v1315_v35 = vcombine.low %v217_v24, %v221_v25  ;;  %v1317_v36 = vcombine.low %v218_v0, %v222_v26  ;;  %v269_v9 = vld [vmem:[%s1506_s22 + $0x230] sm:$0xff]  ;;  %v282_v26 = vld [vmem:[%s1506_s22 + $0x298] sm:$0xff] }
  0x3c   : > { %v273_v16 = vld [vmem:[%s1506_s22 + $0x250] sm:$0xff] }
  0x3d   : > { %995 = vmatpush1.bf16.msra.mxu0 %v1375_v31  ;;  %1036 = vmatpush1.bf16.msra.mxu1 %v1377_v32  ;;  %v225_v31 = vld [vmem:[%s1506_s22 + $0xd0] sm:$0xff] }
  0x3e   : > { %996 = vmatprep.subr.bf16.mxu0 %v1384_v33  ;;  %1037 = vmatprep.subr.bf16.mxu1 %v1386_v34  ;;  %v229_v32 = vld [vmem:[%s1506_s22 + $0xf0] sm:$0xff]  ;;  %v226_v33 = vld [vmem:[%s1506_s22 + $0xd8] sm:$0xff] }
  0x3f   : > { %v230_v34 = vld [vmem:[%s1506_s22 + $0xf8] sm:$0xff]  ;;  %v1324_v37 = vcombine.high %v225_v31, %v229_v32  ;;  %v277_v18 = vld [vmem:[%s1506_s22 + $0x270] sm:$0xff] }
  0x40   : > { %v1326_v38 = vcombine.high %v226_v33, %v230_v34  ;;  %v281_v25 = vld [vmem:[%s1506_s22 + $0x290] sm:$0xff] }
  0x41   : > { %997 = vmatpush1.bf16.msra.mxu0 %v1383_v40  ;;  %1038 = vmatpush1.bf16.msra.mxu1 %v1385_v42  ;;  %v237_v40 = vld [vmem:[%s1506_s22 + $0x130] sm:$0xff]  ;;  %v238_v42 = vld [vmem:[%s1506_s22 + $0x138] sm:$0xff] }
  0x42   : > { %998 = vmatprep.subr.bf16.mxu0 %v1392_v43  ;;  %1039 = vmatprep.subr.bf16.mxu1 %v1394_v44  ;;  %v1323_v43 = vcombine.low %v225_v31, %v229_v32  ;;  %v1332_v44 = vcombine.high %v233_v39, %v237_v40  ;;  %v1334_v45 = vcombine.high %v234_v41, %v238_v42  ;;  %v285_v0 = vld [vmem:[%s1506_s22 + $0x2b0] sm:$0xff] }
  0x43   : > { %v289_v32 = vld [vmem:[%s1506_s22 + $0x2d0] sm:$0xff] }
  0x45   : > { %999 = vmatpush1.bf16.msra.mxu0 %v1391_v49  ;;  %1040 = vmatpush1.bf16.msra.mxu1 %v1393_v50  ;;  %v246_v49 = vld [vmem:[%s1506_s22 + $0x178] sm:$0xff]  ;;  %v1331_v50 = vcombine.low %v233_v39, %v237_v40  ;;  %v297_v40 = vld [vmem:[%s1506_s22 + $0x310] sm:$0xff] }
  0x46   : > { %1000 = vmatprep.subr.bf16.mxu0 %v1400_v51  ;;  %1041 = vmatprep.subr.bf16.mxu1 %v1402_v52  ;;  %v1333_v51 = vcombine.low %v234_v41, %v238_v42  ;;  %v1340_v52 = vcombine.high %v241_v46, %v245_v47  ;;  %v1342_v53 = vcombine.high %v242_v48, %v246_v49  ;;  %v301_v41 = vld [vmem:[%s1506_s22 + $0x330] sm:$0xff]  ;;  %v298_v42 = vld [vmem:[%s1506_s22 + $0x318] sm:$0xff] }
  0x49   : > { %1001 = vmatpush1.bf16.msra.mxu0 %v1399_v57  ;;  %1042 = vmatpush1.bf16.msra.mxu1 %v1401_v58  ;;  %v254_v57 = vld [vmem:[%s1506_s22 + $0x1b8] sm:$0xff]  ;;  %v1339_v58 = vcombine.low %v241_v46, %v245_v47  ;;  %v305_v47 = vld [vmem:[%s1506_s22 + $0x350] sm:$0xff] }
  0x4a   : > { %1002 = vmatprep.subr.bf16.mxu0 %v1408_v59  ;;  %1043 = vmatprep.subr.bf16.mxu1 %v1410_v60  ;;  %v1341_v59 = vcombine.low %v242_v48, %v246_v49  ;;  %v1348_v60 = vcombine.high %v249_v54, %v253_v55  ;;  %v1350_v61 = vcombine.high %v250_v56, %v254_v57  ;;  %v309_v48 = vld [vmem:[%s1506_s22 + $0x370] sm:$0xff]  ;;  %v306_v49 = vld [vmem:[%s1506_s22 + $0x358] sm:$0xff] }
  0x4d   : > { %1003 = vmatpush1.bf16.msra.mxu0 %v1407_v3  ;;  %1044 = vmatpush1.bf16.msra.mxu1 %v1409_v4  ;;  %v262_v3 = vld [vmem:[%s1506_s22 + $0x1f8] sm:$0xff]  ;;  %v1347_v4 = vcombine.low %v249_v54, %v253_v55  ;;  %v313_v55 = vld [vmem:[%s1506_s22 + $0x390] sm:$0xff] }
  0x4e   : > { %1004 = vmatprep.subr.bf16.mxu0 %v1416_v5  ;;  %1045 = vmatprep.subr.bf16.mxu1 %v1418_v6  ;;  %v1349_v5 = vcombine.low %v250_v56, %v254_v57  ;;  %v1356_v6 = vcombine.high %v257_v62, %v261_v63  ;;  %v1358_v7 = vcombine.high %v258_v2, %v262_v3  ;;  %v317_v56 = vld [vmem:[%s1506_s22 + $0x3b0] sm:$0xff]  ;;  %v314_v57 = vld [vmem:[%s1506_s22 + $0x398] sm:$0xff] }
  0x51   : > { %1005 = vmatpush1.bf16.msra.mxu0 %v1415_v11  ;;  %1046 = vmatpush1.bf16.msra.mxu1 %v1417_v12  ;;  %v270_v11 = vld [vmem:[%s1506_s22 + $0x238] sm:$0xff]  ;;  %v1355_v12 = vcombine.low %v257_v62, %v261_v63  ;;  %v321_v63 = vld [vmem:[%s1506_s22 + $0x3d0] sm:$0xff] }
  0x52   : > { %1056 = vmatprep.subr.bf16.mxu0 %v1300_v13  ;;  %1097 = vmatprep.subr.bf16.mxu1 %v1302_v14  ;;  %v1357_v13 = vcombine.low %v258_v2, %v262_v3  ;;  %v1364_v14 = vcombine.high %v265_v8, %v269_v9  ;;  %v1366_v15 = vcombine.high %v266_v10, %v270_v11  ;;  %v325_v2 = vld [vmem:[%s1506_s22 + $0x3f0] sm:$0xff]  ;;  %v322_v3 = vld [vmem:[%s1506_s22 + $0x3d8] sm:$0xff] }
  0x54   : > { %1007 = vmatmul.mubr.bf16.vlgmr.msra.gmra.mrb[0].mxu0 %v1586_v17  ;;  %1048 = vmatmul.mubr.bf16.vlgmr.msra.gmra.mrb[0].mxu1 %v1586_v17 }
  0x55   : > { %1057 = vmatpush1.bf16.msra.mxu0 %v1299_v20  ;;  %1098 = vmatpush1.bf16.msra.mxu1 %v1301_v21  ;;  %v278_v20 = vld [vmem:[%s1506_s22 + $0x278] sm:$0xff]  ;;  %v1363_v21 = vcombine.low %v265_v8, %v269_v9  ;;  %v1419_v9 = vcombine.low %v321_v63, %v325_v2 }
  0x56   : > { %1058 = vmatprep.subr.bf16.mxu0 %v1308_v22  ;;  %1099 = vmatprep.subr.bf16.mxu1 %v1310_v23  ;;  %v1365_v22 = vcombine.low %v266_v10, %v270_v11  ;;  %v1372_v23 = vcombine.high %v273_v16, %v277_v18  ;;  %v1374_v24 = vcombine.high %v274_v19, %v278_v20 }
  0x57   : > { %1088 = vmatprep.mubr.bf16.mxu0 %v1496_v1  ;;  %1129 = vmatprep.mubr.bf16.mxu1 %v1496_v1  ;;  %v1325_v1 = vcombine.low %v226_v33, %v230_v34  ;;  %v293_v33 = vld [vmem:[%s1506_s22 + $0x2f0] sm:$0xff]  ;;  %v290_v34 = vld [vmem:[%s1506_s22 + $0x2d8] sm:$0xff] }
  0x59   : > { %1059 = vmatpush1.bf16.msra.mxu0 %v1307_v27  ;;  %1100 = vmatpush1.bf16.msra.mxu1 %v1309_v28  ;;  %v286_v27 = vld [vmem:[%s1506_s22 + $0x2b8] sm:$0xff]  ;;  %v1371_v28 = vcombine.low %v273_v16, %v277_v18 }
  0x5a   : > { %1060 = vmatprep.subr.bf16.mxu0 %v1316_v29  ;;  %1101 = vmatprep.subr.bf16.mxu1 %v1318_v30  ;;  %v1373_v29 = vcombine.low %v274_v19, %v278_v20  ;;  %v1380_v30 = vcombine.high %v281_v25, %v285_v0  ;;  %v1382_v31 = vcombine.high %v282_v26, %v286_v27 }
  0x5d   : > { %1061 = vmatpush1.bf16.msra.mxu0 %v1315_v35  ;;  %1102 = vmatpush1.bf16.msra.mxu1 %v1317_v36  ;;  %v294_v35 = vld [vmem:[%s1506_s22 + $0x2f8] sm:$0xff]  ;;  %v1379_v36 = vcombine.low %v281_v25, %v285_v0 }
  0x5e   : > { %1062 = vmatprep.subr.bf16.mxu0 %v1324_v37  ;;  %1103 = vmatprep.subr.bf16.mxu1 %v1326_v38  ;;  %v1381_v37 = vcombine.low %v282_v26, %v286_v27  ;;  %v1388_v38 = vcombine.high %v289_v32, %v293_v33  ;;  %v1390_v39 = vcombine.high %v290_v34, %v294_v35 }
  0x61   : > { %1063 = vmatpush1.bf16.msra.mxu0 %v1323_v43  ;;  %1104 = vmatpush1.bf16.msra.mxu1 %v1325_v1  ;;  %v302_v43 = vld [vmem:[%s1506_s22 + $0x338] sm:$0xff]  ;;  %v1387_v1 = vcombine.low %v289_v32, %v293_v33 }
  0x62   : > { %1064 = vmatprep.subr.bf16.mxu0 %v1332_v44  ;;  %1105 = vmatprep.subr.bf16.mxu1 %v1334_v45  ;;  %v1389_v44 = vcombine.low %v290_v34, %v294_v35  ;;  %v1396_v45 = vcombine.high %v297_v40, %v301_v41  ;;  %v1398_v46 = vcombine.high %v298_v42, %v302_v43 }
  0x65   : > { %1065 = vmatpush1.bf16.msra.mxu0 %v1331_v50  ;;  %1106 = vmatpush1.bf16.msra.mxu1 %v1333_v51  ;;  %v310_v50 = vld [vmem:[%s1506_s22 + $0x378] sm:$0xff]  ;;  %v1395_v51 = vcombine.low %v297_v40, %v301_v41 }
  0x66   : > { %1066 = vmatprep.subr.bf16.mxu0 %v1340_v52  ;;  %1107 = vmatprep.subr.bf16.mxu1 %v1342_v53  ;;  %v1397_v52 = vcombine.low %v298_v42, %v302_v43  ;;  %v1404_v53 = vcombine.high %v305_v47, %v309_v48  ;;  %v1406_v54 = vcombine.high %v306_v49, %v310_v50 }
  0x69   : > { %1067 = vmatpush1.bf16.msra.mxu0 %v1339_v58  ;;  %1108 = vmatpush1.bf16.msra.mxu1 %v1341_v59  ;;  %v318_v58 = vld [vmem:[%s1506_s22 + $0x3b8] sm:$0xff]  ;;  %v1403_v59 = vcombine.low %v305_v47, %v309_v48 }
  0x6a   : > { %1068 = vmatprep.subr.bf16.mxu0 %v1348_v60  ;;  %1109 = vmatprep.subr.bf16.mxu1 %v1350_v61  ;;  %v1405_v60 = vcombine.low %v306_v49, %v310_v50  ;;  %v1412_v61 = vcombine.high %v313_v55, %v317_v56  ;;  %v1414_v62 = vcombine.high %v314_v57, %v318_v58 }
  0x6d   : > { %1069 = vmatpush1.bf16.msra.mxu0 %v1347_v4  ;;  %1110 = vmatpush1.bf16.msra.mxu1 %v1349_v5  ;;  %v326_v4 = vld [vmem:[%s1506_s22 + $0x3f8] sm:$0xff]  ;;  %v1411_v5 = vcombine.low %v313_v55, %v317_v56 }
  0x6e   : > { %1070 = vmatprep.subr.bf16.mxu0 %v1356_v6  ;;  %1111 = vmatprep.subr.bf16.mxu1 %v1358_v7  ;;  %v1413_v6 = vcombine.low %v314_v57, %v318_v58  ;;  %v1420_v7 = vcombine.high %v321_v63, %v325_v2  ;;  %v1422_v8 = vcombine.high %v322_v3, %v326_v4 }
  0x6f   : > { %v1421_v10 = vcombine.low %v322_v3, %v326_v4 }
  0x71   : > { %1071 = vmatpush1.bf16.msra.mxu0 %v1355_v12  ;;  %1112 = vmatpush1.bf16.msra.mxu1 %v1357_v13 }
  0x72   : > { %1072 = vmatprep.subr.bf16.mxu0 %v1364_v14  ;;  %1113 = vmatprep.subr.bf16.mxu1 %v1366_v15 }
  0x75   : > { %1073 = vmatpush1.bf16.msra.mxu0 %v1363_v21  ;;  %1114 = vmatpush1.bf16.msra.mxu1 %v1365_v22 }
  0x76   : > { %1074 = vmatprep.subr.bf16.mxu0 %v1372_v23  ;;  %1115 = vmatprep.subr.bf16.mxu1 %v1374_v24 }
  0x79   : > { %1075 = vmatpush1.bf16.msra.mxu0 %v1371_v28  ;;  %1116 = vmatpush1.bf16.msra.mxu1 %v1373_v29 }
  0x7a   : > { %1076 = vmatprep.subr.bf16.mxu0 %v1380_v30  ;;  %1117 = vmatprep.subr.bf16.mxu1 %v1382_v31 }
  0x7d   : > { %1077 = vmatpush1.bf16.msra.mxu0 %v1379_v36  ;;  %1118 = vmatpush1.bf16.msra.mxu1 %v1381_v37 }
  0x7e   : > { %1078 = vmatprep.subr.bf16.mxu0 %v1388_v38  ;;  %1119 = vmatprep.subr.bf16.mxu1 %v1390_v39 }
  0x81   : > { %1079 = vmatpush1.bf16.msra.mxu0 %v1387_v1  ;;  %1120 = vmatpush1.bf16.msra.mxu1 %v1389_v44 }
  0x82   : > { %1080 = vmatprep.subr.bf16.mxu0 %v1396_v45  ;;  %1121 = vmatprep.subr.bf16.mxu1 %v1398_v46 }
  0x85   : > { %1081 = vmatpush1.bf16.msra.mxu0 %v1395_v51  ;;  %1122 = vmatpush1.bf16.msra.mxu1 %v1397_v52 }
  0x86   : > { %1082 = vmatprep.subr.bf16.mxu0 %v1404_v53  ;;  %1123 = vmatprep.subr.bf16.mxu1 %v1406_v54 }
  0x89   : > { %1083 = vmatpush1.bf16.msra.mxu0 %v1403_v59  ;;  %1124 = vmatpush1.bf16.msra.mxu1 %v1405_v60 }
  0x8a   : > { %1084 = vmatprep.subr.bf16.mxu0 %v1412_v61  ;;  %1125 = vmatprep.subr.bf16.mxu1 %v1414_v62 }
  0x8d   : > { %1085 = vmatpush1.bf16.msra.mxu0 %v1411_v5  ;;  %1126 = vmatpush1.bf16.msra.mxu1 %v1413_v6 }
  0x8e   : > { %1086 = vmatprep.subr.bf16.mxu0 %v1420_v7  ;;  %1127 = vmatprep.subr.bf16.mxu1 %v1422_v8 }
  0x91   : > { %1087 = vmatpush1.bf16.msra.mxu0 %v1419_v9  ;;  %1128 = vmatpush1.bf16.msra.mxu1 %v1421_v10 }
  0x94   : > { %1089 = vmatmul.mubr.bf16.vlgmr.msra.gmra.mrb[4].mxu0 %v1586_v17  ;;  %1130 = vmatmul.mubr.bf16.vlgmr.msra.gmra.mrb[4].mxu1 %v1586_v17 }
  0xaa   : > { %v1142_v11 = vpop.permute.xlu0 %1141 }
  0xae   : > { %v1156_v13 = vpop.permute.xlu0 %1155 }
 0x127   : > { %v1008_v12 = vpop.f32.mrb[0].mxu0  ;;  %v1049_v15 = vpop.f32.mrb[0].mxu1 }
 0x128   : > { %v1144_v14 = vmul.f32 %v1142_v11, %v1008_v12  ;;  %v1010_v16 = vpop.f32.mrb[1].mxu0  ;;  %v1146_v18 = vmul.f32 %v1142_v11, %v1049_v15  ;;  %v1051_v20 = vpop.f32.mrb[1].mxu1 }
 0x129   : > { %v1145_v19 = vmul.f32 %v1142_v11, %v1010_v16  ;;  %v1012_v21 = vpop.f32.mrb[2].mxu0  ;;  %v1147_v22 = vmul.f32 %v1142_v11, %v1051_v20  ;;  %v1053_v24 = vpop.f32.mrb[2].mxu1 }
 0x12a   : > { %v1158_v23 = vadd.f32 %v1156_v13, %v1144_v14  ;;  %v1013_v25 = vpop.f32.mrb[3].mxu0  ;;  %v1160_v26 = vadd.f32 %v1156_v13, %v1146_v18  ;;  %v1054_v27 = vpop.f32.mrb[3].mxu1 }
 0x12b   : > { %v1159_v0 = vadd.f32 %v1156_v13, %v1145_v19  ;;  %v1161_v28 = vadd.f32 %v1156_v13, %v1147_v22 }
 0x12c   : > { %vm1166_vm0 = vcmp.ge.f32.partialorder %v1158_v23, 0.0  ;;  %v1174_v17 = vmul.f32 0.01, %v1158_v23  ;;  %vm1168_vm2 = vcmp.ge.f32.partialorder %v1160_v26, 0.0  ;;  %v1176_v30 = vmul.f32 0.01, %v1160_v26 }
 0x12d   : > { %vm1167_vm1 = vcmp.ge.f32.partialorder %v1159_v0, 0.0  ;;  %v1175_v29 = vmul.f32 0.01, %v1159_v0  ;;  %vm1169_vm3 = vcmp.ge.f32.partialorder %v1161_v28, 0.0  ;;  %v1177_v31 = vmul.f32 0.01, %v1161_v28 }
 0x12e   : > { %v1182_v32 = vsel %vm1166_vm0, %v1158_v23, %v1174_v17  ;;  %v1184_v34 = vsel %vm1168_vm2, %v1160_v26, %v1176_v30 }
 0x12f   : > { %v1183_v33 = vsel %vm1167_vm1, %v1159_v0, %v1175_v29  ;;  %v1185_v35 = vsel %vm1169_vm3, %v1161_v28, %v1177_v31 }
 0x130   : > { %v1431_v36 = vpack.c.bf16 %v1183_v33, %v1182_v32  ;;  %v1432_v37 = vpack.c.bf16 %v1185_v35, %v1184_v34 }
 0x132   : > { %1222 = vst [vmem:[%s1656_s30] sm:$0xff] %v1431_v36  ;;  %1223 = vst [vmem:[%s1656_s30 + $0x8] sm:$0xff] %v1432_v37 }
 0x167   : > { %v1090_v38 = vpop.f32.mrb[4].mxu0  ;;  %v1131_v40 = vpop.f32.mrb[4].mxu1 }
 0x168   : > { %v1148_v39 = vmul.f32 %v1142_v11, %v1090_v38  ;;  %v1092_v41 = vpop.f32.mrb[5].mxu0  ;;  %v1150_v42 = vmul.f32 %v1142_v11, %v1131_v40  ;;  %v1133_v1 = vpop.f32.mrb[5].mxu1 }
 0x169   : > { %v1149_v43 = vmul.f32 %v1142_v11, %v1092_v41  ;;  %v1094_v44 = vpop.f32.mrb[6].mxu0  ;;  %v1151_v46 = vmul.f32 %v1142_v11, %v1133_v1  ;;  %v1135_v47 = vpop.f32.mrb[6].mxu1 }
 0x16a   : > { %v1162_v45 = vadd.f32 %v1156_v13, %v1148_v39  ;;  %v1095_v48 = vpop.f32.mrb[7].mxu0  ;;  %v1164_v49 = vadd.f32 %v1156_v13, %v1150_v42  ;;  %v1136_v51 = vpop.f32.mrb[7].mxu1 }
 0x16b   : > { %v1163_v50 = vadd.f32 %v1156_v13, %v1149_v43  ;;  %v1165_v53 = vadd.f32 %v1156_v13, %v1151_v46 }
 0x16c   : > { %vm1170_vm5 = vcmp.ge.f32.partialorder %v1162_v45, 0.0  ;;  %v1178_v52 = vmul.f32 0.01, %v1162_v45  ;;  %vm1172_vm7 = vcmp.ge.f32.partialorder %v1164_v49, 0.0  ;;  %v1180_v54 = vmul.f32 0.01, %v1164_v49 }
 0x16d   : > { %vm1171_vm8 = vcmp.ge.f32.partialorder %v1163_v50, 0.0  ;;  %v1179_v55 = vmul.f32 0.01, %v1163_v50  ;;  %vm1173_vm9 = vcmp.ge.f32.partialorder %v1165_v53, 0.0  ;;  %v1181_v57 = vmul.f32 0.01, %v1165_v53 }
 0x16e   : > { %v1186_v56 = vsel %vm1170_vm5, %v1162_v45, %v1178_v52  ;;  %v1188_v58 = vsel %vm1172_vm7, %v1164_v49, %v1180_v54 }
 0x16f   : > { %v1187_v59 = vsel %vm1171_vm8, %v1163_v50, %v1179_v55  ;;  %v1189_v61 = vsel %vm1173_vm9, %v1165_v53, %v1181_v57 }
 0x170   : > { %v1433_v60 = vpack.c.bf16 %v1187_v59, %v1186_v56  ;;  %v1434_v62 = vpack.c.bf16 %v1189_v61, %v1188_v58 }
 0x172   : > { %1224 = vst [vmem:[%s1656_s30 + $0x10] sm:$0xff] %v1433_v60  ;;  %1228 = vst.msk [vmem:[%s1656_s30 + $0x18] sm:$0xff] %vm1227_vm10, %v1434_v62 }
 0x173 PF: > { %s14_s15 = sadd.s32 1, %s1453_s15  }
 0x174   : > { %p11_p4 = scmp.ge.s32.totalorder %s14_s15, 4  }
 0x176   :  { %13 = sbr.rel (!%p11_p4) target bundleno = 1 (0x1), region = 66 }

// kernel: netd_forward.6
= control target key start
LH: loop header
LB: loop body
LE: loop exit
PB: predicated region body
PF: predicated region fallthrough
CT: control target
= control target key end

     0   :  { %s841_s15 = smov 0   ;;  %s920_s0 = inlined_call_operand.vmem [shape: bf16[2,512,125], index: 0, kind: input, shape index: {}]   ;;  %s921_s1 = inlined_call_operand.vmem [shape: bf16[16,512], index: 1, kind: input, shape index: {}]   ;;  %s922_s2 = inlined_call_operand.vmem [shape: f32[16,1], index: 2, kind: input, shape index: {}]   ;;  %s923_s3 = inlined_call_operand.vmem [shape: f32[16,1], index: 3, kind: input, shape index: {}]   ;;  %s924_s4 = inlined_call_operand.vmem [shape: bf16[2,16,125], index: 4, kind: output, shape index: {}]  }
   0x1 LB: > { %s661_s16 = sadd.s32 4294967295, %s813_s15   ;;  %p665_p0 = scmp.ge.s32.totalorder %s813_s15, 1  ;;  %s813_s15 = sphi %s841_s15, %s14_s15  }
   0x2   : > { %p162_p1 = scmp.lt.s32.totalorder %s813_s15, 3 }
   0x4   : > { %p163_p2 = pnand %p665_p0, %p162_p1 }
   0x5   : > { %p188_p3 = scmp.lt.s32.totalorder (!%p163_p2), %s661_s16, 1  ;;  %v803_v0 = vld [vmem:[%s921_s1 + $0x4] ss:$16 sps:$4 sm:$0xff] (!%p163_p2)   ;;  %v815_v1 = vmov (!%p163_p2), 0   ;;  %v806_v2 = vld [vmem:[%s921_s1 + $0xc] ss:$16 sps:$4 sm:$0xff] (!%p163_p2)  }
   0x6   : > { %166 = sbr.rel (%p163_p2) target bundleno = 280 (0x118), region = 36  ;;  %767 = vset.pattern.permute.xlu0 (!%p163_p2), %v815_v1  ;;  %768 = vset.pattern.permute.xlu1 (!%p163_p2), %v815_v1  ;;  %v561_v3 = vld [vmem:[%s922_s2] sm:$0xff] (!%p163_p2)  ;;  %v562_v5 = vld [vmem:[%s922_s2 + $0x8] sm:$0xff] (!%p163_p2)  ;;  %vm603_vm1 = vcmask (!%p163_p2), 1018880  }
   0x7   : > { %511 = vmatprep.mubr.bf16.mxu0 (!%p163_p2), %v803_v0  ;;  %565 = vperm.xlu0 (!%p163_p2), %767, %v561_v3   ;;  %v575_v4 = vld [vmem:[%s923_s3] sm:$0xff] (!%p163_p2)  ;;  %v576_v6 = vld [vmem:[%s923_s3 + $0x8] sm:$0xff] (!%p163_p2) }
   0x8   : > { %552 = vmatprep.mubr.bf16.mxu1 (!%p163_p2), %v806_v2  ;;  %579 = vperm.xlu1 (!%p163_p2), %768, %v575_v4   ;;  %v801_v37 = vld [vmem:[%s921_s1] ss:$16 sps:$4 sm:$0xff] (!%p163_p2)   ;;  %v804_v40 = vld [vmem:[%s921_s1 + $0x8] ss:$16 sps:$4 sm:$0xff] (!%p163_p2)  }
   0xb   : > { %570 = vperm.xlu0 (!%p163_p2), %767, %v562_v5  }
   0xc   : > { %584 = vperm.xlu1 (!%p163_p2), %768, %v576_v6  }
   0xd   : > { %s926_s16 = smov (!%p188_p3, %s661_s16), 1 }
   0xe   : > { %s710_s25 = sshll.u32 %s926_s16, 8  ;;  %s711_s11 = sshll.u32 %s926_s16, 3 }
   0xf   : > { %s870_s30 = scalar_lea.vmem %s920_s0, %s710_s25  ;;  %s197_s14 = scalar_lea.vmem %s924_s4, %s711_s11 }
  0x10   : > { %v769_v7 = vld [vmem:[%s870_s30 + $0x40] sm:$0xff]   ;;  %v773_v11 = vld [vmem:[%s870_s30 + $0x48] sm:$0xff]   ;;  %v777_v15 = vld [vmem:[%s870_s30 + $0x50] sm:$0xff]  }
  0x11   : > { %v770_v8 = vld [vmem:[%s870_s30 + $0xc0] sm:$0xff]   ;;  %714 = vmatprep.subr.bf16.mxu0 %v769_v7  ;;  %v774_v12 = vld [vmem:[%s870_s30 + $0xc8] sm:$0xff]   ;;  %v778_v16 = vld [vmem:[%s870_s30 + $0xd0] sm:$0xff]  }
  0x12   : > { %v771_v9 = vld [vmem:[%s870_s30] sm:$0xff]   ;;  %736 = vmatprep.subr.bf16.mxu1 %v770_v8  ;;  %v775_v13 = vld [vmem:[%s870_s30 + $0x8] sm:$0xff]   ;;  %v779_v17 = vld [vmem:[%s870_s30 + $0x10] sm:$0xff]  }
  0x13   : > { %v772_v10 = vld [vmem:[%s870_s30 + $0x80] sm:$0xff]   ;;  %715 = vmatpush3.bf16.msra.mxu0 %v771_v9  ;;  %v776_v14 = vld [vmem:[%s870_s30 + $0x88] sm:$0xff]   ;;  %v780_v18 = vld [vmem:[%s870_s30 + $0x90] sm:$0xff]  }
  0x14   : > { %737 = vmatpush3.bf16.msra.mxu1 %v772_v10  ;;  %716 = vmatprep.subr.bf16.mxu0 %v773_v11  ;;  %v781_v19 = vld [vmem:[%s870_s30 + $0x58] sm:$0xff]   ;;  %v785_v23 = vld [vmem:[%s870_s30 + $0x60] sm:$0xff]   ;;  %v789_v27 = vld [vmem:[%s870_s30 + $0x68] sm:$0xff]  }
  0x15   : > { %738 = vmatprep.subr.bf16.mxu1 %v774_v12  ;;  %v782_v20 = vld [vmem:[%s870_s30 + $0xd8] sm:$0xff]   ;;  %v786_v24 = vld [vmem:[%s870_s30 + $0xe0] sm:$0xff]   ;;  %v790_v28 = vld [vmem:[%s870_s30 + $0xe8] sm:$0xff]  }
  0x16   : > { %v783_v21 = vld [vmem:[%s870_s30 + $0x18] sm:$0xff]   ;;  %v787_v25 = vld [vmem:[%s870_s30 + $0x20] sm:$0xff]   ;;  %v791_v29 = vld [vmem:[%s870_s30 + $0x28] sm:$0xff]  }
  0x17   : > { %717 = vmatpush3.bf16.msra.mxu0 %v775_v13  ;;  %v784_v22 = vld [vmem:[%s870_s30 + $0x98] sm:$0xff]   ;;  %v788_v26 = vld [vmem:[%s870_s30 + $0xa0] sm:$0xff]   ;;  %v792_v30 = vld [vmem:[%s870_s30 + $0xa8] sm:$0xff]  }
  0x18   : > { %739 = vmatpush3.bf16.msra.mxu1 %v776_v14  ;;  %718 = vmatprep.subr.bf16.mxu0 %v777_v15  ;;  %v793_v31 = vld [vmem:[%s870_s30 + $0x70] sm:$0xff]   ;;  %v797_v35 = vld [vmem:[%s870_s30 + $0x78] sm:$0xff]  }
  0x19   : > { %740 = vmatprep.subr.bf16.mxu1 %v778_v16  ;;  %v794_v32 = vld [vmem:[%s870_s30 + $0xf0] sm:$0xff]   ;;  %v798_v36 = vld [vmem:[%s870_s30 + $0xf8] sm:$0xff]  }
  0x1a   : > { %v795_v33 = vld [vmem:[%s870_s30 + $0x30] sm:$0xff]   ;;  %v799_v38 = vld [vmem:[%s870_s30 + $0x38] sm:$0xff]  }
  0x1b   : > { %719 = vmatpush3.bf16.msra.mxu0 %v779_v17  ;;  %v796_v34 = vld [vmem:[%s870_s30 + $0xb0] sm:$0xff]   ;;  %v800_v39 = vld [vmem:[%s870_s30 + $0xb8] sm:$0xff]  }
  0x1c   : > { %741 = vmatpush3.bf16.msra.mxu1 %v780_v18  ;;  %720 = vmatprep.subr.bf16.mxu0 %v781_v19 }
  0x1d   : > { %742 = vmatprep.subr.bf16.mxu1 %v782_v20 }
  0x1f   : > { %721 = vmatpush3.bf16.msra.mxu0 %v783_v21 }
  0x20   : > { %743 = vmatpush3.bf16.msra.mxu1 %v784_v22  ;;  %722 = vmatprep.subr.bf16.mxu0 %v785_v23 }
  0x21   : > { %744 = vmatprep.subr.bf16.mxu1 %v786_v24 }
  0x23   : > { %723 = vmatpush3.bf16.msra.mxu0 %v787_v25 }
  0x24   : > { %745 = vmatpush3.bf16.msra.mxu1 %v788_v26  ;;  %724 = vmatprep.subr.bf16.mxu0 %v789_v27 }
  0x25   : > { %746 = vmatprep.subr.bf16.mxu1 %v790_v28 }
  0x27   : > { %725 = vmatpush3.bf16.msra.mxu0 %v791_v29 }
  0x28   : > { %747 = vmatpush3.bf16.msra.mxu1 %v792_v30  ;;  %726 = vmatprep.subr.bf16.mxu0 %v793_v31 }
  0x29   : > { %748 = vmatprep.subr.bf16.mxu1 %v794_v32 }
  0x2b   : > { %727 = vmatpush3.bf16.msra.mxu0 %v795_v33 }
  0x2c   : > { %749 = vmatpush3.bf16.msra.mxu1 %v796_v34  ;;  %728 = vmatprep.subr.bf16.mxu0 %v797_v35 }
  0x2d   : > { %750 = vmatprep.subr.bf16.mxu1 %v798_v36 }
  0x2f   : > { %729 = vmatpush3.bf16.msra.mxu0 %v799_v38 }
  0x30   : > { %751 = vmatpush3.bf16.msra.mxu1 %v800_v39 }
  0x32   : > { %512 = vmatmul.mubr.bf16.vlgmr.msra.gmra.mrb[0].mxu0 %v801_v37 }
  0x33   : > { %553 = vmatmul.mubr.bf16.vlgmr.msra.gmra.mrb[0].mxu1 %v804_v40 }
  0x86   : > { %v566_v41 = vpop.permute.xlu0 %565 }
  0x87   : > { %v580_v51 = vpop.permute.xlu1 %579 }
  0x8a   : > { %v571_v58 = vpop.permute.xlu0 %570 }
  0x8b   : > { %v585_v61 = vpop.permute.xlu1 %584 }
 0x105   : > { %v730_v42 = vpop.f32.mrb[0].mxu0 }
 0x106   : > { %v752_v43 = vpop.f32.mrb[0].mxu1  ;;  %v731_v44 = vpop.f32.mrb[1].mxu0 }
 0x107   : > { %v732_v45 = vadd.f32 %v731_v44, %v730_v42  ;;  %v753_v46 = vpop.f32.mrb[1].mxu1  ;;  %v733_v47 = vpop.f32.mrb[2].mxu0 }
 0x108   : > { %v754_v48 = vadd.f32 %v753_v46, %v752_v43  ;;  %v755_v49 = vpop.f32.mrb[2].mxu1  ;;  %v734_v50 = vpop.f32.mrb[3].mxu0 }
 0x109   : > { %v735_v52 = vadd.f32 %v734_v50, %v733_v47  ;;  %v756_v53 = vpop.f32.mrb[3].mxu1 }
 0x10a   : > { %v555_v54 = vadd.f32 %v754_v48, %v732_v45  ;;  %v757_v55 = vadd.f32 %v756_v53, %v755_v49 }
 0x10c   : > { %v573_v56 = vmul.f32 %v566_v41, %v555_v54  ;;  %v558_v57 = vadd.f32 %v757_v55, %v735_v52 }
 0x10e   : > { %v587_v59 = vadd.f32 %v580_v51, %v573_v56  ;;  %v574_v60 = vmul.f32 %v571_v58, %v558_v57 }
 0x110   : > { %vm589_vm0 = vcmp.ge.f32.partialorder %v587_v59, 0.0  ;;  %v591_v62 = vmul.f32 0.01, %v587_v59  ;;  %v588_v63 = vadd.f32 %v585_v61, %v574_v60 }
 0x112   : > { %v593_v0 = vsel %vm589_vm0, %v587_v59, %v591_v62  ;;  %vm590_vm2 = vcmp.ge.f32.partialorder %v588_v63, 0.0  ;;  %v592_v1 = vmul.f32 0.01, %v588_v63 }
 0x113   : > { %v712_v2 = vpack.c.bf16 %v593_v0, %v593_v0 }
 0x114   : > { %v594_v3 = vsel %vm590_vm2, %v588_v63, %v592_v1 }
 0x115   : > { %v713_v4 = vpack.c.bf16 %v594_v3, %v594_v3  ;;  %604 = vst.msk [vmem:[%s197_s14] sm:$0xf] %vm603_vm1, %v712_v2 }
 0x117   : > { %605 = vst.msk [vmem:[%s197_s14 + $0x4] sm:$0xf] %vm603_vm1, %v713_v4 }
 0x118 PF: > { %s14_s15 = sadd.s32 1, %s813_s15  }
 0x119   : > { %p11_p4 = scmp.ge.s32.totalorder %s14_s15, 4  }
 0x11b   :  { %13 = sbr.rel (!%p11_p4) target bundleno = 1 (0x1), region = 66 }

// kernel: netd_forward.7
= control target key start
LH: loop header
LB: loop body
LE: loop exit
PB: predicated region body
PF: predicated region fallthrough
CT: control target
= control target key end

     0   :  { %s913_s18 = smov 0   ;;  %s1037_s0 = inlined_call_operand.vmem [shape: bf16[2,432,8], index: 0, kind: input, shape index: {}]   ;;  %s1038_s1 = inlined_call_operand.vmem [shape: bf16[32,432], index: 1, kind: input, shape index: {}]   ;;  %s1039_s2 = inlined_call_operand.vmem [shape: f32[32,1], index: 2, kind: input, shape index: {}]   ;;  %s1040_s3 = inlined_call_operand.vmem [shape: f32[32,1], index: 3, kind: input, shape index: {}]   ;;  %s1041_s4 = inlined_call_operand.vmem [shape: bf16[32,8], index: 4, kind: input, shape index: {}]   ;;  %s1042_s5 = inlined_call_operand.vmem [shape: f32[2,1,1], index: 5, kind: output, shape index: {}]  }
   0x1 LB: > { %s741_s19 = sadd.s32 4294967295, %s880_s18   ;;  %p745_p0 = scmp.ge.s32.totalorder %s880_s18, 1  ;;  %s880_s18 = sphi %s913_s18, %s15_s18  }
   0x2   : > { %p187_p1 = scmp.lt.s32.totalorder %s880_s18, 3 }
   0x4   : > { %p188_p2 = pnand %p745_p0, %p187_p1 }
   0x5   : > { %p213_p3 = scmp.lt.s32.totalorder (!%p188_p2), %s741_s19, 1  ;;  %v882_v0 = vmov (!%p188_p2), 0   ;;  %v862_v1 = vld [vmem:[%s1038_s1 + $0x4] ss:$16 sps:$4 sm:$0xff] (!%p188_p2)   ;;  %vm484_vm0 = vcmask (!%p188_p2), 392192   ;;  %v592_v5 = vld [vmem:[%s1039_s2 + $0x18] sm:$0xff] (!%p188_p2) }
   0x6   : > { %191 = sbr.rel (%p188_p2) target bundleno = 459 (0x1cb), region = 40  ;;  %540 = vmatprep.subr.bf16.mxu1 (!%p188_p2), %v882_v0  ;;  %834 = vset.pattern.permute.xlu1 (!%p188_p2), %v882_v0  ;;  %v867_v2 = vld [vmem:[%s1038_s1 + $0xc] ss:$16 sps:$4 sm:$0xff] (!%p188_p2)   ;;  %v591_v3 = vld [vmem:[%s1039_s2 + $0x10] sm:$0xff] (!%p188_p2)  ;;  %v589_v4 = vld [vmem:[%s1039_s2] sm:$0xff] (!%p188_p2)  ;;  %vm675_vm5 = vcmask (!%p188_p2), 64512  }
   0x7   : > { %833 = vset.pattern.permute.xlu0 (!%p188_p2), %v882_v0  ;;  %523 = vmatprep.mubr.bf16.mxu0 (!%p188_p2), %v862_v1  ;;  %v590_v6 = vld [vmem:[%s1039_s2 + $0x8] sm:$0xff] (!%p188_p2)  ;;  %v617_v31 = vld [vmem:[%s1040_s3] sm:$0xff] (!%p188_p2)  ;;  %v620_v32 = vld [vmem:[%s1040_s3 + $0x18] sm:$0xff] (!%p188_p2)  ;;  %vm692_vm6 = vcmask (!%p188_p2), 0  }
   0x8   : > { %782 = vmatprep.mubr.msk.bf16.mxu1 (!%p188_p2), %vm484_vm0, %v867_v2  ;;  %605 = vperm.xlu1 (!%p188_p2), %834, %v591_v3   ;;  %v618_v11 = vld [vmem:[%s1040_s3 + $0x8] sm:$0xff] (!%p188_p2)  ;;  %v619_v34 = vld [vmem:[%s1040_s3 + $0x10] sm:$0xff] (!%p188_p2) }
   0x9   : > { %595 = vperm.xlu0 (!%p188_p2), %833, %v589_v4   ;;  %v860_v36 = vld [vmem:[%s1038_s1] ss:$16 sps:$4 sm:$0xff] (!%p188_p2)   ;;  %v868_v37 = vld [vmem:[%s1038_s1 + $0x24] ss:$16 sps:$4 sm:$0xff] (!%p188_p2)   ;;  %v865_v41 = vld [vmem:[%s1038_s1 + $0x8] ss:$16 sps:$4 sm:$0xff] (!%p188_p2)  }
   0xa   : > { %v870_v40 = vld [vmem:[%s1038_s1 + $0x20] ss:$16 sps:$4 sm:$0xff] (!%p188_p2)   ;;  %v871_v42 = vld [vmem:[%s1038_s1 + $0x2c] ss:$16 sps:$4 sm:$0xff] (!%p188_p2)   ;;  %v873_v43 = vld [vmem:[%s1038_s1 + $0x28] ss:$16 sps:$4 sm:$0xff] (!%p188_p2)  }
   0xc   : > { %610 = vperm.xlu1 (!%p188_p2), %834, %v592_v5  }
   0xd   : > { %s1044_s19 = smov (!%p213_p3, %s741_s19), 1  ;;  %600 = vperm.xlu0 %833, %v590_v6  }
   0xe   : > { %s823_s24 = smul.u32 216, %s1044_s19  ;;  %s220_s14 = scalar_lea.vmem %s1042_s5, %s1044_s19 }
  0x10   : > { %s943_s6 = scalar_lea.vmem %s1037_s0, %s823_s24  ;;  %628 = vperm.xlu1 %834, %v618_v11  }
  0x11   : > { %v835_v7 = vld [vmem:[%s943_s6 + $0x80] sm:$0xff]   ;;  %v836_v8 = vld [vmem:[%s943_s6 + $0x88] sm:$0xff]   ;;  %v839_v12 = vld [vmem:[%s943_s6 + $0x90] sm:$0xff]   ;;  %623 = vperm.xlu0 %833, %v617_v31  }
  0x12   : > { %541 = vmatpush1.bf16.msra.mxu1 %v835_v7  ;;  %v837_v9 = vld [vmem:[%s943_s6 + $0x40] sm:$0xff]   ;;  %v840_v13 = vld [vmem:[%s943_s6 + $0x48] sm:$0xff]   ;;  %v843_v15 = vld [vmem:[%s943_s6 + $0x50] sm:$0xff]  }
  0x13   : > { %542 = vmatprep.subr.bf16.mxu1 %v882_v0  ;;  %v838_v10 = vld [vmem:[%s943_s6] sm:$0xff]   ;;  %795 = vmatprep.subr.bf16.mxu0 %v837_v9  ;;  %v841_v14 = vld [vmem:[%s943_s6 + $0x8] sm:$0xff]   ;;  %v844_v16 = vld [vmem:[%s943_s6 + $0x10] sm:$0xff]  }
  0x14   : > { %796 = vmatpush3.bf16.msra.mxu0 %v838_v10  ;;  %v842_v17 = vld [vmem:[%s943_s6 + $0x98] sm:$0xff]   ;;  %v845_v19 = vld [vmem:[%s943_s6 + $0xa0] sm:$0xff]   ;;  %v848_v22 = vld [vmem:[%s943_s6 + $0xa8] sm:$0xff]   ;;  %638 = vperm.xlu1 %834, %v620_v32  }
  0x15   : > { %797 = vmatprep.subr.bf16.mxu0 %v840_v13  ;;  %v846_v18 = vld [vmem:[%s943_s6 + $0x58] sm:$0xff]   ;;  %v849_v21 = vld [vmem:[%s943_s6 + $0x60] sm:$0xff]   ;;  %v852_v24 = vld [vmem:[%s943_s6 + $0x68] sm:$0xff]   ;;  %633 = vperm.xlu0 %833, %v619_v34  }
  0x16   : > { %543 = vmatpush1.bf16.msra.mxu1 %v836_v8  ;;  %v847_v20 = vld [vmem:[%s943_s6 + $0x18] sm:$0xff]   ;;  %v850_v23 = vld [vmem:[%s943_s6 + $0x20] sm:$0xff]   ;;  %v851_v25 = vld [vmem:[%s943_s6 + $0xb0] sm:$0xff]  }
  0x17   : > { %544 = vmatprep.subr.bf16.mxu1 %v882_v0  ;;  %v853_v26 = vld [vmem:[%s943_s6 + $0x28] sm:$0xff]   ;;  %v855_v27 = vld [vmem:[%s943_s6 + $0x70] sm:$0xff]   ;;  %v854_v28 = vld [vmem:[%s943_s6 + $0xb8] sm:$0xff]  }
  0x18   : > { %798 = vmatpush3.bf16.msra.mxu0 %v841_v14  ;;  %v856_v29 = vld [vmem:[%s943_s6 + $0x30] sm:$0xff]   ;;  %v858_v30 = vld [vmem:[%s943_s6 + $0x78] sm:$0xff]   ;;  %v857_v35 = vld [vmem:[%s943_s6 + $0xc0] sm:$0xff]  }
  0x19   : > { %799 = vmatprep.subr.bf16.mxu0 %v843_v15  ;;  %v859_v33 = vld [vmem:[%s943_s6 + $0x38] sm:$0xff]   ;;  %v863_v38 = vld [vmem:[%s943_s6 + $0xc8] sm:$0xff]   ;;  %v864_v39 = vld [vmem:[%s943_s6 + $0xd0] sm:$0xff]  }
  0x1a   : > { %545 = vmatpush1.bf16.msra.mxu1 %v839_v12  ;;  %v794_v32 = vld [vmem:[%s1041_s4 + $0x8] sm:$0xff]  }
  0x1b   : > { %546 = vmatprep.subr.bf16.mxu1 %v882_v0 }
  0x1c   : > { %800 = vmatpush3.bf16.msra.mxu0 %v844_v16  ;;  %v787_v16 = vld [vmem:[%s1041_s4] sm:$0xff]  }
  0x1d   : > { %801 = vmatprep.subr.bf16.mxu0 %v846_v18 }
  0x1e   : > { %547 = vmatpush1.bf16.msra.mxu1 %v842_v17 }
  0x1f   : > { %548 = vmatprep.subr.bf16.mxu1 %v882_v0 }
  0x20   : > { %802 = vmatpush3.bf16.msra.mxu0 %v847_v20 }
  0x21   : > { %803 = vmatprep.subr.bf16.mxu0 %v849_v21 }
  0x22   : > { %549 = vmatpush1.bf16.msra.mxu1 %v845_v19 }
  0x23   : > { %550 = vmatprep.subr.bf16.mxu1 %v882_v0 }
  0x24   : > { %804 = vmatpush3.bf16.msra.mxu0 %v850_v23 }
  0x25   : > { %805 = vmatprep.subr.bf16.mxu0 %v852_v24 }
  0x26   : > { %551 = vmatpush1.bf16.msra.mxu1 %v848_v22 }
  0x27   : > { %552 = vmatprep.subr.bf16.mxu1 %v882_v0 }
  0x28   : > { %806 = vmatpush3.bf16.msra.mxu0 %v853_v26 }
  0x29   : > { %807 = vmatprep.subr.bf16.mxu0 %v855_v27  ;;  %v788_v27 = vunpack.c.l.bf16 %v787_v16 }
  0x2a   : > { %553 = vmatpush1.bf16.msra.mxu1 %v851_v25 }
  0x2b   : > { %554 = vmatprep.subr.bf16.mxu1 %v882_v0 }
  0x2c   : > { %808 = vmatpush3.bf16.msra.mxu0 %v856_v29 }
  0x2d   : > { %809 = vmatprep.subr.bf16.mxu0 %v858_v30 }
  0x2e   : > { %555 = vmatpush1.bf16.msra.mxu1 %v854_v28  ;;  %v789_v28 = vunpack.c.h.bf16 %v787_v16 }
  0x2f   : > { %556 = vmatprep.subr.bf16.mxu1 %v882_v0 }
  0x30   : > { %810 = vmatpush3.bf16.msra.mxu0 %v859_v33 }
  0x32   : > { %557 = vmatpush1.bf16.msra.mxu1 %v857_v35 }
  0x33   : > { %558 = vmatprep.subr.bf16.mxu1 %v882_v0  ;;  %524 = vmatmul.mubr.bf16.vlgmr.msra.gmra.mrb[0].mxu0 %v860_v36 }
  0x34   : > { %531 = vmatprep.mubr.bf16.mxu0 %v868_v37 }
  0x36   : > { %559 = vmatpush1.bf16.msra.mxu1 %v863_v38  ;;  %v792_v38 = vunpack.c.l.bf16 %v794_v32 }
  0x37   : > { %560 = vmatprep.subr.bf16.mxu1 %v882_v0 }
  0x3a   : > { %561 = vmatpush1.bf16.msra.mxu1 %v864_v39  ;;  %v793_v39 = vunpack.c.h.bf16 %v794_v32 }
  0x3b   : > { %532 = vmatmul.mubr.bf16.gmra.mrb[4].mxu0 %v870_v40 }
  0x3d   : > { %573 = vmatmul.mubr.bf16.vlgmr.msra.gmra.mrb[0].mxu1 %v865_v41 }
  0x3e   : > { %783 = vmatprep.mubr.msk.bf16.mxu1 %vm484_vm0, %v871_v42 }
  0x45   : > { %581 = vmatmul.mubr.bf16.gmra.mrb[4].mxu1 %v873_v43 }
  0x87   : > { %v606_v47 = vpop.permute.xlu1 %605 }
  0x88   : > { %v596_v45 = vpop.permute.xlu0 %595 }
  0x8b   : > { %v611_v53 = vpop.permute.xlu1 %610 }
  0x8c   : > { %v601_v52 = vpop.permute.xlu0 %600 }
  0x8f   : > { %v629_v6 = vpop.permute.xlu1 %628 }
  0x90   : > { %v624_v3 = vpop.permute.xlu0 %623 }
  0x93   : > { %v639_v24 = vpop.permute.xlu1 %638 }
  0x94   : > { %v634_v20 = vpop.permute.xlu0 %633 }
 0x106   : > { %v811_v44 = vpop.f32.mrb[0].mxu0 }
 0x107   : > { %v812_v46 = vpop.f32.mrb[1].mxu0 }
 0x108   : > { %v813_v48 = vadd.f32 %v812_v46, %v811_v44  ;;  %v814_v49 = vpop.f32.mrb[2].mxu0 }
 0x109   : > { %v815_v50 = vpop.f32.mrb[3].mxu0 }
 0x10a   : > { %v816_v51 = vadd.f32 %v815_v50, %v814_v49 }
 0x10e   : > { %v817_v54 = vpop.f32.mrb[4].mxu0 }
 0x10f   : > { %v818_v56 = vpop.f32.mrb[5].mxu0 }
 0x110   : > { %v574_v55 = vpop.f32.mrb[0].mxu1  ;;  %v819_v59 = vadd.f32 %v818_v56, %v817_v54  ;;  %v820_v60 = vpop.f32.mrb[6].mxu0 }
 0x111   : > { %v575_v57 = vadd.f32 %v813_v48, %v574_v55  ;;  %v576_v58 = vpop.f32.mrb[1].mxu1  ;;  %v821_v62 = vpop.f32.mrb[7].mxu0 }
 0x112   : > { %v577_v61 = vpop.f32.mrb[2].mxu1  ;;  %v822_v2 = vadd.f32 %v821_v62, %v820_v60 }
 0x113   : > { %v613_v63 = vmul.f32 %v596_v45, %v575_v57  ;;  %v578_v0 = vadd.f32 %v816_v51, %v577_v61  ;;  %v579_v1 = vpop.f32.mrb[3].mxu1 }
 0x115   : > { %v641_v4 = vadd.f32 %v624_v3, %v613_v63  ;;  %v614_v5 = vmul.f32 %v601_v52, %v578_v0 }
 0x117   : > { %v649_v7 = vmul.f32 0.01, %v641_v4  ;;  %v642_v8 = vadd.f32 %v629_v6, %v614_v5  ;;  %vm645_vm1 = vcmp.ge.f32.partialorder %v641_v4, 0.0 }
 0x118   : > { %v582_v9 = vpop.f32.mrb[4].mxu1 }
 0x119   : > { %vm646_vm2 = vcmp.ge.f32.partialorder %v642_v8, 0.0  ;;  %v650_v10 = vmul.f32 0.01, %v642_v8  ;;  %v583_v11 = vadd.f32 %v819_v59, %v582_v9  ;;  %v584_v12 = vpop.f32.mrb[5].mxu1  ;;  %v653_v14 = vsel %vm645_vm1, %v641_v4, %v649_v7 }
 0x11a   : > { %v585_v13 = vpop.f32.mrb[6].mxu1 }
 0x11b   : > { %v654_v15 = vsel %vm646_vm2, %v642_v8, %v650_v10  ;;  %v615_v17 = vmul.f32 %v606_v47, %v583_v11  ;;  %v586_v18 = vadd.f32 %v822_v2, %v585_v13  ;;  %v587_v19 = vpop.f32.mrb[7].mxu1 }
 0x11c   : > { %v657_v21 = vpack.c.bf16 %v654_v15, %v653_v14 }
 0x11d   : > { %v643_v22 = vadd.f32 %v634_v20, %v615_v17  ;;  %v616_v23 = vmul.f32 %v611_v53, %v586_v18 }
 0x11e   : > { %v659_v25 = vunpack.c.l.bf16 %v657_v21  ;;  %v660_v26 = vunpack.c.h.bf16 %v657_v21 }
 0x11f   : > { %v651_v29 = vmul.f32 0.01, %v643_v22  ;;  %v644_v30 = vadd.f32 %v639_v24, %v616_v23  ;;  %vm647_vm3 = vcmp.ge.f32.partialorder %v643_v22, 0.0 }
 0x120   : > { %v671_v33 = vmul.f32 %v788_v27, %v659_v25  ;;  %v672_v34 = vmul.f32 %v789_v28, %v660_v26 }
 0x121   : > { %vm648_vm4 = vcmp.ge.f32.partialorder %v644_v30, 0.0  ;;  %v652_v31 = vmul.f32 0.01, %v644_v30  ;;  %v655_v35 = vsel %vm647_vm3, %v643_v22, %v651_v29 }
 0x122   : > { %v676_v42 = vsel %vm675_vm5, %v671_v33, 0.0  ;;  %v677_v43 = vsel %vm675_vm5, %v672_v34, 0.0 }
 0x123   : > { %v656_v36 = vsel %vm648_vm4, %v644_v30, %v652_v31  ;;  %v678_v46 = vadd.f32 %v677_v43, %v676_v42 }
 0x124   : > { %v658_v37 = vpack.c.bf16 %v656_v36, %v655_v35 }
 0x126   : > { %v661_v40 = vunpack.c.l.bf16 %v658_v37  ;;  %v662_v41 = vunpack.c.h.bf16 %v658_v37 }
 0x128   : > { %v673_v44 = vmul.f32 %v792_v38, %v661_v40  ;;  %v674_v45 = vmul.f32 %v793_v39, %v662_v41 }
 0x12a   : > { %v679_v47 = vsel %vm675_vm5, %v673_v44, 0.0  ;;  %v681_v49 = vsel %vm675_vm5, %v674_v45, 0.0 }
 0x12b   : > { %v680_v48 = vadd.f32 %v679_v47, %v678_v46 }
 0x12d   : > { %v682_v50 = vadd.f32 %v681_v49, %v680_v48 }
 0x12f   : > { %v683_v51 = vrot.slane %v682_v50, 4 }
 0x131   : > { %v684_v52 = vadd.f32 %v683_v51, %v682_v50 }
 0x133   : > { %v685_v53 = vrot.slane %v684_v52, 2 }
 0x135   : > { %v686_v54 = vadd.f32 %v685_v53, %v684_v52 }
 0x137   : > { %v687_v55 = vrot.slane %v686_v54, 1 }
 0x139   : > { %v688_v56 = vadd.f32 %v687_v55, %v686_v54 }
 0x13b   : > { %v689_v57 = vsel %vm675_vm5, %v688_v56, 0.0 }
 0x13c   : > { %690 = vadd.xlane.f32.xlu0 %v689_v57 }
 0x1c9   : > { %v691_v58 = vpop.xlane.xlu0 %690 }
 0x1ca   : > { %693 = vst.msk [vmem:[%s220_s14] sm:$0x1] %vm692_vm6, %v691_v58 }
 0x1cb PF: > { %s15_s18 = sadd.s32 1, %s880_s18  }
 0x1cc   : > { %p12_p4 = scmp.ge.s32.totalorder %s15_s18, 4  }
 0x1ce   :  { %14 = sbr.rel (!%p12_p4) target bundleno = 1 (0x1), region = 70 }

</bundles_post_ra>
